<compile_context>
chip_gen: v7x
topology: tpu7x:2x2x1
jax: 0.10.0
libtpu: 0.0.40
codegen_flags: <defaults>
</compile_context>

<pallas_src>
import jax
import jax.numpy as jnp
import numpy as np
from jax import lax
from jax.experimental import pallas as pl
from jax.experimental.pallas import tpu as pltpu

_HEADW = 128  # lane-aligned fused head width (>= E + D)


# ------------------------------- kernel --------------------------------------

def _fol_kernel(box_ref, flow_ref, ego_ref,
                wbe_ref, bbe_ref, wfe_ref, bfe_ref, wee_ref, bee_ref,
                wih_enc_ref, bih_enc_ref, whh_enc_ref, bhh_enc_ref,
                wdx_ref, wdh_ref, bdec_ref, whead_ref, bhead_ref,
                out_ref,
                gi_scr, ee_scr, hseed_scr):
    f32 = jnp.float32
    bf16 = jnp.bfloat16

    T, Bp, _ = box_ref.shape
    P, TBp, E = ee_scr.shape
    H = hseed_scr.shape[2]
    NE = wih_enc_ref.shape[1]          # 6*H: [r|z] block (4H) + [n] block (2H)
    ND = wdx_ref.shape[1]              # 4*H: [r|z|gi_n|gh_n]
    HW = whead_ref.shape[1]            # fused head width (>= E + D)

    # ---------------- PHASE 0: hoisted input-only projections -----------------
    box2 = box_ref[...].reshape(T * Bp, box_ref.shape[2])
    flow2 = flow_ref[...].reshape(T * Bp, flow_ref.shape[2])
    ego2 = ego_ref[...].reshape(P * TBp, ego_ref.shape[2])

    eb = jnp.maximum(
        jnp.dot(box2, wbe_ref[...], preferred_element_type=f32) + bbe_ref[...], 0.0)
    ef = jnp.maximum(
        jnp.dot(flow2, wfe_ref[...], preferred_element_type=f32) + bfe_ref[...], 0.0)
    x_enc = jnp.concatenate([eb, ef], axis=1)                       # (T*Bp, 2E)
    gi_scr[...] = (jnp.dot(x_enc, wih_enc_ref[...], preferred_element_type=f32)
                   + bih_enc_ref[...]).reshape(T, Bp, NE)
    ee_scr[...] = jnp.maximum(
        jnp.dot(ego2, wee_ref[...], preferred_element_type=f32) + bee_ref[...],
        0.0).reshape(P, TBp, E)

    # biases broadcast once (broadcast_in_dim is not CSE'd inside loops)
    bhh_b = jnp.broadcast_to(bhh_enc_ref[...], (Bp, NE))
    bdec_b = jnp.broadcast_to(bdec_ref[...], (TBp, ND))
    bhead_b = jnp.broadcast_to(bhead_ref[...], (TBp, HW))

    # ---------------- PHASE 1: fused box/flow encoder recurrence --------------
    # h_cat lanes: [0:H]=box_h, [H:2H]=flow_h.
    # gate lanes:  [0:2H]=r (box|flow), [2H:4H]=z, [4H:6H]=n.
    h_cat = jnp.zeros((Bp, 2 * H), f32)
    for i in range(T):                                              # unrolled, T small
        gi = gi_scr[i]                                              # (Bp, 6H)
        gh = jnp.dot(h_cat.astype(bf16), whh_enc_ref[...],
                     preferred_element_type=f32) + bhh_b
        rz = jax.nn.sigmoid(gi[:, 0:4 * H] + gh[:, 0:4 * H])        # one EUP push
        r = rz[:, 0:2 * H]
        z = rz[:, 2 * H:4 * H]
        n = jnp.tanh(gi[:, 4 * H:6 * H] + r * gh[:, 4 * H:6 * H])
        h_cat = (1.0 - z) * n + z * h_cat
        # enc_concat_type = 'avg' — decoder seed for this segment
        hseed_scr[i] = 0.5 * (h_cat[:, 0:H] + h_cat[:, H:2 * H])

    # ---------------- PHASE 2: decoder, batched over all T segments -----------
    # gate lanes: [0:H]=r, [H:2H]=z, [2H:3H]=gi_n, [3H:4H]=gh_n
    h = hseed_scr[...].reshape(TBp, H)                              # (T*Bp, H)
    ph = jnp.zeros((TBp, E), f32)                                   # pred_inputs
    for j in range(P):                                              # unrolled, P small
        x = 0.5 * (ee_scr[j] + ph)                                  # with_ego fusion
        g = (jnp.dot(x.astype(bf16), wdx_ref[...], preferred_element_type=f32)
             + jnp.dot(h.astype(bf16), wdh_ref[...], preferred_element_type=f32)
             + bdec_b)
        rz = jax.nn.sigmoid(g[:, 0:2 * H])                          # one EUP push
        rd = rz[:, 0:H]
        zd = rz[:, H:2 * H]
        nd = jnp.tanh(g[:, 2 * H:3 * H] + rd * g[:, 3 * H:4 * H])
        h = (1.0 - zd) * nd + zd * h
        # fused head: relu lanes [0:E] -> next pred_inputs, tanh lanes [E:E+D] -> output
        head = jnp.dot(h.astype(bf16), whead_ref[...],
                       preferred_element_type=f32) + bhead_b
        ph = jnp.maximum(head[:, 0:E], 0.0)
        out_ref[j] = jnp.tanh(head)     # full 128-lane slab store (tanh off serial path)


# --------------------------- weight packing -----------------------------------

def _pack_params(p):
    """Fused / compact-lane kernel weights from raw (PyTorch-layout) params."""
    pn = {k: np.asarray(v, np.float32) for k, v in p.items()}
    E = pn['w_box_embed'].shape[1]
    H = pn['box_w_hh'].shape[0]
    D = pn['h2p_w'].shape[1]
    assert 4 * H <= 128 and E + D <= _HEADW

    # fused two-encoder GRU, compact gate lanes:
    #   block0 (4H): [box_r | flow_r | box_z | flow_z], block1 (2H): [box_n | flow_n]
    NE = 6 * H
    wih_enc = np.zeros((2 * E, NE), np.float32)
    bih_enc = np.zeros((1, NE), np.float32)
    whh_enc = np.zeros((2 * H, NE), np.float32)
    bhh_enc = np.zeros((1, NE), np.float32)

    def col(gate, stream):          # gate 0=r,1=z,2=n ; stream 0=box,1=flow
        return (gate * 2 * H + stream * H) if gate < 2 else (4 * H + stream * H)

    for s, name in enumerate(['box', 'flow']):
        wih, whh = pn[f'{name}_w_ih'], pn[f'{name}_w_hh']
        bih, bhh = pn[f'{name}_b_ih'], pn[f'{name}_b_hh']
        rx = slice(s * E, (s + 1) * E)
        rh = slice(s * H, (s + 1) * H)
        for g in range(3):
            c = col(g, s)
            wih_enc[rx, c:c + H] = wih[:, g * H:(g + 1) * H]
            bih_enc[0, c:c + H] = bih[0, g * H:(g + 1) * H]
            whh_enc[rh, c:c + H] = whh[:, g * H:(g + 1) * H]
            bhh_enc[0, c:c + H] = bhh[0, g * H:(g + 1) * H]

    # decoder GRU, compact 4H-lane layout [r | z | gi_n | gh_n]; split x / h parts
    ND = 4 * H
    wdec_x = np.zeros((E, ND), np.float32)
    wdec_h = np.zeros((H, ND), np.float32)
    bdec = np.zeros((1, ND), np.float32)
    wih, whh = pn['dec_w_ih'], pn['dec_w_hh']
    bih, bhh = pn['dec_b_ih'], pn['dec_b_hh']
    wdec_x[:, 0:H] = wih[:, 0:H];         wdec_h[:, 0:H] = whh[:, 0:H]
    bdec[0, 0:H] = bih[0, 0:H] + bhh[0, 0:H]
    wdec_x[:, H:2 * H] = wih[:, H:2 * H]; wdec_h[:, H:2 * H] = whh[:, H:2 * H]
    bdec[0, H:2 * H] = bih[0, H:2 * H] + bhh[0, H:2 * H]
    wdec_x[:, 2 * H:3 * H] = wih[:, 2 * H:3 * H]
    bdec[0, 2 * H:3 * H] = bih[0, 2 * H:3 * H]
    wdec_h[:, 3 * H:4 * H] = whh[:, 2 * H:3 * H]
    bdec[0, 3 * H:4 * H] = bhh[0, 2 * H:3 * H]

    # fused head: lanes [0:E] = hidden_to_pred_input (relu), [E:E+D] = hidden_to_pred (tanh)
    w_head = np.zeros((H, _HEADW), np.float32)
    b_head = np.zeros((1, _HEADW), np.float32)
    w_head[:, 0:E] = pn['h2pi_w']
    b_head[0, 0:E] = pn['h2pi_b'][0]
    w_head[:, E:E + D] = pn['h2p_w']
    b_head[0, E:E + D] = pn['h2p_b'][0]

    bf16, f32 = jnp.bfloat16, jnp.float32
    return dict(
        wbe=jnp.asarray(pn['w_box_embed'], f32), bbe=jnp.asarray(pn['b_box_embed'], f32),
        wfe=jnp.asarray(pn['w_flow_embed'], f32), bfe=jnp.asarray(pn['b_flow_embed'], f32),
        wee=jnp.asarray(pn['w_ego_embed'], f32), bee=jnp.asarray(pn['b_ego_embed'], f32),
        wih_enc=jnp.asarray(wih_enc, f32), bih_enc=jnp.asarray(bih_enc, f32),
        # in-loop weights in bf16 (f32 accumulation, f32 state / gate math)
        whh_enc=jnp.asarray(whh_enc, bf16), bhh_enc=jnp.asarray(bhh_enc, f32),
        wdec_x=jnp.asarray(wdec_x, bf16), wdec_h=jnp.asarray(wdec_h, bf16),
        bdec=jnp.asarray(bdec, f32),
        w_head=jnp.asarray(w_head, bf16), b_head=jnp.asarray(b_head, f32),
    )


# ------------------------------- wrapper --------------------------------------

def fol_rnn_ed_forward(box, flow, ego_pred, p):
    """box (B,T,4), flow (B,T,5,5,2) or (B,T,50), ego_pred (B,T,P,3)."""
    B, T, _ = box.shape
    if flow.ndim > 3:
        flow = flow.reshape(B, T, -1)                 # glue: same as torch .view
    P = ego_pred.shape[2]
    H = p['box_w_hh'].shape[0]
    E = p['w_box_embed'].shape[1]
    D = p['h2p_w'].shape[1]
    Bp = max(8, -(-B // 8) * 8)                       # pad batch to sublane tile

    w = _pack_params(p)

    def pad_b(x, axis):
        pad = [(0, 0)] * x.ndim
        pad[axis] = (0, Bp - B)
        return jnp.pad(x, pad)

    # glue: time-major, batch padded (padded rows compute bounded garbage,
    # dropped at the end).  Decoder-phase ego layout is (P, T*Bp, 3) with
    # row = t*Bp + b, matching the (T, Bp, H) seed scratch flattening.
    box_t = pad_b(jnp.transpose(box, (1, 0, 2)), 1)                     # (T, Bp, 4)
    flow_t = pad_b(jnp.transpose(flow, (1, 0, 2)), 1)                   # (T, Bp, 50)
    ego_t = pad_b(jnp.transpose(ego_pred, (2, 1, 0, 3)), 2)             # (P, T, Bp, 3)
    ego_t = ego_t.reshape(P, T * Bp, 3)

    args = (box_t, flow_t, ego_t,
            w['wbe'], w['bbe'], w['wfe'], w['bfe'], w['wee'], w['bee'],
            w['wih_enc'], w['bih_enc'], w['whh_enc'], w['bhh_enc'],
            w['wdec_x'], w['wdec_h'], w['bdec'], w['w_head'], w['b_head'])

    vmem = pltpu.MemorySpace.VMEM
    out_slab = pl.pallas_call(
        _fol_kernel,
        out_shape=jax.ShapeDtypeStruct((P, T * Bp, _HEADW), jnp.float32),
        in_specs=[pl.BlockSpec(memory_space=vmem) for _ in args],
        out_specs=pl.BlockSpec(memory_space=vmem),
        scratch_shapes=[
            pltpu.VMEM((T, Bp, 6 * H), jnp.float32),     # hoisted encoder x-side gates
            pltpu.VMEM((P, T * Bp, E), jnp.float32),     # hoisted ego embeddings
            pltpu.VMEM((T, Bp, H), jnp.float32),         # per-segment decoder seeds
        ],
        # NOTE: grid-less on purpose — at small B a grid would only add serial
        # per-step overhead on single-TensorCore chips (v5e/v6e).  For large
        # production batches on v7x, add a leading batch grid axis with
        # dimension_semantics=("parallel",) to use the second TensorCore.
    )(*args)

    # slice tanh prediction lanes [E:E+D]; lanes [0:E] are the relu preimage slab
    out = out_slab.reshape(P, T, Bp, _HEADW)[:, :, :B, E:E + D]
    return jnp.transpose(out, (2, 1, 0, 3))            # (B, T, P, D)


# -------------------------- deterministic params -----------------------------

def init_params(key, E=32, H=32, D=4):
    keys = iter(jax.random.split(key, 16))

    def lin(k, fan_in, fan_out):
        bound = 1.0 / float(np.sqrt(fan_in))
        kw, kb = jax.random.split(k)
        w = jax.random.uniform(kw, (fan_in, fan_out), jnp.float32, -bound, bound)
        b = jax.random.uniform(kb, (1, fan_out), jnp.float32, -bound, bound)
        return w, b

    def gru(k, in_size, hid):
        bound = 1.0 / float(np.sqrt(hid))
        k1, k2, k3, k4 = jax.random.split(k, 4)
        w_ih = jax.random.uniform(k1, (in_size, 3 * hid), jnp.float32, -bound, bound)
        w_hh = jax.random.uniform(k2, (hid, 3 * hid), jnp.float32, -bound, bound)
        b_ih = jax.random.uniform(k3, (1, 3 * hid), jnp.float32, -bound, bound)
        b_hh = jax.random.uniform(k4, (1, 3 * hid), jnp.float32, -bound, bound)
        return w_ih, w_hh, b_ih, b_hh

    p = {}
    p['w_box_embed'], p['b_box_embed'] = lin(next(keys), 4, E)
    p['w_flow_embed'], p['b_flow_embed'] = lin(next(keys), 50, E)
    p['w_ego_embed'], p['b_ego_embed'] = lin(next(keys), 3, E)
    p['box_w_ih'], p['box_w_hh'], p['box_b_ih'], p['box_b_hh'] = gru(next(keys), E, H)
    p['flow_w_ih'], p['flow_w_hh'], p['flow_b_ih'], p['flow_b_hh'] = gru(next(keys), E, H)
    p['dec_w_ih'], p['dec_w_hh'], p['dec_b_ih'], p['dec_b_hh'] = gru(next(keys), E, H)
    p['h2pi_w'], p['h2pi_b'] = lin(next(keys), H, E)
    p['h2p_w'], p['h2p_b'] = lin(next(keys), H, D)
    return p


# ----------------------------- pure-JAX reference ----------------------------

def reference_forward(box, flow, ego_pred, p):
    B, T, _ = box.shape
    P = ego_pred.shape[2]
    H = p['box_w_hh'].shape[0]
    E = p['w_box_embed'].shape[1]
    D = p['h2p_w'].shape[1]

    def gru(x, h, wih, whh, bih, bhh):
        gi = x @ wih + bih
        gh = h @ whh + bhh
        r = jax.nn.sigmoid(gi[:, :H] + gh[:, :H])
        z = jax.nn.sigmoid(gi[:, H:2 * H] + gh[:, H:2 * H])
        n = jnp.tanh(gi[:, 2 * H:] + r * gh[:, 2 * H:])
        return (1 - z) * n + z * h

    box_h = jnp.zeros((B, H), jnp.float32)
    flow_h = jnp.zeros((B, H), jnp.float32)
    out = np.zeros((B, T, P, D), np.float32)
    for i in range(T):
        eb = jnp.maximum(box[:, i] @ p['w_box_embed'] + p['b_box_embed'], 0.0)
        ef = jnp.maximum(flow[:, i] @ p['w_flow_embed'] + p['b_flow_embed'], 0.0)
        box_h = gru(eb, box_h, p['box_w_ih'], p['box_w_hh'], p['box_b_ih'], p['box_b_hh'])
        flow_h = gru(ef, flow_h, p['flow_w_ih'], p['flow_w_hh'], p['flow_b_ih'], p['flow_b_hh'])
        h = (box_h + flow_h) * 0.5
        pred_inputs = jnp.zeros((B, E), jnp.float32)
        for j in range(P):
            ee = jnp.maximum(ego_pred[:, i, j] @ p['w_ego_embed'] + p['b_ego_embed'], 0.0)
            pred_inputs = (ee + pred_inputs) * 0.5
            h = gru(pred_inputs, h, p['dec_w_ih'], p['dec_w_hh'], p['dec_b_ih'], p['dec_b_hh'])
            pred_inputs = jnp.maximum(h @ p['h2pi_w'] + p['h2pi_b'], 0.0)
            out[:, i, j, :] = np.asarray(jnp.tanh(h @ p['h2p_w'] + p['h2p_b']))
    return out


# ---------------------------------- main --------------------------------------

if __name__ == "__main__":
    # args: input_embed_size = predictor_input_size = 32,
    #       box_enc_size = flow_enc_size = dec_hidden_size = 32,
    #       segment_len = 8, pred_timesteps = 5, pred_dim = 4,
    #       enc_concat_type = 'avg', with_ego = True, non_linear_output = True
    B, T, P, E, H, D = 2, 8, 5, 32, 32, 4

    key = jax.random.PRNGKey(0)
    k1, k2, k3, kp = jax.random.split(key, 4)
    box = jax.random.normal(k1, (B, T, 4), jnp.float32)
    flow = jax.random.normal(k2, (B, T, 5, 5, 2), jnp.float32)
    ego_pred = jax.random.normal(k3, (B, T, P, 3), jnp.float32)
    params = init_params(kp, E=E, H=H, D=D)

    out = fol_rnn_ed_forward(box, flow, ego_pred, params)
    jax.block_until_ready(out)

    ref = reference_forward(box, flow.reshape(B, T, -1), ego_pred, params)
    # Tolerance accounts for bf16 in-loop weights (f32 accumulation / state).
    np.testing.assert_allclose(np.asarray(out), ref, atol=2e-2, rtol=2e-2)

    print("KERNEL_OK")
</pallas_src>

<mosaic_0001>
module attributes {stable_mosaic.version = 11 : i64} {
  func.func @_fol_kernel(%arg0: memref<8x8x4xf32, #tpu.memory_space<vmem>>, %arg1: memref<8x8x50xf32, #tpu.memory_space<vmem>>, %arg2: memref<5x64x3xf32, #tpu.memory_space<vmem>>, %arg3: memref<4x32xf32, #tpu.memory_space<vmem>>, %arg4: memref<1x32xf32, #tpu.memory_space<vmem>>, %arg5: memref<50x32xf32, #tpu.memory_space<vmem>>, %arg6: memref<1x32xf32, #tpu.memory_space<vmem>>, %arg7: memref<3x32xf32, #tpu.memory_space<vmem>>, %arg8: memref<1x32xf32, #tpu.memory_space<vmem>>, %arg9: memref<64x192xf32, #tpu.memory_space<vmem>>, %arg10: memref<1x192xf32, #tpu.memory_space<vmem>>, %arg11: memref<64x192xbf16, #tpu.memory_space<vmem>>, %arg12: memref<1x192xf32, #tpu.memory_space<vmem>>, %arg13: memref<32x128xbf16, #tpu.memory_space<vmem>>, %arg14: memref<32x128xbf16, #tpu.memory_space<vmem>>, %arg15: memref<1x128xf32, #tpu.memory_space<vmem>>, %arg16: memref<32x128xbf16, #tpu.memory_space<vmem>>, %arg17: memref<1x128xf32, #tpu.memory_space<vmem>>, %arg18: memref<5x64x128xf32, #tpu.memory_space<vmem>>, %arg19: memref<8x8x192xf32, #tpu.memory_space<vmem>>, %arg20: memref<5x64x32xf32, #tpu.memory_space<vmem>>, %arg21: memref<8x8x32xf32, #tpu.memory_space<vmem>>) attributes {dimension_semantics = [], scalar_prefetch = 0 : i64, scratch_operands = 3 : i64, tpu.core_type = #tpu.core_type<tc>} {
    %c0 = arith.constant 0 : index
    %c0_0 = arith.constant 0 : index
    %c0_1 = arith.constant 0 : index
    %0 = vector.load %arg0[%c0, %c0_0, %c0_1] : memref<8x8x4xf32, #tpu.memory_space<vmem>>, vector<8x8x4xf32>
    %1 = vector.shape_cast %0 : vector<8x8x4xf32> to vector<64x4xf32>
    %c0_2 = arith.constant 0 : index
    %c0_3 = arith.constant 0 : index
    %c0_4 = arith.constant 0 : index
    %2 = vector.load %arg1[%c0_2, %c0_3, %c0_4] : memref<8x8x50xf32, #tpu.memory_space<vmem>>, vector<8x8x50xf32>
    %3 = vector.shape_cast %2 : vector<8x8x50xf32> to vector<64x50xf32>
    %c0_5 = arith.constant 0 : index
    %c0_6 = arith.constant 0 : index
    %c0_7 = arith.constant 0 : index
    %4 = vector.load %arg2[%c0_5, %c0_6, %c0_7] : memref<5x64x3xf32, #tpu.memory_space<vmem>>, vector<5x64x3xf32>
    %5 = vector.shape_cast %4 : vector<5x64x3xf32> to vector<320x3xf32>
    %c0_8 = arith.constant 0 : index
    %c0_9 = arith.constant 0 : index
    %6 = vector.load %arg3[%c0_8, %c0_9] : memref<4x32xf32, #tpu.memory_space<vmem>>, vector<4x32xf32>
    %cst = arith.constant dense<0.000000e+00> : vector<64x32xf32>
    %7 = tpu.matmul %1, %6, %cst {dimension_numbers = #tpu.dot_dimension_numbers<[1], [0], [0], [1], [0, 0, 1, 1], [], []>} : vector<64x4xf32>, vector<4x32xf32>, vector<64x32xf32> -> vector<64x32xf32>
    %c0_10 = arith.constant 0 : index
    %c0_11 = arith.constant 0 : index
    %8 = vector.load %arg4[%c0_10, %c0_11] : memref<1x32xf32, #tpu.memory_space<vmem>>, vector<1x32xf32>
    %9 = vector.broadcast %8 : vector<1x32xf32> to vector<64x32xf32>
    %10 = arith.addf %7, %9 : vector<64x32xf32>
    %cst_12 = arith.constant 0.000000e+00 : f32
    %11 = vector.broadcast %cst_12 : f32 to vector<64x32xf32>
    %12 = arith.maximumf %10, %11 : vector<64x32xf32>
    %c0_13 = arith.constant 0 : index
    %c0_14 = arith.constant 0 : index
    %13 = vector.load %arg5[%c0_13, %c0_14] : memref<50x32xf32, #tpu.memory_space<vmem>>, vector<50x32xf32>
    %cst_15 = arith.constant dense<0.000000e+00> : vector<64x32xf32>
    %14 = tpu.matmul %3, %13, %cst_15 {dimension_numbers = #tpu.dot_dimension_numbers<[1], [0], [0], [1], [0, 0, 1, 1], [], []>} : vector<64x50xf32>, vector<50x32xf32>, vector<64x32xf32> -> vector<64x32xf32>
    %c0_16 = arith.constant 0 : index
    %c0_17 = arith.constant 0 : index
    %15 = vector.load %arg6[%c0_16, %c0_17] : memref<1x32xf32, #tpu.memory_space<vmem>>, vector<1x32xf32>
    %16 = vector.broadcast %15 : vector<1x32xf32> to vector<64x32xf32>
    %17 = arith.addf %14, %16 : vector<64x32xf32>
    %cst_18 = arith.constant 0.000000e+00 : f32
    %18 = vector.broadcast %cst_18 : f32 to vector<64x32xf32>
    %19 = arith.maximumf %17, %18 : vector<64x32xf32>
    %20 = tpu.concatenate %12, %19 in 1 : vector<64x32xf32>, vector<64x32xf32> -> vector<64x64xf32>
    %c0_19 = arith.constant 0 : index
    %c0_20 = arith.constant 0 : index
    %21 = vector.load %arg9[%c0_19, %c0_20] : memref<64x192xf32, #tpu.memory_space<vmem>>, vector<64x192xf32>
    %cst_21 = arith.constant dense<0.000000e+00> : vector<64x192xf32>
    %22 = tpu.matmul %20, %21, %cst_21 {dimension_numbers = #tpu.dot_dimension_numbers<[1], [0], [0], [1], [0, 0, 1, 1], [], []>} : vector<64x64xf32>, vector<64x192xf32>, vector<64x192xf32> -> vector<64x192xf32>
    %c0_22 = arith.constant 0 : index
    %c0_23 = arith.constant 0 : index
    %23 = vector.load %arg10[%c0_22, %c0_23] : memref<1x192xf32, #tpu.memory_space<vmem>>, vector<1x192xf32>
    %24 = vector.broadcast %23 : vector<1x192xf32> to vector<64x192xf32>
    %25 = arith.addf %22, %24 : vector<64x192xf32>
    %26 = vector.shape_cast %25 : vector<64x192xf32> to vector<8x8x192xf32>
    %c0_24 = arith.constant 0 : index
    %c0_25 = arith.constant 0 : index
    %c0_26 = arith.constant 0 : index
    %27 = vector.load %arg19[%c0_24, %c0_25, %c0_26] : memref<8x8x192xf32, #tpu.memory_space<vmem>>, vector<8x8x192xf32>
    tpu.vector_store %arg19[%c0_24, %c0_25, %c0_26], %26 {strides = array<i32>} : memref<8x8x192xf32, #tpu.memory_space<vmem>>, vector<8x8x192xf32>,
    %c0_27 = arith.constant 0 : index
    %c0_28 = arith.constant 0 : index
    %28 = vector.load %arg7[%c0_27, %c0_28] : memref<3x32xf32, #tpu.memory_space<vmem>>, vector<3x32xf32>
    %cst_29 = arith.constant dense<0.000000e+00> : vector<320x32xf32>
    %29 = tpu.matmul %5, %28, %cst_29 {dimension_numbers = #tpu.dot_dimension_numbers<[1], [0], [0], [1], [0, 0, 1, 1], [], []>} : vector<320x3xf32>, vector<3x32xf32>, vector<320x32xf32> -> vector<320x32xf32>
    %c0_30 = arith.constant 0 : index
    %c0_31 = arith.constant 0 : index
    %30 = vector.load %arg8[%c0_30, %c0_31] : memref<1x32xf32, #tpu.memory_space<vmem>>, vector<1x32xf32>
    %31 = vector.broadcast %30 : vector<1x32xf32> to vector<320x32xf32>
    %32 = arith.addf %29, %31 : vector<320x32xf32>
    %cst_32 = arith.constant 0.000000e+00 : f32
    %33 = vector.broadcast %cst_32 : f32 to vector<320x32xf32>
    %34 = arith.maximumf %32, %33 : vector<320x32xf32>
    %35 = vector.shape_cast %34 : vector<320x32xf32> to vector<5x64x32xf32>
    %c0_33 = arith.constant 0 : index
    %c0_34 = arith.constant 0 : index
    %c0_35 = arith.constant 0 : index
    %36 = vector.load %arg20[%c0_33, %c0_34, %c0_35] : memref<5x64x32xf32, #tpu.memory_space<vmem>>, vector<5x64x32xf32>
    tpu.vector_store %arg20[%c0_33, %c0_34, %c0_35], %35 {strides = array<i32>} : memref<5x64x32xf32, #tpu.memory_space<vmem>>, vector<5x64x32xf32>,
    %c0_36 = arith.constant 0 : index
    %c0_37 = arith.constant 0 : index
    %37 = vector.load %arg12[%c0_36, %c0_37] : memref<1x192xf32, #tpu.memory_space<vmem>>, vector<1x192xf32>
    %38 = vector.shape_cast %37 : vector<1x192xf32> to vector<1x192xf32>
    %39 = vector.broadcast %38 : vector<1x192xf32> to vector<8x192xf32>
    %c0_38 = arith.constant 0 : index
    %c0_39 = arith.constant 0 : index
    %40 = vector.load %arg15[%c0_38, %c0_39] : memref<1x128xf32, #tpu.memory_space<vmem>>, vector<1x128xf32>
    %41 = vector.shape_cast %40 : vector<1x128xf32> to vector<1x128xf32>
    %42 = vector.broadcast %41 : vector<1x128xf32> to vector<64x128xf32>
    %c0_40 = arith.constant 0 : index
    %c0_41 = arith.constant 0 : index
    %43 = vector.load %arg17[%c0_40, %c0_41] : memref<1x128xf32, #tpu.memory_space<vmem>>, vector<1x128xf32>
    %44 = vector.shape_cast %43 : vector<1x128xf32> to vector<1x128xf32>
    %45 = vector.broadcast %44 : vector<1x128xf32> to vector<64x128xf32>
    %cst_42 = arith.constant 0.000000e+00 : f32
    %46 = vector.broadcast %cst_42 : f32 to vector<8x64xf32>
    %c0_43 = arith.constant 0 : index
    %c0_44 = arith.constant 0 : index
    %c0_45 = arith.constant 0 : index
    %47 = vector.load %arg19[%c0_43, %c0_44, %c0_45] : memref<8x8x192xf32, #tpu.memory_space<vmem>>, vector<1x8x192xf32>
    %48 = vector.shape_cast %47 : vector<1x8x192xf32> to vector<8x192xf32>
    %49 = arith.truncf %46 : vector<8x64xf32> to vector<8x64xbf16>
    %c0_46 = arith.constant 0 : index
    %c0_47 = arith.constant 0 : index
    %50 = vector.load %arg11[%c0_46, %c0_47] : memref<64x192xbf16, #tpu.memory_space<vmem>>, vector<64x192xbf16>
    %cst_48 = arith.constant dense<0.000000e+00> : vector<8x192xf32>
    %51 = tpu.matmul %49, %50, %cst_48 {dimension_numbers = #tpu.dot_dimension_numbers<[1], [0], [0], [1], [0, 0, 1, 1], [], []>} : vector<8x64xbf16>, vector<64x192xbf16>, vector<8x192xf32> -> vector<8x192xf32>
    %52 = arith.addf %51, %39 : vector<8x192xf32>
    %53 = vector.extract_strided_slice %48 {offsets = [0, 0], sizes = [8, 128], strides = [1, 1]} : vector<8x192xf32> to vector<8x128xf32>
    %54 = vector.extract_strided_slice %52 {offsets = [0, 0], sizes = [8, 128], strides = [1, 1]} : vector<8x192xf32> to vector<8x128xf32>
    %55 = arith.addf %53, %54 : vector<8x128xf32>
    %56 = arith.negf %55 : vector<8x128xf32>
    %57 = math.exp %56 : vector<8x128xf32>
    %cst_49 = arith.constant 1.000000e+00 : f32
    %58 = vector.broadcast %cst_49 : f32 to vector<8x128xf32>
    %59 = arith.addf %58, %57 : vector<8x128xf32>
    %60 = arith.divf %58, %59 : vector<8x128xf32>
    %61 = vector.extract_strided_slice %60 {offsets = [0, 0], sizes = [8, 64], strides = [1, 1]} : vector<8x128xf32> to vector<8x64xf32>
    %62 = vector.extract_strided_slice %60 {offsets = [0, 64], sizes = [8, 64], strides = [1, 1]} : vector<8x128xf32> to vector<8x64xf32>
    %63 = vector.extract_strided_slice %48 {offsets = [0, 128], sizes = [8, 64], strides = [1, 1]} : vector<8x192xf32> to vector<8x64xf32>
    %64 = vector.extract_strided_slice %52 {offsets = [0, 128], sizes = [8, 64], strides = [1, 1]} : vector<8x192xf32> to vector<8x64xf32>
    %65 = arith.mulf %61, %64 : vector<8x64xf32>
    %66 = arith.addf %63, %65 : vector<8x64xf32>
    %67 = math.tanh %66 : vector<8x64xf32>
    %cst_50 = arith.constant 1.000000e+00 : f32
    %68 = vector.broadcast %cst_50 : f32 to vector<8x64xf32>
    %69 = arith.subf %68, %62 : vector<8x64xf32>
    %70 = arith.mulf %69, %67 : vector<8x64xf32>
    %71 = arith.mulf %62, %46 : vector<8x64xf32>
    %72 = arith.addf %70, %71 : vector<8x64xf32>
    %73 = vector.extract_strided_slice %72 {offsets = [0, 0], sizes = [8, 32], strides = [1, 1]} : vector<8x64xf32> to vector<8x32xf32>
    %74 = vector.extract_strided_slice %72 {offsets = [0, 32], sizes = [8, 32], strides = [1, 1]} : vector<8x64xf32> to vector<8x32xf32>
    %75 = arith.addf %73, %74 : vector<8x32xf32>
    %cst_51 = arith.constant 5.000000e-01 : f32
    %76 = vector.broadcast %cst_51 : f32 to vector<8x32xf32>
    %77 = arith.mulf %76, %75 : vector<8x32xf32>
    %c0_52 = arith.constant 0 : index
    %c0_53 = arith.constant 0 : index
    %c0_54 = arith.constant 0 : index
    %78 = vector.load %arg21[%c0_52, %c0_53, %c0_54] : memref<8x8x32xf32, #tpu.memory_space<vmem>>, vector<1x8x32xf32>
    %79 = vector.shape_cast %78 : vector<1x8x32xf32> to vector<8x32xf32>
    %80 = vector.shape_cast %77 : vector<8x32xf32> to vector<1x8x32xf32>
    tpu.vector_store %arg21[%c0_52, %c0_53, %c0_54], %80 {strides = array<i32>} : memref<8x8x32xf32, #tpu.memory_space<vmem>>, vector<1x8x32xf32>,
    %c1 = arith.constant 1 : index
    %c0_55 = arith.constant 0 : index
    %c0_56 = arith.constant 0 : index
    %81 = vector.load %arg19[%c1, %c0_55, %c0_56] : memref<8x8x192xf32, #tpu.memory_space<vmem>>, vector<1x8x192xf32>
    %82 = vector.shape_cast %81 : vector<1x8x192xf32> to vector<8x192xf32>
    %83 = arith.truncf %72 : vector<8x64xf32> to vector<8x64xbf16>
    %c0_57 = arith.constant 0 : index
    %c0_58 = arith.constant 0 : index
    %84 = vector.load %arg11[%c0_57, %c0_58] : memref<64x192xbf16, #tpu.memory_space<vmem>>, vector<64x192xbf16>
    %cst_59 = arith.constant dense<0.000000e+00> : vector<8x192xf32>
    %85 = tpu.matmul %83, %84, %cst_59 {dimension_numbers = #tpu.dot_dimension_numbers<[1], [0], [0], [1], [0, 0, 1, 1], [], []>} : vector<8x64xbf16>, vector<64x192xbf16>, vector<8x192xf32> -> vector<8x192xf32>
    %86 = arith.addf %85, %39 : vector<8x192xf32>
    %87 = vector.extract_strided_slice %82 {offsets = [0, 0], sizes = [8, 128], strides = [1, 1]} : vector<8x192xf32> to vector<8x128xf32>
    %88 = vector.extract_strided_slice %86 {offsets = [0, 0], sizes = [8, 128], strides = [1, 1]} : vector<8x192xf32> to vector<8x128xf32>
    %89 = arith.addf %87, %88 : vector<8x128xf32>
    %90 = arith.negf %89 : vector<8x128xf32>
    %91 = math.exp %90 : vector<8x128xf32>
    %cst_60 = arith.constant 1.000000e+00 : f32
    %92 = vector.broadcast %cst_60 : f32 to vector<8x128xf32>
    %93 = arith.addf %92, %91 : vector<8x128xf32>
    %94 = arith.divf %92, %93 : vector<8x128xf32>
    %95 = vector.extract_strided_slice %94 {offsets = [0, 0], sizes = [8, 64], strides = [1, 1]} : vector<8x128xf32> to vector<8x64xf32>
    %96 = vector.extract_strided_slice %94 {offsets = [0, 64], sizes = [8, 64], strides = [1, 1]} : vector<8x128xf32> to vector<8x64xf32>
    %97 = vector.extract_strided_slice %82 {offsets = [0, 128], sizes = [8, 64], strides = [1, 1]} : vector<8x192xf32> to vector<8x64xf32>
    %98 = vector.extract_strided_slice %86 {offsets = [0, 128], sizes = [8, 64], strides = [1, 1]} : vector<8x192xf32> to vector<8x64xf32>
    %99 = arith.mulf %95, %98 : vector<8x64xf32>
    %100 = arith.addf %97, %99 : vector<8x64xf32>
    %101 = math.tanh %100 : vector<8x64xf32>
    %cst_61 = arith.constant 1.000000e+00 : f32
    %102 = vector.broadcast %cst_61 : f32 to vector<8x64xf32>
    %103 = arith.subf %102, %96 : vector<8x64xf32>
    %104 = arith.mulf %103, %101 : vector<8x64xf32>
    %105 = arith.mulf %96, %72 : vector<8x64xf32>
    %106 = arith.addf %104, %105 : vector<8x64xf32>
    %107 = vector.extract_strided_slice %106 {offsets = [0, 0], sizes = [8, 32], strides = [1, 1]} : vector<8x64xf32> to vector<8x32xf32>
    %108 = vector.extract_strided_slice %106 {offsets = [0, 32], sizes = [8, 32], strides = [1, 1]} : vector<8x64xf32> to vector<8x32xf32>
    %109 = arith.addf %107, %108 : vector<8x32xf32>
    %cst_62 = arith.constant 5.000000e-01 : f32
    %110 = vector.broadcast %cst_62 : f32 to vector<8x32xf32>
    %111 = arith.mulf %110, %109 : vector<8x32xf32>
    %c1_63 = arith.constant 1 : index
    %c0_64 = arith.constant 0 : index
    %c0_65 = arith.constant 0 : index
    %112 = vector.load %arg21[%c1_63, %c0_64, %c0_65] : memref<8x8x32xf32, #tpu.memory_space<vmem>>, vector<1x8x32xf32>
    %113 = vector.shape_cast %112 : vector<1x8x32xf32> to vector<8x32xf32>
    %114 = vector.shape_cast %111 : vector<8x32xf32> to vector<1x8x32xf32>
    tpu.vector_store %arg21[%c1_63, %c0_64, %c0_65], %114 {strides = array<i32>} : memref<8x8x32xf32, #tpu.memory_space<vmem>>, vector<1x8x32xf32>,
    %c2 = arith.constant 2 : index
    %c0_66 = arith.constant 0 : index
    %c0_67 = arith.constant 0 : index
    %115 = vector.load %arg19[%c2, %c0_66, %c0_67] : memref<8x8x192xf32, #tpu.memory_space<vmem>>, vector<1x8x192xf32>
    %116 = vector.shape_cast %115 : vector<1x8x192xf32> to vector<8x192xf32>
    %117 = arith.truncf %106 : vector<8x64xf32> to vector<8x64xbf16>
    %c0_68 = arith.constant 0 : index
    %c0_69 = arith.constant 0 : index
    %118 = vector.load %arg11[%c0_68, %c0_69] : memref<64x192xbf16, #tpu.memory_space<vmem>>, vector<64x192xbf16>
    %cst_70 = arith.constant dense<0.000000e+00> : vector<8x192xf32>
    %119 = tpu.matmul %117, %118, %cst_70 {dimension_numbers = #tpu.dot_dimension_numbers<[1], [0], [0], [1], [0, 0, 1, 1], [], []>} : vector<8x64xbf16>, vector<64x192xbf16>, vector<8x192xf32> -> vector<8x192xf32>
    %120 = arith.addf %119, %39 : vector<8x192xf32>
    %121 = vector.extract_strided_slice %116 {offsets = [0, 0], sizes = [8, 128], strides = [1, 1]} : vector<8x192xf32> to vector<8x128xf32>
    %122 = vector.extract_strided_slice %120 {offsets = [0, 0], sizes = [8, 128], strides = [1, 1]} : vector<8x192xf32> to vector<8x128xf32>
    %123 = arith.addf %121, %122 : vector<8x128xf32>
    %124 = arith.negf %123 : vector<8x128xf32>
    %125 = math.exp %124 : vector<8x128xf32>
    %cst_71 = arith.constant 1.000000e+00 : f32
    %126 = vector.broadcast %cst_71 : f32 to vector<8x128xf32>
    %127 = arith.addf %126, %125 : vector<8x128xf32>
    %128 = arith.divf %126, %127 : vector<8x128xf32>
    %129 = vector.extract_strided_slice %128 {offsets = [0, 0], sizes = [8, 64], strides = [1, 1]} : vector<8x128xf32> to vector<8x64xf32>
    %130 = vector.extract_strided_slice %128 {offsets = [0, 64], sizes = [8, 64], strides = [1, 1]} : vector<8x128xf32> to vector<8x64xf32>
    %131 = vector.extract_strided_slice %116 {offsets = [0, 128], sizes = [8, 64], strides = [1, 1]} : vector<8x192xf32> to vector<8x64xf32>
    %132 = vector.extract_strided_slice %120 {offsets = [0, 128], sizes = [8, 64], strides = [1, 1]} : vector<8x192xf32> to vector<8x64xf32>
    %133 = arith.mulf %129, %132 : vector<8x64xf32>
    %134 = arith.addf %131, %133 : vector<8x64xf32>
    %135 = math.tanh %134 : vector<8x64xf32>
    %cst_72 = arith.constant 1.000000e+00 : f32
    %136 = vector.broadcast %cst_72 : f32 to vector<8x64xf32>
    %137 = arith.subf %136, %130 : vector<8x64xf32>
    %138 = arith.mulf %137, %135 : vector<8x64xf32>
    %139 = arith.mulf %130, %106 : vector<8x64xf32>
    %140 = arith.addf %138, %139 : vector<8x64xf32>
    %141 = vector.extract_strided_slice %140 {offsets = [0, 0], sizes = [8, 32], strides = [1, 1]} : vector<8x64xf32> to vector<8x32xf32>
    %142 = vector.extract_strided_slice %140 {offsets = [0, 32], sizes = [8, 32], strides = [1, 1]} : vector<8x64xf32> to vector<8x32xf32>
    %143 = arith.addf %141, %142 : vector<8x32xf32>
    %cst_73 = arith.constant 5.000000e-01 : f32
    %144 = vector.broadcast %cst_73 : f32 to vector<8x32xf32>
    %145 = arith.mulf %144, %143 : vector<8x32xf32>
    %c2_74 = arith.constant 2 : index
    %c0_75 = arith.constant 0 : index
    %c0_76 = arith.constant 0 : index
    %146 = vector.load %arg21[%c2_74, %c0_75, %c0_76] : memref<8x8x32xf32, #tpu.memory_space<vmem>>, vector<1x8x32xf32>
    %147 = vector.shape_cast %146 : vector<1x8x32xf32> to vector<8x32xf32>
    %148 = vector.shape_cast %145 : vector<8x32xf32> to vector<1x8x32xf32>
    tpu.vector_store %arg21[%c2_74, %c0_75, %c0_76], %148 {strides = array<i32>} : memref<8x8x32xf32, #tpu.memory_space<vmem>>, vector<1x8x32xf32>,
    %c3 = arith.constant 3 : index
    %c0_77 = arith.constant 0 : index
    %c0_78 = arith.constant 0 : index
    %149 = vector.load %arg19[%c3, %c0_77, %c0_78] : memref<8x8x192xf32, #tpu.memory_space<vmem>>, vector<1x8x192xf32>
    %150 = vector.shape_cast %149 : vector<1x8x192xf32> to vector<8x192xf32>
    %151 = arith.truncf %140 : vector<8x64xf32> to vector<8x64xbf16>
    %c0_79 = arith.constant 0 : index
    %c0_80 = arith.constant 0 : index
    %152 = vector.load %arg11[%c0_79, %c0_80] : memref<64x192xbf16, #tpu.memory_space<vmem>>, vector<64x192xbf16>
    %cst_81 = arith.constant dense<0.000000e+00> : vector<8x192xf32>
    %153 = tpu.matmul %151, %152, %cst_81 {dimension_numbers = #tpu.dot_dimension_numbers<[1], [0], [0], [1], [0, 0, 1, 1], [], []>} : vector<8x64xbf16>, vector<64x192xbf16>, vector<8x192xf32> -> vector<8x192xf32>
    %154 = arith.addf %153, %39 : vector<8x192xf32>
    %155 = vector.extract_strided_slice %150 {offsets = [0, 0], sizes = [8, 128], strides = [1, 1]} : vector<8x192xf32> to vector<8x128xf32>
    %156 = vector.extract_strided_slice %154 {offsets = [0, 0], sizes = [8, 128], strides = [1, 1]} : vector<8x192xf32> to vector<8x128xf32>
    %157 = arith.addf %155, %156 : vector<8x128xf32>
    %158 = arith.negf %157 : vector<8x128xf32>
    %159 = math.exp %158 : vector<8x128xf32>
    %cst_82 = arith.constant 1.000000e+00 : f32
    %160 = vector.broadcast %cst_82 : f32 to vector<8x128xf32>
    %161 = arith.addf %160, %159 : vector<8x128xf32>
    %162 = arith.divf %160, %161 : vector<8x128xf32>
    %163 = vector.extract_strided_slice %162 {offsets = [0, 0], sizes = [8, 64], strides = [1, 1]} : vector<8x128xf32> to vector<8x64xf32>
    %164 = vector.extract_strided_slice %162 {offsets = [0, 64], sizes = [8, 64], strides = [1, 1]} : vector<8x128xf32> to vector<8x64xf32>
    %165 = vector.extract_strided_slice %150 {offsets = [0, 128], sizes = [8, 64], strides = [1, 1]} : vector<8x192xf32> to vector<8x64xf32>
    %166 = vector.extract_strided_slice %154 {offsets = [0, 128], sizes = [8, 64], strides = [1, 1]} : vector<8x192xf32> to vector<8x64xf32>
    %167 = arith.mulf %163, %166 : vector<8x64xf32>
    %168 = arith.addf %165, %167 : vector<8x64xf32>
    %169 = math.tanh %168 : vector<8x64xf32>
    %cst_83 = arith.constant 1.000000e+00 : f32
    %170 = vector.broadcast %cst_83 : f32 to vector<8x64xf32>
    %171 = arith.subf %170, %164 : vector<8x64xf32>
    %172 = arith.mulf %171, %169 : vector<8x64xf32>
    %173 = arith.mulf %164, %140 : vector<8x64xf32>
    %174 = arith.addf %172, %173 : vector<8x64xf32>
    %175 = vector.extract_strided_slice %174 {offsets = [0, 0], sizes = [8, 32], strides = [1, 1]} : vector<8x64xf32> to vector<8x32xf32>
    %176 = vector.extract_strided_slice %174 {offsets = [0, 32], sizes = [8, 32], strides = [1, 1]} : vector<8x64xf32> to vector<8x32xf32>
    %177 = arith.addf %175, %176 : vector<8x32xf32>
    %cst_84 = arith.constant 5.000000e-01 : f32
    %178 = vector.broadcast %cst_84 : f32 to vector<8x32xf32>
    %179 = arith.mulf %178, %177 : vector<8x32xf32>
    %c3_85 = arith.constant 3 : index
    %c0_86 = arith.constant 0 : index
    %c0_87 = arith.constant 0 : index
    %180 = vector.load %arg21[%c3_85, %c0_86, %c0_87] : memref<8x8x32xf32, #tpu.memory_space<vmem>>, vector<1x8x32xf32>
    %181 = vector.shape_cast %180 : vector<1x8x32xf32> to vector<8x32xf32>
    %182 = vector.shape_cast %179 : vector<8x32xf32> to vector<1x8x32xf32>
    tpu.vector_store %arg21[%c3_85, %c0_86, %c0_87], %182 {strides = array<i32>} : memref<8x8x32xf32, #tpu.memory_space<vmem>>, vector<1x8x32xf32>,
    %c4 = arith.constant 4 : index
    %c0_88 = arith.constant 0 : index
    %c0_89 = arith.constant 0 : index
    %183 = vector.load %arg19[%c4, %c0_88, %c0_89] : memref<8x8x192xf32, #tpu.memory_space<vmem>>, vector<1x8x192xf32>
    %184 = vector.shape_cast %183 : vector<1x8x192xf32> to vector<8x192xf32>
    %185 = arith.truncf %174 : vector<8x64xf32> to vector<8x64xbf16>
    %c0_90 = arith.constant 0 : index
    %c0_91 = arith.constant 0 : index
    %186 = vector.load %arg11[%c0_90, %c0_91] : memref<64x192xbf16, #tpu.memory_space<vmem>>, vector<64x192xbf16>
    %cst_92 = arith.constant dense<0.000000e+00> : vector<8x192xf32>
    %187 = tpu.matmul %185, %186, %cst_92 {dimension_numbers = #tpu.dot_dimension_numbers<[1], [0], [0], [1], [0, 0, 1, 1], [], []>} : vector<8x64xbf16>, vector<64x192xbf16>, vector<8x192xf32> -> vector<8x192xf32>
    %188 = arith.addf %187, %39 : vector<8x192xf32>
    %189 = vector.extract_strided_slice %184 {offsets = [0, 0], sizes = [8, 128], strides = [1, 1]} : vector<8x192xf32> to vector<8x128xf32>
    %190 = vector.extract_strided_slice %188 {offsets = [0, 0], sizes = [8, 128], strides = [1, 1]} : vector<8x192xf32> to vector<8x128xf32>
    %191 = arith.addf %189, %190 : vector<8x128xf32>
    %192 = arith.negf %191 : vector<8x128xf32>
    %193 = math.exp %192 : vector<8x128xf32>
    %cst_93 = arith.constant 1.000000e+00 : f32
    %194 = vector.broadcast %cst_93 : f32 to vector<8x128xf32>
    %195 = arith.addf %194, %193 : vector<8x128xf32>
    %196 = arith.divf %194, %195 : vector<8x128xf32>
    %197 = vector.extract_strided_slice %196 {offsets = [0, 0], sizes = [8, 64], strides = [1, 1]} : vector<8x128xf32> to vector<8x64xf32>
    %198 = vector.extract_strided_slice %196 {offsets = [0, 64], sizes = [8, 64], strides = [1, 1]} : vector<8x128xf32> to vector<8x64xf32>
    %199 = vector.extract_strided_slice %184 {offsets = [0, 128], sizes = [8, 64], strides = [1, 1]} : vector<8x192xf32> to vector<8x64xf32>
    %200 = vector.extract_strided_slice %188 {offsets = [0, 128], sizes = [8, 64], strides = [1, 1]} : vector<8x192xf32> to vector<8x64xf32>
    %201 = arith.mulf %197, %200 : vector<8x64xf32>
    %202 = arith.addf %199, %201 : vector<8x64xf32>
    %203 = math.tanh %202 : vector<8x64xf32>
    %cst_94 = arith.constant 1.000000e+00 : f32
    %204 = vector.broadcast %cst_94 : f32 to vector<8x64xf32>
    %205 = arith.subf %204, %198 : vector<8x64xf32>
    %206 = arith.mulf %205, %203 : vector<8x64xf32>
    %207 = arith.mulf %198, %174 : vector<8x64xf32>
    %208 = arith.addf %206, %207 : vector<8x64xf32>
    %209 = vector.extract_strided_slice %208 {offsets = [0, 0], sizes = [8, 32], strides = [1, 1]} : vector<8x64xf32> to vector<8x32xf32>
    %210 = vector.extract_strided_slice %208 {offsets = [0, 32], sizes = [8, 32], strides = [1, 1]} : vector<8x64xf32> to vector<8x32xf32>
    %211 = arith.addf %209, %210 : vector<8x32xf32>
    %cst_95 = arith.constant 5.000000e-01 : f32
    %212 = vector.broadcast %cst_95 : f32 to vector<8x32xf32>
    %213 = arith.mulf %212, %211 : vector<8x32xf32>
    %c4_96 = arith.constant 4 : index
    %c0_97 = arith.constant 0 : index
    %c0_98 = arith.constant 0 : index
    %214 = vector.load %arg21[%c4_96, %c0_97, %c0_98] : memref<8x8x32xf32, #tpu.memory_space<vmem>>, vector<1x8x32xf32>
    %215 = vector.shape_cast %214 : vector<1x8x32xf32> to vector<8x32xf32>
    %216 = vector.shape_cast %213 : vector<8x32xf32> to vector<1x8x32xf32>
    tpu.vector_store %arg21[%c4_96, %c0_97, %c0_98], %216 {strides = array<i32>} : memref<8x8x32xf32, #tpu.memory_space<vmem>>, vector<1x8x32xf32>,
    %c5 = arith.constant 5 : index
    %c0_99 = arith.constant 0 : index
    %c0_100 = arith.constant 0 : index
    %217 = vector.load %arg19[%c5, %c0_99, %c0_100] : memref<8x8x192xf32, #tpu.memory_space<vmem>>, vector<1x8x192xf32>
    %218 = vector.shape_cast %217 : vector<1x8x192xf32> to vector<8x192xf32>
    %219 = arith.truncf %208 : vector<8x64xf32> to vector<8x64xbf16>
    %c0_101 = arith.constant 0 : index
    %c0_102 = arith.constant 0 : index
    %220 = vector.load %arg11[%c0_101, %c0_102] : memref<64x192xbf16, #tpu.memory_space<vmem>>, vector<64x192xbf16>
    %cst_103 = arith.constant dense<0.000000e+00> : vector<8x192xf32>
    %221 = tpu.matmul %219, %220, %cst_103 {dimension_numbers = #tpu.dot_dimension_numbers<[1], [0], [0], [1], [0, 0, 1, 1], [], []>} : vector<8x64xbf16>, vector<64x192xbf16>, vector<8x192xf32> -> vector<8x192xf32>
    %222 = arith.addf %221, %39 : vector<8x192xf32>
    %223 = vector.extract_strided_slice %218 {offsets = [0, 0], sizes = [8, 128], strides = [1, 1]} : vector<8x192xf32> to vector<8x128xf32>
    %224 = vector.extract_strided_slice %222 {offsets = [0, 0], sizes = [8, 128], strides = [1, 1]} : vector<8x192xf32> to vector<8x128xf32>
    %225 = arith.addf %223, %224 : vector<8x128xf32>
    %226 = arith.negf %225 : vector<8x128xf32>
    %227 = math.exp %226 : vector<8x128xf32>
    %cst_104 = arith.constant 1.000000e+00 : f32
    %228 = vector.broadcast %cst_104 : f32 to vector<8x128xf32>
    %229 = arith.addf %228, %227 : vector<8x128xf32>
    %230 = arith.divf %228, %229 : vector<8x128xf32>
    %231 = vector.extract_strided_slice %230 {offsets = [0, 0], sizes = [8, 64], strides = [1, 1]} : vector<8x128xf32> to vector<8x64xf32>
    %232 = vector.extract_strided_slice %230 {offsets = [0, 64], sizes = [8, 64], strides = [1, 1]} : vector<8x128xf32> to vector<8x64xf32>
    %233 = vector.extract_strided_slice %218 {offsets = [0, 128], sizes = [8, 64], strides = [1, 1]} : vector<8x192xf32> to vector<8x64xf32>
    %234 = vector.extract_strided_slice %222 {offsets = [0, 128], sizes = [8, 64], strides = [1, 1]} : vector<8x192xf32> to vector<8x64xf32>
    %235 = arith.mulf %231, %234 : vector<8x64xf32>
    %236 = arith.addf %233, %235 : vector<8x64xf32>
    %237 = math.tanh %236 : vector<8x64xf32>
    %cst_105 = arith.constant 1.000000e+00 : f32
    %238 = vector.broadcast %cst_105 : f32 to vector<8x64xf32>
    %239 = arith.subf %238, %232 : vector<8x64xf32>
    %240 = arith.mulf %239, %237 : vector<8x64xf32>
    %241 = arith.mulf %232, %208 : vector<8x64xf32>
    %242 = arith.addf %240, %241 : vector<8x64xf32>
    %243 = vector.extract_strided_slice %242 {offsets = [0, 0], sizes = [8, 32], strides = [1, 1]} : vector<8x64xf32> to vector<8x32xf32>
    %244 = vector.extract_strided_slice %242 {offsets = [0, 32], sizes = [8, 32], strides = [1, 1]} : vector<8x64xf32> to vector<8x32xf32>
    %245 = arith.addf %243, %244 : vector<8x32xf32>
    %cst_106 = arith.constant 5.000000e-01 : f32
    %246 = vector.broadcast %cst_106 : f32 to vector<8x32xf32>
    %247 = arith.mulf %246, %245 : vector<8x32xf32>
    %c5_107 = arith.constant 5 : index
    %c0_108 = arith.constant 0 : index
    %c0_109 = arith.constant 0 : index
    %248 = vector.load %arg21[%c5_107, %c0_108, %c0_109] : memref<8x8x32xf32, #tpu.memory_space<vmem>>, vector<1x8x32xf32>
    %249 = vector.shape_cast %248 : vector<1x8x32xf32> to vector<8x32xf32>
    %250 = vector.shape_cast %247 : vector<8x32xf32> to vector<1x8x32xf32>
    tpu.vector_store %arg21[%c5_107, %c0_108, %c0_109], %250 {strides = array<i32>} : memref<8x8x32xf32, #tpu.memory_space<vmem>>, vector<1x8x32xf32>,
    %c6 = arith.constant 6 : index
    %c0_110 = arith.constant 0 : index
    %c0_111 = arith.constant 0 : index
    %251 = vector.load %arg19[%c6, %c0_110, %c0_111] : memref<8x8x192xf32, #tpu.memory_space<vmem>>, vector<1x8x192xf32>
    %252 = vector.shape_cast %251 : vector<1x8x192xf32> to vector<8x192xf32>
    %253 = arith.truncf %242 : vector<8x64xf32> to vector<8x64xbf16>
    %c0_112 = arith.constant 0 : index
    %c0_113 = arith.constant 0 : index
    %254 = vector.load %arg11[%c0_112, %c0_113] : memref<64x192xbf16, #tpu.memory_space<vmem>>, vector<64x192xbf16>
    %cst_114 = arith.constant dense<0.000000e+00> : vector<8x192xf32>
    %255 = tpu.matmul %253, %254, %cst_114 {dimension_numbers = #tpu.dot_dimension_numbers<[1], [0], [0], [1], [0, 0, 1, 1], [], []>} : vector<8x64xbf16>, vector<64x192xbf16>, vector<8x192xf32> -> vector<8x192xf32>
    %256 = arith.addf %255, %39 : vector<8x192xf32>
    %257 = vector.extract_strided_slice %252 {offsets = [0, 0], sizes = [8, 128], strides = [1, 1]} : vector<8x192xf32> to vector<8x128xf32>
    %258 = vector.extract_strided_slice %256 {offsets = [0, 0], sizes = [8, 128], strides = [1, 1]} : vector<8x192xf32> to vector<8x128xf32>
    %259 = arith.addf %257, %258 : vector<8x128xf32>
    %260 = arith.negf %259 : vector<8x128xf32>
    %261 = math.exp %260 : vector<8x128xf32>
    %cst_115 = arith.constant 1.000000e+00 : f32
    %262 = vector.broadcast %cst_115 : f32 to vector<8x128xf32>
    %263 = arith.addf %262, %261 : vector<8x128xf32>
    %264 = arith.divf %262, %263 : vector<8x128xf32>
    %265 = vector.extract_strided_slice %264 {offsets = [0, 0], sizes = [8, 64], strides = [1, 1]} : vector<8x128xf32> to vector<8x64xf32>
    %266 = vector.extract_strided_slice %264 {offsets = [0, 64], sizes = [8, 64], strides = [1, 1]} : vector<8x128xf32> to vector<8x64xf32>
    %267 = vector.extract_strided_slice %252 {offsets = [0, 128], sizes = [8, 64], strides = [1, 1]} : vector<8x192xf32> to vector<8x64xf32>
    %268 = vector.extract_strided_slice %256 {offsets = [0, 128], sizes = [8, 64], strides = [1, 1]} : vector<8x192xf32> to vector<8x64xf32>
    %269 = arith.mulf %265, %268 : vector<8x64xf32>
    %270 = arith.addf %267, %269 : vector<8x64xf32>
    %271 = math.tanh %270 : vector<8x64xf32>
    %cst_116 = arith.constant 1.000000e+00 : f32
    %272 = vector.broadcast %cst_116 : f32 to vector<8x64xf32>
    %273 = arith.subf %272, %266 : vector<8x64xf32>
    %274 = arith.mulf %273, %271 : vector<8x64xf32>
    %275 = arith.mulf %266, %242 : vector<8x64xf32>
    %276 = arith.addf %274, %275 : vector<8x64xf32>
    %277 = vector.extract_strided_slice %276 {offsets = [0, 0], sizes = [8, 32], strides = [1, 1]} : vector<8x64xf32> to vector<8x32xf32>
    %278 = vector.extract_strided_slice %276 {offsets = [0, 32], sizes = [8, 32], strides = [1, 1]} : vector<8x64xf32> to vector<8x32xf32>
    %279 = arith.addf %277, %278 : vector<8x32xf32>
    %cst_117 = arith.constant 5.000000e-01 : f32
    %280 = vector.broadcast %cst_117 : f32 to vector<8x32xf32>
    %281 = arith.mulf %280, %279 : vector<8x32xf32>
    %c6_118 = arith.constant 6 : index
    %c0_119 = arith.constant 0 : index
    %c0_120 = arith.constant 0 : index
    %282 = vector.load %arg21[%c6_118, %c0_119, %c0_120] : memref<8x8x32xf32, #tpu.memory_space<vmem>>, vector<1x8x32xf32>
    %283 = vector.shape_cast %282 : vector<1x8x32xf32> to vector<8x32xf32>
    %284 = vector.shape_cast %281 : vector<8x32xf32> to vector<1x8x32xf32>
    tpu.vector_store %arg21[%c6_118, %c0_119, %c0_120], %284 {strides = array<i32>} : memref<8x8x32xf32, #tpu.memory_space<vmem>>, vector<1x8x32xf32>,
    %c7 = arith.constant 7 : index
    %c0_121 = arith.constant 0 : index
    %c0_122 = arith.constant 0 : index
    %285 = vector.load %arg19[%c7, %c0_121, %c0_122] : memref<8x8x192xf32, #tpu.memory_space<vmem>>, vector<1x8x192xf32>
    %286 = vector.shape_cast %285 : vector<1x8x192xf32> to vector<8x192xf32>
    %287 = arith.truncf %276 : vector<8x64xf32> to vector<8x64xbf16>
    %c0_123 = arith.constant 0 : index
    %c0_124 = arith.constant 0 : index
    %288 = vector.load %arg11[%c0_123, %c0_124] : memref<64x192xbf16, #tpu.memory_space<vmem>>, vector<64x192xbf16>
    %cst_125 = arith.constant dense<0.000000e+00> : vector<8x192xf32>
    %289 = tpu.matmul %287, %288, %cst_125 {dimension_numbers = #tpu.dot_dimension_numbers<[1], [0], [0], [1], [0, 0, 1, 1], [], []>} : vector<8x64xbf16>, vector<64x192xbf16>, vector<8x192xf32> -> vector<8x192xf32>
    %290 = arith.addf %289, %39 : vector<8x192xf32>
    %291 = vector.extract_strided_slice %286 {offsets = [0, 0], sizes = [8, 128], strides = [1, 1]} : vector<8x192xf32> to vector<8x128xf32>
    %292 = vector.extract_strided_slice %290 {offsets = [0, 0], sizes = [8, 128], strides = [1, 1]} : vector<8x192xf32> to vector<8x128xf32>
    %293 = arith.addf %291, %292 : vector<8x128xf32>
    %294 = arith.negf %293 : vector<8x128xf32>
    %295 = math.exp %294 : vector<8x128xf32>
    %cst_126 = arith.constant 1.000000e+00 : f32
    %296 = vector.broadcast %cst_126 : f32 to vector<8x128xf32>
    %297 = arith.addf %296, %295 : vector<8x128xf32>
    %298 = arith.divf %296, %297 : vector<8x128xf32>
    %299 = vector.extract_strided_slice %298 {offsets = [0, 0], sizes = [8, 64], strides = [1, 1]} : vector<8x128xf32> to vector<8x64xf32>
    %300 = vector.extract_strided_slice %298 {offsets = [0, 64], sizes = [8, 64], strides = [1, 1]} : vector<8x128xf32> to vector<8x64xf32>
    %301 = vector.extract_strided_slice %286 {offsets = [0, 128], sizes = [8, 64], strides = [1, 1]} : vector<8x192xf32> to vector<8x64xf32>
    %302 = vector.extract_strided_slice %290 {offsets = [0, 128], sizes = [8, 64], strides = [1, 1]} : vector<8x192xf32> to vector<8x64xf32>
    %303 = arith.mulf %299, %302 : vector<8x64xf32>
    %304 = arith.addf %301, %303 : vector<8x64xf32>
    %305 = math.tanh %304 : vector<8x64xf32>
    %cst_127 = arith.constant 1.000000e+00 : f32
    %306 = vector.broadcast %cst_127 : f32 to vector<8x64xf32>
    %307 = arith.subf %306, %300 : vector<8x64xf32>
    %308 = arith.mulf %307, %305 : vector<8x64xf32>
    %309 = arith.mulf %300, %276 : vector<8x64xf32>
    %310 = arith.addf %308, %309 : vector<8x64xf32>
    %311 = vector.extract_strided_slice %310 {offsets = [0, 0], sizes = [8, 32], strides = [1, 1]} : vector<8x64xf32> to vector<8x32xf32>
    %312 = vector.extract_strided_slice %310 {offsets = [0, 32], sizes = [8, 32], strides = [1, 1]} : vector<8x64xf32> to vector<8x32xf32>
    %313 = arith.addf %311, %312 : vector<8x32xf32>
    %cst_128 = arith.constant 5.000000e-01 : f32
    %314 = vector.broadcast %cst_128 : f32 to vector<8x32xf32>
    %315 = arith.mulf %314, %313 : vector<8x32xf32>
    %c7_129 = arith.constant 7 : index
    %c0_130 = arith.constant 0 : index
    %c0_131 = arith.constant 0 : index
    %316 = vector.load %arg21[%c7_129, %c0_130, %c0_131] : memref<8x8x32xf32, #tpu.memory_space<vmem>>, vector<1x8x32xf32>
    %317 = vector.shape_cast %316 : vector<1x8x32xf32> to vector<8x32xf32>
    %318 = vector.shape_cast %315 : vector<8x32xf32> to vector<1x8x32xf32>
    tpu.vector_store %arg21[%c7_129, %c0_130, %c0_131], %318 {strides = array<i32>} : memref<8x8x32xf32, #tpu.memory_space<vmem>>, vector<1x8x32xf32>,
    %c0_132 = arith.constant 0 : index
    %c0_133 = arith.constant 0 : index
    %c0_134 = arith.constant 0 : index
    %319 = vector.load %arg21[%c0_132, %c0_133, %c0_134] : memref<8x8x32xf32, #tpu.memory_space<vmem>>, vector<8x8x32xf32>
    %320 = vector.shape_cast %319 : vector<8x8x32xf32> to vector<64x32xf32>
    %cst_135 = arith.constant 0.000000e+00 : f32
    %321 = vector.broadcast %cst_135 : f32 to vector<64x32xf32>
    %c0_136 = arith.constant 0 : index
    %c0_137 = arith.constant 0 : index
    %c0_138 = arith.constant 0 : index
    %322 = vector.load %arg20[%c0_136, %c0_137, %c0_138] : memref<5x64x32xf32, #tpu.memory_space<vmem>>, vector<1x64x32xf32>
    %323 = vector.shape_cast %322 : vector<1x64x32xf32> to vector<64x32xf32>
    %324 = arith.addf %323, %321 : vector<64x32xf32>
    %cst_139 = arith.constant 5.000000e-01 : f32
    %325 = vector.broadcast %cst_139 : f32 to vector<64x32xf32>
    %326 = arith.mulf %325, %324 : vector<64x32xf32>
    %327 = arith.truncf %326 : vector<64x32xf32> to vector<64x32xbf16>
    %c0_140 = arith.constant 0 : index
    %c0_141 = arith.constant 0 : index
    %328 = vector.load %arg13[%c0_140, %c0_141] : memref<32x128xbf16, #tpu.memory_space<vmem>>, vector<32x128xbf16>
    %cst_142 = arith.constant dense<0.000000e+00> : vector<64x128xf32>
    %329 = tpu.matmul %327, %328, %cst_142 {dimension_numbers = #tpu.dot_dimension_numbers<[1], [0], [0], [1], [0, 0, 1, 1], [], []>} : vector<64x32xbf16>, vector<32x128xbf16>, vector<64x128xf32> -> vector<64x128xf32>
    %330 = arith.truncf %320 : vector<64x32xf32> to vector<64x32xbf16>
    %c0_143 = arith.constant 0 : index
    %c0_144 = arith.constant 0 : index
    %331 = vector.load %arg14[%c0_143, %c0_144] : memref<32x128xbf16, #tpu.memory_space<vmem>>, vector<32x128xbf16>
    %cst_145 = arith.constant dense<0.000000e+00> : vector<64x128xf32>
    %332 = tpu.matmul %330, %331, %cst_145 {dimension_numbers = #tpu.dot_dimension_numbers<[1], [0], [0], [1], [0, 0, 1, 1], [], []>} : vector<64x32xbf16>, vector<32x128xbf16>, vector<64x128xf32> -> vector<64x128xf32>
    %333 = arith.addf %329, %332 : vector<64x128xf32>
    %334 = arith.addf %333, %42 : vector<64x128xf32>
    %335 = vector.extract_strided_slice %334 {offsets = [0, 0], sizes = [64, 64], strides = [1, 1]} : vector<64x128xf32> to vector<64x64xf32>
    %336 = arith.negf %335 : vector<64x64xf32>
    %337 = math.exp %336 : vector<64x64xf32>
    %cst_146 = arith.constant 1.000000e+00 : f32
    %338 = vector.broadcast %cst_146 : f32 to vector<64x64xf32>
    %339 = arith.addf %338, %337 : vector<64x64xf32>
    %340 = arith.divf %338, %339 : vector<64x64xf32>
    %341 = vector.extract_strided_slice %340 {offsets = [0, 0], sizes = [64, 32], strides = [1, 1]} : vector<64x64xf32> to vector<64x32xf32>
    %342 = vector.extract_strided_slice %340 {offsets = [0, 32], sizes = [64, 32], strides = [1, 1]} : vector<64x64xf32> to vector<64x32xf32>
    %343 = vector.extract_strided_slice %334 {offsets = [0, 64], sizes = [64, 32], strides = [1, 1]} : vector<64x128xf32> to vector<64x32xf32>
    %344 = vector.extract_strided_slice %334 {offsets = [0, 96], sizes = [64, 32], strides = [1, 1]} : vector<64x128xf32> to vector<64x32xf32>
    %345 = arith.mulf %341, %344 : vector<64x32xf32>
    %346 = arith.addf %343, %345 : vector<64x32xf32>
    %347 = math.tanh %346 : vector<64x32xf32>
    %cst_147 = arith.constant 1.000000e+00 : f32
    %348 = vector.broadcast %cst_147 : f32 to vector<64x32xf32>
    %349 = arith.subf %348, %342 : vector<64x32xf32>
    %350 = arith.mulf %349, %347 : vector<64x32xf32>
    %351 = arith.mulf %342, %320 : vector<64x32xf32>
    %352 = arith.addf %350, %351 : vector<64x32xf32>
    %353 = arith.truncf %352 : vector<64x32xf32> to vector<64x32xbf16>
    %c0_148 = arith.constant 0 : index
    %c0_149 = arith.constant 0 : index
    %354 = vector.load %arg16[%c0_148, %c0_149] : memref<32x128xbf16, #tpu.memory_space<vmem>>, vector<32x128xbf16>
    %cst_150 = arith.constant dense<0.000000e+00> : vector<64x128xf32>
    %355 = tpu.matmul %353, %354, %cst_150 {dimension_numbers = #tpu.dot_dimension_numbers<[1], [0], [0], [1], [0, 0, 1, 1], [], []>} : vector<64x32xbf16>, vector<32x128xbf16>, vector<64x128xf32> -> vector<64x128xf32>
    %356 = arith.addf %355, %45 : vector<64x128xf32>
    %357 = vector.extract_strided_slice %356 {offsets = [0, 0], sizes = [64, 32], strides = [1, 1]} : vector<64x128xf32> to vector<64x32xf32>
    %cst_151 = arith.constant 0.000000e+00 : f32
    %358 = vector.broadcast %cst_151 : f32 to vector<64x32xf32>
    %359 = arith.maximumf %357, %358 : vector<64x32xf32>
    %360 = math.tanh %356 : vector<64x128xf32>
    %c0_152 = arith.constant 0 : index
    %c0_153 = arith.constant 0 : index
    %c0_154 = arith.constant 0 : index
    %361 = vector.load %arg18[%c0_152, %c0_153, %c0_154] : memref<5x64x128xf32, #tpu.memory_space<vmem>>, vector<1x64x128xf32>
    %362 = vector.shape_cast %361 : vector<1x64x128xf32> to vector<64x128xf32>
    %363 = vector.shape_cast %360 : vector<64x128xf32> to vector<1x64x128xf32>
    tpu.vector_store %arg18[%c0_152, %c0_153, %c0_154], %363 {strides = array<i32>} : memref<5x64x128xf32, #tpu.memory_space<vmem>>, vector<1x64x128xf32>,
    %c1_155 = arith.constant 1 : index
    %c0_156 = arith.constant 0 : index
    %c0_157 = arith.constant 0 : index
    %364 = vector.load %arg20[%c1_155, %c0_156, %c0_157] : memref<5x64x32xf32, #tpu.memory_space<vmem>>, vector<1x64x32xf32>
    %365 = vector.shape_cast %364 : vector<1x64x32xf32> to vector<64x32xf32>
    %366 = arith.addf %365, %359 : vector<64x32xf32>
    %cst_158 = arith.constant 5.000000e-01 : f32
    %367 = vector.broadcast %cst_158 : f32 to vector<64x32xf32>
    %368 = arith.mulf %367, %366 : vector<64x32xf32>
    %369 = arith.truncf %368 : vector<64x32xf32> to vector<64x32xbf16>
    %c0_159 = arith.constant 0 : index
    %c0_160 = arith.constant 0 : index
    %370 = vector.load %arg13[%c0_159, %c0_160] : memref<32x128xbf16, #tpu.memory_space<vmem>>, vector<32x128xbf16>
    %cst_161 = arith.constant dense<0.000000e+00> : vector<64x128xf32>
    %371 = tpu.matmul %369, %370, %cst_161 {dimension_numbers = #tpu.dot_dimension_numbers<[1], [0], [0], [1], [0, 0, 1, 1], [], []>} : vector<64x32xbf16>, vector<32x128xbf16>, vector<64x128xf32> -> vector<64x128xf32>
    %372 = arith.truncf %352 : vector<64x32xf32> to vector<64x32xbf16>
    %c0_162 = arith.constant 0 : index
    %c0_163 = arith.constant 0 : index
    %373 = vector.load %arg14[%c0_162, %c0_163] : memref<32x128xbf16, #tpu.memory_space<vmem>>, vector<32x128xbf16>
    %cst_164 = arith.constant dense<0.000000e+00> : vector<64x128xf32>
    %374 = tpu.matmul %372, %373, %cst_164 {dimension_numbers = #tpu.dot_dimension_numbers<[1], [0], [0], [1], [0, 0, 1, 1], [], []>} : vector<64x32xbf16>, vector<32x128xbf16>, vector<64x128xf32> -> vector<64x128xf32>
    %375 = arith.addf %371, %374 : vector<64x128xf32>
    %376 = arith.addf %375, %42 : vector<64x128xf32>
    %377 = vector.extract_strided_slice %376 {offsets = [0, 0], sizes = [64, 64], strides = [1, 1]} : vector<64x128xf32> to vector<64x64xf32>
    %378 = arith.negf %377 : vector<64x64xf32>
    %379 = math.exp %378 : vector<64x64xf32>
    %cst_165 = arith.constant 1.000000e+00 : f32
    %380 = vector.broadcast %cst_165 : f32 to vector<64x64xf32>
    %381 = arith.addf %380, %379 : vector<64x64xf32>
    %382 = arith.divf %380, %381 : vector<64x64xf32>
    %383 = vector.extract_strided_slice %382 {offsets = [0, 0], sizes = [64, 32], strides = [1, 1]} : vector<64x64xf32> to vector<64x32xf32>
    %384 = vector.extract_strided_slice %382 {offsets = [0, 32], sizes = [64, 32], strides = [1, 1]} : vector<64x64xf32> to vector<64x32xf32>
    %385 = vector.extract_strided_slice %376 {offsets = [0, 64], sizes = [64, 32], strides = [1, 1]} : vector<64x128xf32> to vector<64x32xf32>
    %386 = vector.extract_strided_slice %376 {offsets = [0, 96], sizes = [64, 32], strides = [1, 1]} : vector<64x128xf32> to vector<64x32xf32>
    %387 = arith.mulf %383, %386 : vector<64x32xf32>
    %388 = arith.addf %385, %387 : vector<64x32xf32>
    %389 = math.tanh %388 : vector<64x32xf32>
    %cst_166 = arith.constant 1.000000e+00 : f32
    %390 = vector.broadcast %cst_166 : f32 to vector<64x32xf32>
    %391 = arith.subf %390, %384 : vector<64x32xf32>
    %392 = arith.mulf %391, %389 : vector<64x32xf32>
    %393 = arith.mulf %384, %352 : vector<64x32xf32>
    %394 = arith.addf %392, %393 : vector<64x32xf32>
    %395 = arith.truncf %394 : vector<64x32xf32> to vector<64x32xbf16>
    %c0_167 = arith.constant 0 : index
    %c0_168 = arith.constant 0 : index
    %396 = vector.load %arg16[%c0_167, %c0_168] : memref<32x128xbf16, #tpu.memory_space<vmem>>, vector<32x128xbf16>
    %cst_169 = arith.constant dense<0.000000e+00> : vector<64x128xf32>
    %397 = tpu.matmul %395, %396, %cst_169 {dimension_numbers = #tpu.dot_dimension_numbers<[1], [0], [0], [1], [0, 0, 1, 1], [], []>} : vector<64x32xbf16>, vector<32x128xbf16>, vector<64x128xf32> -> vector<64x128xf32>
    %398 = arith.addf %397, %45 : vector<64x128xf32>
    %399 = vector.extract_strided_slice %398 {offsets = [0, 0], sizes = [64, 32], strides = [1, 1]} : vector<64x128xf32> to vector<64x32xf32>
    %cst_170 = arith.constant 0.000000e+00 : f32
    %400 = vector.broadcast %cst_170 : f32 to vector<64x32xf32>
    %401 = arith.maximumf %399, %400 : vector<64x32xf32>
    %402 = math.tanh %398 : vector<64x128xf32>
    %c1_171 = arith.constant 1 : index
    %c0_172 = arith.constant 0 : index
    %c0_173 = arith.constant 0 : index
    %403 = vector.load %arg18[%c1_171, %c0_172, %c0_173] : memref<5x64x128xf32, #tpu.memory_space<vmem>>, vector<1x64x128xf32>
    %404 = vector.shape_cast %403 : vector<1x64x128xf32> to vector<64x128xf32>
    %405 = vector.shape_cast %402 : vector<64x128xf32> to vector<1x64x128xf32>
    tpu.vector_store %arg18[%c1_171, %c0_172, %c0_173], %405 {strides = array<i32>} : memref<5x64x128xf32, #tpu.memory_space<vmem>>, vector<1x64x128xf32>,
    %c2_174 = arith.constant 2 : index
    %c0_175 = arith.constant 0 : index
    %c0_176 = arith.constant 0 : index
    %406 = vector.load %arg20[%c2_174, %c0_175, %c0_176] : memref<5x64x32xf32, #tpu.memory_space<vmem>>, vector<1x64x32xf32>
    %407 = vector.shape_cast %406 : vector<1x64x32xf32> to vector<64x32xf32>
    %408 = arith.addf %407, %401 : vector<64x32xf32>
    %cst_177 = arith.constant 5.000000e-01 : f32
    %409 = vector.broadcast %cst_177 : f32 to vector<64x32xf32>
    %410 = arith.mulf %409, %408 : vector<64x32xf32>
    %411 = arith.truncf %410 : vector<64x32xf32> to vector<64x32xbf16>
    %c0_178 = arith.constant 0 : index
    %c0_179 = arith.constant 0 : index
    %412 = vector.load %arg13[%c0_178, %c0_179] : memref<32x128xbf16, #tpu.memory_space<vmem>>, vector<32x128xbf16>
    %cst_180 = arith.constant dense<0.000000e+00> : vector<64x128xf32>
    %413 = tpu.matmul %411, %412, %cst_180 {dimension_numbers = #tpu.dot_dimension_numbers<[1], [0], [0], [1], [0, 0, 1, 1], [], []>} : vector<64x32xbf16>, vector<32x128xbf16>, vector<64x128xf32> -> vector<64x128xf32>
    %414 = arith.truncf %394 : vector<64x32xf32> to vector<64x32xbf16>
    %c0_181 = arith.constant 0 : index
    %c0_182 = arith.constant 0 : index
    %415 = vector.load %arg14[%c0_181, %c0_182] : memref<32x128xbf16, #tpu.memory_space<vmem>>, vector<32x128xbf16>
    %cst_183 = arith.constant dense<0.000000e+00> : vector<64x128xf32>
    %416 = tpu.matmul %414, %415, %cst_183 {dimension_numbers = #tpu.dot_dimension_numbers<[1], [0], [0], [1], [0, 0, 1, 1], [], []>} : vector<64x32xbf16>, vector<32x128xbf16>, vector<64x128xf32> -> vector<64x128xf32>
    %417 = arith.addf %413, %416 : vector<64x128xf32>
    %418 = arith.addf %417, %42 : vector<64x128xf32>
    %419 = vector.extract_strided_slice %418 {offsets = [0, 0], sizes = [64, 64], strides = [1, 1]} : vector<64x128xf32> to vector<64x64xf32>
    %420 = arith.negf %419 : vector<64x64xf32>
    %421 = math.exp %420 : vector<64x64xf32>
    %cst_184 = arith.constant 1.000000e+00 : f32
    %422 = vector.broadcast %cst_184 : f32 to vector<64x64xf32>
    %423 = arith.addf %422, %421 : vector<64x64xf32>
    %424 = arith.divf %422, %423 : vector<64x64xf32>
    %425 = vector.extract_strided_slice %424 {offsets = [0, 0], sizes = [64, 32], strides = [1, 1]} : vector<64x64xf32> to vector<64x32xf32>
    %426 = vector.extract_strided_slice %424 {offsets = [0, 32], sizes = [64, 32], strides = [1, 1]} : vector<64x64xf32> to vector<64x32xf32>
    %427 = vector.extract_strided_slice %418 {offsets = [0, 64], sizes = [64, 32], strides = [1, 1]} : vector<64x128xf32> to vector<64x32xf32>
    %428 = vector.extract_strided_slice %418 {offsets = [0, 96], sizes = [64, 32], strides = [1, 1]} : vector<64x128xf32> to vector<64x32xf32>
    %429 = arith.mulf %425, %428 : vector<64x32xf32>
    %430 = arith.addf %427, %429 : vector<64x32xf32>
    %431 = math.tanh %430 : vector<64x32xf32>
    %cst_185 = arith.constant 1.000000e+00 : f32
    %432 = vector.broadcast %cst_185 : f32 to vector<64x32xf32>
    %433 = arith.subf %432, %426 : vector<64x32xf32>
    %434 = arith.mulf %433, %431 : vector<64x32xf32>
    %435 = arith.mulf %426, %394 : vector<64x32xf32>
    %436 = arith.addf %434, %435 : vector<64x32xf32>
    %437 = arith.truncf %436 : vector<64x32xf32> to vector<64x32xbf16>
    %c0_186 = arith.constant 0 : index
    %c0_187 = arith.constant 0 : index
    %438 = vector.load %arg16[%c0_186, %c0_187] : memref<32x128xbf16, #tpu.memory_space<vmem>>, vector<32x128xbf16>
    %cst_188 = arith.constant dense<0.000000e+00> : vector<64x128xf32>
    %439 = tpu.matmul %437, %438, %cst_188 {dimension_numbers = #tpu.dot_dimension_numbers<[1], [0], [0], [1], [0, 0, 1, 1], [], []>} : vector<64x32xbf16>, vector<32x128xbf16>, vector<64x128xf32> -> vector<64x128xf32>
    %440 = arith.addf %439, %45 : vector<64x128xf32>
    %441 = vector.extract_strided_slice %440 {offsets = [0, 0], sizes = [64, 32], strides = [1, 1]} : vector<64x128xf32> to vector<64x32xf32>
    %cst_189 = arith.constant 0.000000e+00 : f32
    %442 = vector.broadcast %cst_189 : f32 to vector<64x32xf32>
    %443 = arith.maximumf %441, %442 : vector<64x32xf32>
    %444 = math.tanh %440 : vector<64x128xf32>
    %c2_190 = arith.constant 2 : index
    %c0_191 = arith.constant 0 : index
    %c0_192 = arith.constant 0 : index
    %445 = vector.load %arg18[%c2_190, %c0_191, %c0_192] : memref<5x64x128xf32, #tpu.memory_space<vmem>>, vector<1x64x128xf32>
    %446 = vector.shape_cast %445 : vector<1x64x128xf32> to vector<64x128xf32>
    %447 = vector.shape_cast %444 : vector<64x128xf32> to vector<1x64x128xf32>
    tpu.vector_store %arg18[%c2_190, %c0_191, %c0_192], %447 {strides = array<i32>} : memref<5x64x128xf32, #tpu.memory_space<vmem>>, vector<1x64x128xf32>,
    %c3_193 = arith.constant 3 : index
    %c0_194 = arith.constant 0 : index
    %c0_195 = arith.constant 0 : index
    %448 = vector.load %arg20[%c3_193, %c0_194, %c0_195] : memref<5x64x32xf32, #tpu.memory_space<vmem>>, vector<1x64x32xf32>
    %449 = vector.shape_cast %448 : vector<1x64x32xf32> to vector<64x32xf32>
    %450 = arith.addf %449, %443 : vector<64x32xf32>
    %cst_196 = arith.constant 5.000000e-01 : f32
    %451 = vector.broadcast %cst_196 : f32 to vector<64x32xf32>
    %452 = arith.mulf %451, %450 : vector<64x32xf32>
    %453 = arith.truncf %452 : vector<64x32xf32> to vector<64x32xbf16>
    %c0_197 = arith.constant 0 : index
    %c0_198 = arith.constant 0 : index
    %454 = vector.load %arg13[%c0_197, %c0_198] : memref<32x128xbf16, #tpu.memory_space<vmem>>, vector<32x128xbf16>
    %cst_199 = arith.constant dense<0.000000e+00> : vector<64x128xf32>
    %455 = tpu.matmul %453, %454, %cst_199 {dimension_numbers = #tpu.dot_dimension_numbers<[1], [0], [0], [1], [0, 0, 1, 1], [], []>} : vector<64x32xbf16>, vector<32x128xbf16>, vector<64x128xf32> -> vector<64x128xf32>
    %456 = arith.truncf %436 : vector<64x32xf32> to vector<64x32xbf16>
    %c0_200 = arith.constant 0 : index
    %c0_201 = arith.constant 0 : index
    %457 = vector.load %arg14[%c0_200, %c0_201] : memref<32x128xbf16, #tpu.memory_space<vmem>>, vector<32x128xbf16>
    %cst_202 = arith.constant dense<0.000000e+00> : vector<64x128xf32>
    %458 = tpu.matmul %456, %457, %cst_202 {dimension_numbers = #tpu.dot_dimension_numbers<[1], [0], [0], [1], [0, 0, 1, 1], [], []>} : vector<64x32xbf16>, vector<32x128xbf16>, vector<64x128xf32> -> vector<64x128xf32>
    %459 = arith.addf %455, %458 : vector<64x128xf32>
    %460 = arith.addf %459, %42 : vector<64x128xf32>
    %461 = vector.extract_strided_slice %460 {offsets = [0, 0], sizes = [64, 64], strides = [1, 1]} : vector<64x128xf32> to vector<64x64xf32>
    %462 = arith.negf %461 : vector<64x64xf32>
    %463 = math.exp %462 : vector<64x64xf32>
    %cst_203 = arith.constant 1.000000e+00 : f32
    %464 = vector.broadcast %cst_203 : f32 to vector<64x64xf32>
    %465 = arith.addf %464, %463 : vector<64x64xf32>
    %466 = arith.divf %464, %465 : vector<64x64xf32>
    %467 = vector.extract_strided_slice %466 {offsets = [0, 0], sizes = [64, 32], strides = [1, 1]} : vector<64x64xf32> to vector<64x32xf32>
    %468 = vector.extract_strided_slice %466 {offsets = [0, 32], sizes = [64, 32], strides = [1, 1]} : vector<64x64xf32> to vector<64x32xf32>
    %469 = vector.extract_strided_slice %460 {offsets = [0, 64], sizes = [64, 32], strides = [1, 1]} : vector<64x128xf32> to vector<64x32xf32>
    %470 = vector.extract_strided_slice %460 {offsets = [0, 96], sizes = [64, 32], strides = [1, 1]} : vector<64x128xf32> to vector<64x32xf32>
    %471 = arith.mulf %467, %470 : vector<64x32xf32>
    %472 = arith.addf %469, %471 : vector<64x32xf32>
    %473 = math.tanh %472 : vector<64x32xf32>
    %cst_204 = arith.constant 1.000000e+00 : f32
    %474 = vector.broadcast %cst_204 : f32 to vector<64x32xf32>
    %475 = arith.subf %474, %468 : vector<64x32xf32>
    %476 = arith.mulf %475, %473 : vector<64x32xf32>
    %477 = arith.mulf %468, %436 : vector<64x32xf32>
    %478 = arith.addf %476, %477 : vector<64x32xf32>
    %479 = arith.truncf %478 : vector<64x32xf32> to vector<64x32xbf16>
    %c0_205 = arith.constant 0 : index
    %c0_206 = arith.constant 0 : index
    %480 = vector.load %arg16[%c0_205, %c0_206] : memref<32x128xbf16, #tpu.memory_space<vmem>>, vector<32x128xbf16>
    %cst_207 = arith.constant dense<0.000000e+00> : vector<64x128xf32>
    %481 = tpu.matmul %479, %480, %cst_207 {dimension_numbers = #tpu.dot_dimension_numbers<[1], [0], [0], [1], [0, 0, 1, 1], [], []>} : vector<64x32xbf16>, vector<32x128xbf16>, vector<64x128xf32> -> vector<64x128xf32>
    %482 = arith.addf %481, %45 : vector<64x128xf32>
    %483 = vector.extract_strided_slice %482 {offsets = [0, 0], sizes = [64, 32], strides = [1, 1]} : vector<64x128xf32> to vector<64x32xf32>
    %cst_208 = arith.constant 0.000000e+00 : f32
    %484 = vector.broadcast %cst_208 : f32 to vector<64x32xf32>
    %485 = arith.maximumf %483, %484 : vector<64x32xf32>
    %486 = math.tanh %482 : vector<64x128xf32>
    %c3_209 = arith.constant 3 : index
    %c0_210 = arith.constant 0 : index
    %c0_211 = arith.constant 0 : index
    %487 = vector.load %arg18[%c3_209, %c0_210, %c0_211] : memref<5x64x128xf32, #tpu.memory_space<vmem>>, vector<1x64x128xf32>
    %488 = vector.shape_cast %487 : vector<1x64x128xf32> to vector<64x128xf32>
    %489 = vector.shape_cast %486 : vector<64x128xf32> to vector<1x64x128xf32>
    tpu.vector_store %arg18[%c3_209, %c0_210, %c0_211], %489 {strides = array<i32>} : memref<5x64x128xf32, #tpu.memory_space<vmem>>, vector<1x64x128xf32>,
    %c4_212 = arith.constant 4 : index
    %c0_213 = arith.constant 0 : index
    %c0_214 = arith.constant 0 : index
    %490 = vector.load %arg20[%c4_212, %c0_213, %c0_214] : memref<5x64x32xf32, #tpu.memory_space<vmem>>, vector<1x64x32xf32>
    %491 = vector.shape_cast %490 : vector<1x64x32xf32> to vector<64x32xf32>
    %492 = arith.addf %491, %485 : vector<64x32xf32>
    %cst_215 = arith.constant 5.000000e-01 : f32
    %493 = vector.broadcast %cst_215 : f32 to vector<64x32xf32>
    %494 = arith.mulf %493, %492 : vector<64x32xf32>
    %495 = arith.truncf %494 : vector<64x32xf32> to vector<64x32xbf16>
    %c0_216 = arith.constant 0 : index
    %c0_217 = arith.constant 0 : index
    %496 = vector.load %arg13[%c0_216, %c0_217] : memref<32x128xbf16, #tpu.memory_space<vmem>>, vector<32x128xbf16>
    %cst_218 = arith.constant dense<0.000000e+00> : vector<64x128xf32>
    %497 = tpu.matmul %495, %496, %cst_218 {dimension_numbers = #tpu.dot_dimension_numbers<[1], [0], [0], [1], [0, 0, 1, 1], [], []>} : vector<64x32xbf16>, vector<32x128xbf16>, vector<64x128xf32> -> vector<64x128xf32>
    %498 = arith.truncf %478 : vector<64x32xf32> to vector<64x32xbf16>
    %c0_219 = arith.constant 0 : index
    %c0_220 = arith.constant 0 : index
    %499 = vector.load %arg14[%c0_219, %c0_220] : memref<32x128xbf16, #tpu.memory_space<vmem>>, vector<32x128xbf16>
    %cst_221 = arith.constant dense<0.000000e+00> : vector<64x128xf32>
    %500 = tpu.matmul %498, %499, %cst_221 {dimension_numbers = #tpu.dot_dimension_numbers<[1], [0], [0], [1], [0, 0, 1, 1], [], []>} : vector<64x32xbf16>, vector<32x128xbf16>, vector<64x128xf32> -> vector<64x128xf32>
    %501 = arith.addf %497, %500 : vector<64x128xf32>
    %502 = arith.addf %501, %42 : vector<64x128xf32>
    %503 = vector.extract_strided_slice %502 {offsets = [0, 0], sizes = [64, 64], strides = [1, 1]} : vector<64x128xf32> to vector<64x64xf32>
    %504 = arith.negf %503 : vector<64x64xf32>
    %505 = math.exp %504 : vector<64x64xf32>
    %cst_222 = arith.constant 1.000000e+00 : f32
    %506 = vector.broadcast %cst_222 : f32 to vector<64x64xf32>
    %507 = arith.addf %506, %505 : vector<64x64xf32>
    %508 = arith.divf %506, %507 : vector<64x64xf32>
    %509 = vector.extract_strided_slice %508 {offsets = [0, 0], sizes = [64, 32], strides = [1, 1]} : vector<64x64xf32> to vector<64x32xf32>
    %510 = vector.extract_strided_slice %508 {offsets = [0, 32], sizes = [64, 32], strides = [1, 1]} : vector<64x64xf32> to vector<64x32xf32>
    %511 = vector.extract_strided_slice %502 {offsets = [0, 64], sizes = [64, 32], strides = [1, 1]} : vector<64x128xf32> to vector<64x32xf32>
    %512 = vector.extract_strided_slice %502 {offsets = [0, 96], sizes = [64, 32], strides = [1, 1]} : vector<64x128xf32> to vector<64x32xf32>
    %513 = arith.mulf %509, %512 : vector<64x32xf32>
    %514 = arith.addf %511, %513 : vector<64x32xf32>
    %515 = math.tanh %514 : vector<64x32xf32>
    %cst_223 = arith.constant 1.000000e+00 : f32
    %516 = vector.broadcast %cst_223 : f32 to vector<64x32xf32>
    %517 = arith.subf %516, %510 : vector<64x32xf32>
    %518 = arith.mulf %517, %515 : vector<64x32xf32>
    %519 = arith.mulf %510, %478 : vector<64x32xf32>
    %520 = arith.addf %518, %519 : vector<64x32xf32>
    %521 = arith.truncf %520 : vector<64x32xf32> to vector<64x32xbf16>
    %c0_224 = arith.constant 0 : index
    %c0_225 = arith.constant 0 : index
    %522 = vector.load %arg16[%c0_224, %c0_225] : memref<32x128xbf16, #tpu.memory_space<vmem>>, vector<32x128xbf16>
    %cst_226 = arith.constant dense<0.000000e+00> : vector<64x128xf32>
    %523 = tpu.matmul %521, %522, %cst_226 {dimension_numbers = #tpu.dot_dimension_numbers<[1], [0], [0], [1], [0, 0, 1, 1], [], []>} : vector<64x32xbf16>, vector<32x128xbf16>, vector<64x128xf32> -> vector<64x128xf32>
    %524 = arith.addf %523, %45 : vector<64x128xf32>
    %525 = math.tanh %524 : vector<64x128xf32>
    %c4_227 = arith.constant 4 : index
    %c0_228 = arith.constant 0 : index
    %c0_229 = arith.constant 0 : index
    %526 = vector.load %arg18[%c4_227, %c0_228, %c0_229] : memref<5x64x128xf32, #tpu.memory_space<vmem>>, vector<1x64x128xf32>
    %527 = vector.shape_cast %526 : vector<1x64x128xf32> to vector<64x128xf32>
    %528 = vector.shape_cast %525 : vector<64x128xf32> to vector<1x64x128xf32>
    tpu.vector_store %arg18[%c4_227, %c0_228, %c0_229], %528 {strides = array<i32>} : memref<5x64x128xf32, #tpu.memory_space<vmem>>, vector<1x64x128xf32>,
    return
  }
}

</mosaic_0001>

<bundles_post_ra>
// kernel: tpu_custom_call.1
= control target key start
LH: loop header
LB: loop body
LE: loop exit
PB: predicated region body
PF: predicated region fallthrough
CT: control target
= control target key end

     0   :  { %s7958_s0 = inlined_call_operand.vmem [shape: f32[8,8,4], index: 0, kind: input, shape index: {}]   ;;  %s7959_s1 = inlined_call_operand.vmem [shape: f32[8,8,50], index: 1, kind: input, shape index: {}]   ;;  %s7960_s2 = inlined_call_operand.vmem [shape: f32[5,64,3], index: 2, kind: input, shape index: {}]   ;;  %s7961_s3 = inlined_call_operand.vmem [shape: f32[4,32], index: 3, kind: input, shape index: {}]   ;;  %s7962_s4 = inlined_call_operand.vmem [shape: f32[1,32], index: 4, kind: input, shape index: {}]   ;;  %s7963_s5 = inlined_call_operand.vmem [shape: f32[50,32], index: 5, kind: input, shape index: {}]   ;;  %s7964_s6 = inlined_call_operand.vmem [shape: f32[1,32], index: 6, kind: input, shape index: {}]   ;;  %s7965_s7 = inlined_call_operand.vmem [shape: f32[3,32], index: 7, kind: input, shape index: {}]   ;;  %s7966_s8 = inlined_call_operand.vmem [shape: f32[1,32], index: 8, kind: input, shape index: {}]   ;;  %s7967_s9 = inlined_call_operand.vmem [shape: f32[64,192], index: 9, kind: input, shape index: {}]   ;;  %s7968_s10 = inlined_call_operand.vmem [shape: f32[1,192], index: 10, kind: input, shape index: {}]   ;;  %s7969_s11 = inlined_call_operand.vmem [shape: bf16[64,192], index: 11, kind: input, shape index: {}]   ;;  %s7970_s12 = inlined_call_operand.vmem [shape: f32[1,192], index: 12, kind: input, shape index: {}]   ;;  %s7971_s13 = inlined_call_operand.vmem [shape: bf16[32,128], index: 13, kind: input, shape index: {}]   ;;  %s7972_s14 = inlined_call_operand.vmem [shape: bf16[32,128], index: 14, kind: input, shape index: {}]   ;;  %s7973_s15 = inlined_call_operand.vmem [shape: f32[1,128], index: 15, kind: input, shape index: {}]   ;;  %s7974_s16 = inlined_call_operand.vmem [shape: bf16[32,128], index: 16, kind: input, shape index: {}]   ;;  %s7975_s17 = inlined_call_operand.vmem [shape: f32[1,128], index: 17, kind: input, shape index: {}]   ;;  %s7976_s18 = inlined_call_operand.hbm [shape: f32[5,64,128], index: 18, kind: output, shape index: {}]  }
   0x1   :  { %7980 = sst [smem:[#allocation8_spill]] %s7958_s0 }
   0x2   :  { %7981 = sst [smem:[#allocation9_spill]] %s7959_s1 }
   0x3   :  { %7982 = sst [smem:[#allocation10_spill]] %s7960_s2 }
   0x4   :  { %v267_v0 = vld [vmem:[%s7963_s5] sm:$0xff]  ;;  %v268_v1 = vld [vmem:[%s7963_s5 + $0x8] sm:$0xff]  ;;  %v269_v2 = vld [vmem:[%s7963_s5 + $0x10] sm:$0xff]  ;;  %vm281_vm0 = vcmask 408576   ;;  %s7983_s26 = sld [smem:[#allocation9_spill]]  ;;  %vm150_vm1 = vcmask 1043456  }
   0x5   :  { %v5681_v3 = vpack.c.bf16 %v268_v1, %v267_v0  ;;  %v270_v4 = vld [vmem:[%s7963_s5 + $0x18] sm:$0xff]  ;;  %v271_v6 = vld [vmem:[%s7963_s5 + $0x20] sm:$0xff]  ;;  %v272_v7 = vld [vmem:[%s7963_s5 + $0x28] sm:$0xff]  ;;  %vm125_vm2 = vcmask 31744   ;;  %s7984_s0 = sld [smem:[#allocation8_spill]]  ;;  %vm306_vm3 = vcmask 1041408  }
   0x6   :  { %v5685_v5 = vpack.c.bf16 %v270_v4, %v269_v2  ;;  %v5689_v9 = vpack.c.bf16 %v272_v7, %v271_v6  ;;  %v117_v10 = vld [vmem:[%s7961_s3] sm:$0xf]  ;;  %v273_v15 = vld [vmem:[%s7963_s5 + $0x30] sm:$0x3] }
   0x7   :  { %5682 = vmatprep.subr.bf16.mxu1 %v5681_v3  ;;  %5399 = vmatprep.subr.msk.mxu0 %vm150_vm1, %v117_v10 }
   0x8   :  { %5684 = vmatpush3.bf16.msra.mxu1 %v5681_v3  ;;  %5400 = vmatpush3.msk.msra.mxu0 %vm150_vm1, %v117_v10 }
   0x9   :  { %5686 = vmatprep.subr.bf16.mxu1 %v5685_v5 }
   0xa   :  { %v69_v8 = vld [vmem:[%s7983_s26] sm:$0xff]  ;;  %v70_v18 = vld [vmem:[%s7983_s26 + $0x8] sm:$0xff]  ;;  %v71_v20 = vld [vmem:[%s7983_s26 + $0x10] sm:$0xff] }
   0xb   :  { %5427 = vmatprep.mubr.msk.f32.mxu1 %vm281_vm0, %v69_v8  ;;  %v61_v11 = vld [vmem:[%s7984_s0] sm:$0xff]  ;;  %v62_v12 = vld [vmem:[%s7984_s0 + $0x8] sm:$0xff]  ;;  %v63_v13 = vld [vmem:[%s7984_s0 + $0x10] sm:$0xff] }
   0xc   :  { %5401 = vmatprep.mubr.msk.f32.mxu0 %vm125_vm2, %v61_v11  ;;  %v64_v14 = vld [vmem:[%s7984_s0 + $0x18] sm:$0xff]  ;;  %5688 = vmatpush3.bf16.msra.mxu1 %v5685_v5  ;;  %v65_v16 = vld [vmem:[%s7984_s0 + $0x20] sm:$0xff]  ;;  %v66_v17 = vld [vmem:[%s7984_s0 + $0x28] sm:$0xff] }
   0xd   :  { %5402 = vmatmul.mubr.msk.f32.vlgmr.msra.gmra.mrb[0].mxu0 %vm125_vm2, %v62_v12  ;;  %5690 = vmatprep.subr.bf16.mxu1 %v5689_v9  ;;  %v67_v19 = vld [vmem:[%s7984_s0 + $0x30] sm:$0xff]  ;;  %v68_v21 = vld [vmem:[%s7984_s0 + $0x38] sm:$0xff]  ;;  %v73_v23 = vld [vmem:[%s7983_s26 + $0x20] sm:$0xff] }
   0xe   :  { %5404 = vmatprep.mubr.msk.f32.mxu0 %vm125_vm2, %v63_v13  ;;  %v72_v22 = vld [vmem:[%s7983_s26 + $0x18] sm:$0xff]  ;;  %v74_v24 = vld [vmem:[%s7983_s26 + $0x28] sm:$0xff]  ;;  %v75_v25 = vld [vmem:[%s7983_s26 + $0x30] sm:$0xff] }
   0xf   :  { %v76_v26 = vld [vmem:[%s7983_s26 + $0x38] sm:$0xff] }
  0x10   :  { %5692 = vmatpush3.bf16.msra.mxu1 %v5689_v9 }
  0x11   :  { %5405 = vmatmul.mubr.msk.f32.gmra.mrb[2].mxu0 %vm125_vm2, %v64_v14  ;;  %5425 = vmatprep.subr.msk.mxu1 %vm306_vm3, %v273_v15 }
  0x12   :  { %5407 = vmatprep.mubr.msk.f32.mxu0 %vm125_vm2, %v65_v16 }
  0x14   :  { %5426 = vmatpush3.msk.msra.mxu1 %vm306_vm3, %v273_v15 }
  0x15   :  { %5408 = vmatmul.mubr.msk.f32.gmra.mrb[4].mxu0 %vm125_vm2, %v66_v17  ;;  %5428 = vmatmul.mubr.msk.f32.vlgmr.msra.gmra.mrb[0].mxu1 %vm281_vm0, %v70_v18 }
  0x16   :  { %5410 = vmatprep.mubr.msk.f32.mxu0 %vm125_vm2, %v67_v19  ;;  %5430 = vmatprep.mubr.msk.f32.mxu1 %vm281_vm0, %v71_v20 }
  0x19   :  { %5411 = vmatmul.mubr.msk.f32.gmra.mrb[6].mxu0 %vm125_vm2, %v68_v21  ;;  %5431 = vmatmul.mubr.msk.f32.gmra.mrb[2].mxu1 %vm281_vm0, %v72_v22 }
  0x1a   :  { %5433 = vmatprep.mubr.msk.f32.mxu1 %vm281_vm0, %v73_v23 }
  0x1d   :  { %5434 = vmatmul.mubr.msk.f32.gmra.mrb[4].mxu1 %vm281_vm0, %v74_v24 }
  0x1e   :  { %5436 = vmatprep.mubr.msk.f32.mxu1 %vm281_vm0, %v75_v25 }
  0x21   :  { %5437 = vmatmul.mubr.msk.f32.gmra.mrb[6].mxu1 %vm281_vm0, %v76_v26 }
  0x22   :  { %23 = vsyncpa [#allocation6], 0  ;;  %v465_v27 = vld [vmem:[%s7967_s9 + $0x8] sm:$0xff]  ;;  %v467_v28 = vld [vmem:[%s7967_s9 + $0x18] sm:$0xff]  ;;  %v6211_v53 = vmov 0.0   ;;  %s6212_s19 = smov 32  }
  0x23   :  { %v464_v29 = vld [vmem:[%s7967_s9] sm:$0xff]  ;;  %v5693_v30 = vpack.c.bf16 %v467_v28, %v465_v27  ;;  %v466_v31 = vld [vmem:[%s7967_s9 + $0x10] sm:$0xff]  ;;  %v469_v32 = vld [vmem:[%s7967_s9 + $0x28] sm:$0xff]  ;;  %581 = vmatprep.mubr.f32.mxu0 %v6211_v53  ;;  %vm455_vm4 = vcmask 261120   ;;  %vm492_vm5 = vcmask 523264   ;;  %vm775_vm6 = vcmask 1042432  }
  0x24   :  { %v471_v33 = vld [vmem:[%s7967_s9 + $0x38] sm:$0xff]  ;;  %v5695_v34 = vpack.c.bf16 %v466_v31, %v464_v29  ;;  %v468_v36 = vld [vmem:[%s7967_s9 + $0x20] sm:$0xff]  ;;  %v470_v37 = vld [vmem:[%s7967_s9 + $0x30] sm:$0xff]  ;;  %s7985_s22 = sld [smem:[#allocation10_spill]]  ;;  %vm654_vm7 = vcmask 23552  }
  0x25   :  { %v5697_v35 = vpack.c.bf16 %v471_v33, %v469_v32  ;;  %v473_v38 = vld [vmem:[%s7967_s9 + $0x48] sm:$0xff]  ;;  %5694 = vmatprep.subr.bf16.mxu0 %v5693_v30  ;;  %v475_v39 = vld [vmem:[%s7967_s9 + $0x58] sm:$0xff]  ;;  %v5699_v40 = vpack.c.bf16 %v470_v37, %v468_v36  ;;  %v472_v42 = vld [vmem:[%s7967_s9 + $0x40] sm:$0xff] }
  0x26   :  { %5696 = vmatpush1.bf16.msra.mxu0 %v5695_v34  ;;  %v5701_v41 = vpack.c.bf16 %v475_v39, %v473_v38  ;;  %v474_v43 = vld [vmem:[%s7967_s9 + $0x50] sm:$0xff]  ;;  %v477_v44 = vld [vmem:[%s7967_s9 + $0x68] sm:$0xff]  ;;  %v479_v45 = vld [vmem:[%s7967_s9 + $0x78] sm:$0xff] }
  0x27   :  { %5698 = vmatprep.subr.bf16.mxu0 %v5697_v35  ;;  %v5703_v46 = vpack.c.bf16 %v474_v43, %v472_v42  ;;  %v5705_v47 = vpack.c.bf16 %v479_v45, %v477_v44  ;;  %v476_v48 = vld [vmem:[%s7967_s9 + $0x60] sm:$0xff]  ;;  %v478_v49 = vld [vmem:[%s7967_s9 + $0x70] sm:$0xff] }
  0x28   :  { %v5707_v50 = vpack.c.bf16 %v478_v49, %v476_v48  ;;  %v6454_v54 = vld [vmem:[%s7969_s11 + $0x4] ss:$8 sps:$4 sm:$0xff]   ;;  %v4973_v57 = vld [vmem:[%s7964_s6] ss:$0 sm:$0xff]  ;;  %v6483_v29 = vld [vmem:[%s7969_s11 + $0x14] ss:$8 sps:$4 sm:$0xff]  }
  0x29   :  { %v4963_v22 = vld [vmem:[%s7962_s4] ss:$0 sm:$0xff]  ;;  %v6492_v33 = vld [vmem:[%s7969_s11 + $0x10] ss:$8 sps:$4 sm:$0xff]   ;;  %v6498_v36 = vld [vmem:[%s7969_s11 + $0x24] ss:$8 sps:$4 sm:$0xff]  }
  0x2a   :  { %5700 = vmatpush1.bf16.msra.mxu0 %v5699_v40  ;;  %v6478_v26 = vld [vmem:[%s7969_s11] ss:$8 sps:$4 sm:$0xff]   ;;  %v6514_v42 = vld [vmem:[%s7969_s11 + $0x34] ss:$8 sps:$4 sm:$0xff]  }
  0x2b   :  { %5702 = vmatprep.subr.bf16.mxu0 %v5701_v41  ;;  %v6508_v41 = vld [vmem:[%s7969_s11 + $0x20] ss:$8 sps:$4 sm:$0xff]  }
  0x2e   :  { %5704 = vmatpush1.bf16.msra.mxu0 %v5703_v46  ;;  %v6522_v46 = vld [vmem:[%s7969_s11 + $0x30] ss:$8 sps:$4 sm:$0xff]  }
  0x2f   :  { %5706 = vmatprep.subr.bf16.mxu0 %v5705_v47 }
  0x32   :  { %5708 = vmatpush1.bf16.msra.mxu0 %v5707_v50 }
  0x33   :  { %1203 = vmatprep.subr.bf16.mxu0 %v6454_v54 }
  0xe0   :  { %v5403_v51 = vpop.f32.mrb[0].mxu0 }
  0xe1   :  { %v220_v52 = vpop.f32.mrb[1].mxu0  ;;  %v226_v25 = vadd.f32 %v5403_v51, %v4963_v22 }
  0xe2   :  { %v221_v23 = vadd.f32 %v4963_v22, %v220_v52 }
  0xe3   :  { %v260_v31 = vmax.f32 %v226_v25, 0.0 }
  0xe4   :  { %v5406_v55 = vpop.f32.mrb[2].mxu0  ;;  %v259_v24 = vmax.f32 %v221_v23, 0.0 }
  0xe5   :  { %v230_v56 = vpop.f32.mrb[3].mxu0  ;;  %v236_v37 = vadd.f32 %v5406_v55, %v4963_v22 }
  0xe6   :  { %v231_v27 = vadd.f32 %v4963_v22, %v230_v56 }
  0xe7   :  { %v262_v43 = vmax.f32 %v236_v37, 0.0 }
  0xe8   :  { %v5429_v58 = vpop.f32.mrb[0].mxu1  ;;  %v6460_v60 = vpop.f32.mrb[4].mxu0  ;;  %v261_v32 = vmax.f32 %v231_v27, 0.0 }
  0xe9   :  { %v376_v59 = vpop.f32.mrb[1].mxu1  ;;  %v240_v62 = vpop.f32.mrb[5].mxu0  ;;  %v382_v63 = vadd.f32 %v5429_v58, %v4973_v57  ;;  %v246_v49 = vadd.f32 %v6460_v60, %v4963_v22 }
  0xea   :  { %v377_v61 = vadd.f32 %v4973_v57, %v376_v59  ;;  %v241_v40 = vadd.f32 %v4963_v22, %v240_v62 }
  0xeb   :  { %v416_v6 = vmax.f32 %v382_v63, 0.0  ;;  %v264_v52 = vmax.f32 %v246_v49, 0.0 }
  0xec   :  { %v415_v0 = vmax.f32 %v377_v61, 0.0  ;;  %v5432_v1 = vpop.f32.mrb[2].mxu1  ;;  %v6463_v5 = vpop.f32.mrb[6].mxu0  ;;  %v263_v45 = vmax.f32 %v241_v40, 0.0 }
  0xed   :  { %v386_v2 = vpop.f32.mrb[3].mxu1  ;;  %v392_v3 = vadd.f32 %v5432_v1, %v4973_v57  ;;  %v250_v13 = vpop.f32.mrb[7].mxu0  ;;  %v256_v59 = vadd.f32 %v6463_v5, %v4963_v22 }
  0xee   :  { %v387_v4 = vadd.f32 %v4973_v57, %v386_v2  ;;  %431 = vrot.lane.b32.xlu0 %v415_v0, %s6212_s19  ;;  %v251_v51 = vadd.f32 %v4963_v22, %v250_v13  ;;  %v6213_v0 = vmov 0  }
  0xef   :  { %v418_v10 = vmax.f32 %v392_v3, 0.0  ;;  %v266_v61 = vmax.f32 %v256_v59, 0.0  ;;  %v480_v3 = vld [vmem:[%s7968_s10] sm:$0x3] }
  0xf0   :  { %v417_v7 = vmax.f32 %v387_v4, 0.0  ;;  %v5435_v8 = vpop.f32.mrb[4].mxu1  ;;  %v265_v56 = vmax.f32 %v251_v51, 0.0 }
  0xf1   :  { %v396_v9 = vpop.f32.mrb[5].mxu1  ;;  %v402_v11 = vadd.f32 %v5435_v8, %v4973_v57 }
  0xf2   :  { %435 = vrot.lane.b32.xlu1 %v417_v7, %s6212_s19  ;;  %433 = vrot.lane.b32.xlu0 %v416_v6, %s6212_s19  ;;  %v397_v12 = vadd.f32 %v4973_v57, %v396_v9 }
  0xf3   :  { %v420_v17 = vmax.f32 %v402_v11, 0.0 }
  0xf4   :  { %v419_v14 = vmax.f32 %v397_v12, 0.0  ;;  %v5438_v15 = vpop.f32.mrb[6].mxu1 }
  0xf5   :  { %v406_v16 = vpop.f32.mrb[7].mxu1  ;;  %v412_v18 = vadd.f32 %v5438_v15, %v4973_v57 }
  0xf6   :  { %437 = vrot.lane.b32.xlu1 %v418_v10, %s6212_s19  ;;  %439 = vrot.lane.b32.xlu0 %v419_v14, %s6212_s19  ;;  %v407_v19 = vadd.f32 %v4973_v57, %v406_v16 }
  0xf7   :  { %v422_v21 = vmax.f32 %v412_v18, 0.0 }
  0xf8   :  { %v421_v20 = vmax.f32 %v407_v19, 0.0 }
  0xfa   :  { %441 = vrot.lane.b32.xlu1 %v420_v17, %s6212_s19  ;;  %443 = vrot.lane.b32.xlu0 %v421_v20, %s6212_s19 }
  0xfe   :  { %445 = vrot.lane.b32.xlu1 %v422_v21, %s6212_s19 }
 0x160   :  { %v432_v28 = vpop.permute.xlu0 %431 }
 0x161   :  { %v456_v30 = vsel %vm455_vm4, %v259_v24, %v432_v28 }
 0x162   :  { %4983 = vmatmul.mubr.msk.f32.vlgmr.msra.gmra.mrb[8].mxu0 %vm492_vm5, %v456_v30 }
 0x163   :  { %1204 = vmatpush1.bf16.msra.mxu0 %v6478_v26  ;;  %587 = vmatprep.mubr.f32.mxu0 %v6211_v53 }
 0x164   :  { %v436_v34 = vpop.permute.xlu1 %435  ;;  %v434_v35 = vpop.permute.xlu0 %433  ;;  %1205 = vmatprep.subr.bf16.mxu0 %v6483_v29 }
 0x165   :  { %v457_v38 = vsel %vm455_vm4, %v260_v31, %v434_v35  ;;  %v458_v39 = vsel %vm455_vm4, %v261_v32, %v436_v34 }
 0x166   :  { %4984 = vmatmul.mubr.msk.f32.gmra.mrb[10].mxu0 %vm492_vm5, %v457_v38 }
 0x167   :  { %593 = vmatprep.mubr.f32.mxu0 %v6211_v53  ;;  %1206 = vmatpush1.bf16.msra.mxu0 %v6492_v33 }
 0x168   :  { %1207 = vmatprep.subr.bf16.mxu0 %v6498_v36  ;;  %v438_v44 = vpop.permute.xlu1 %437  ;;  %v440_v47 = vpop.permute.xlu0 %439 }
 0x169   :  { %v459_v48 = vsel %vm455_vm4, %v262_v43, %v438_v44  ;;  %v460_v50 = vsel %vm455_vm4, %v263_v45, %v440_v47 }
 0x16a   :  { %4985 = vmatmul.mubr.msk.f32.gmra.mrb[12].mxu0 %vm492_vm5, %v458_v39  ;;  %v1124_v39 = vld [vmem:[%s7970_s12] sm:$0x3]  ;;  %s6214_s12 = smov 64  }
 0x16b   :  { %599 = vmatprep.mubr.f32.mxu0 %v6211_v53  ;;  %1208 = vmatpush1.bf16.msra.mxu0 %v6508_v41 }
 0x16c   :  { %1209 = vmatprep.subr.bf16.mxu0 %v6514_v42  ;;  %v442_v55 = vpop.permute.xlu1 %441  ;;  %v444_v57 = vpop.permute.xlu0 %443 }
 0x16d   :  { %v461_v58 = vsel %vm455_vm4, %v264_v52, %v442_v55  ;;  %v462_v60 = vsel %vm455_vm4, %v265_v56, %v444_v57 }
 0x16e   :  { %4986 = vmatmul.mubr.msk.f32.gmra.mrb[14].mxu0 %vm492_vm5, %v459_v48 }
 0x16f   :  { %605 = vmatprep.mubr.f32.mxu0 %v6211_v53  ;;  %1210 = vmatpush1.bf16.msra.mxu0 %v6522_v46 }
 0x170   :  { %1331 = vmatprep.subr.bf16.mxu0 %v6454_v54  ;;  %v446_v62 = vpop.permute.xlu1 %445 }
 0x171   :  { %v463_v63 = vsel %vm455_vm4, %v266_v61, %v446_v62 }
 0x172   :  { %4987 = vmatmul.mubr.msk.f32.gmra.mrb[16].mxu0 %vm492_vm5, %v460_v50 }
 0x173   :  { %611 = vmatprep.mubr.f32.mxu0 %v6211_v53 }
 0x176   :  { %4988 = vmatmul.mubr.msk.f32.gmra.mrb[18].mxu0 %vm492_vm5, %v461_v58 }
 0x177   :  { %617 = vmatprep.mubr.f32.mxu0 %v6211_v53 }
 0x17a   :  { %4989 = vmatmul.mubr.msk.f32.gmra.mrb[20].mxu0 %vm492_vm5, %v462_v60 }
 0x17b   :  { %623 = vmatprep.mubr.f32.mxu0 %v6211_v53  ;;  %v482_v53 = vlaneseq }
 0x17d   :  { %v6554_v1 = vshrl.u32 %v482_v53, 7 }
 0x17e   :  { %4990 = vmatmul.mubr.msk.f32.gmra.mrb[22].mxu0 %vm492_vm5, %v463_v63 }
 0x17f   :  { %1235 = vmatprep.mubr.bf16.mxu0 %v6213_v0  ;;  %v484_v2 = vsub.s32 0, %v6554_v1  ;;  %v488_v4 = vsub.s32 1, %v6554_v1 }
 0x181   :  { %v485_v5 = vrot.slane %v480_v3, %v484_v2  ;;  %v489_v6 = vrot.slane %v480_v3, %v488_v4  ;;  %v6579_v45 = vrot.slane %v1124_v39, %v484_v2  ;;  %v6583_v59 = vrot.slane %v1124_v39, %v488_v4 }
 0x182   :  { %1236 = vmatmul.mubr.bf16.vlgmr.msra.gmra.mrb[24].mxu0 %v6213_v0 }
 0x183   :  { %1332 = vmatpush1.bf16.msra.mxu0 %v6478_v26  ;;  %1363 = vmatprep.mubr.bf16.mxu0 %v6213_v0 }
 0x184   :  { %1333 = vmatprep.subr.bf16.mxu0 %v6483_v29 }
 0x187   :  { %1334 = vmatpush1.bf16.msra.mxu0 %v6492_v33 }
 0x188   :  { %1335 = vmatprep.subr.bf16.mxu0 %v6498_v36 }
 0x18b   :  { %1336 = vmatpush1.bf16.msra.mxu0 %v6508_v41 }
 0x18c   :  { %1337 = vmatprep.subr.bf16.mxu0 %v6514_v42 }
 0x18f   :  { %1338 = vmatpush1.bf16.msra.mxu0 %v6522_v46 }
 0x190   :  { %1460 = vmatprep.subr.bf16.mxu0 %v6454_v54 }
 0x235   :  { %v583_v7 = vpop.f32.mrb[8].mxu0 }
 0x236   :  { %v584_v8 = vadd.f32 %v583_v7, %v485_v5  ;;  %v585_v9 = vpop.f32.mrb[9].mxu0 }
 0x237   :  { %v586_v10 = vadd.f32 %v585_v9, %v489_v6 }
 0x239   :  { %631 = vst.msk [vmem:[#allocation2 + $0x8] sm:$0xff] %vm492_vm5, %v586_v10  ;;  %v589_v11 = vpop.f32.mrb[10].mxu0 }
 0x23a   :  { %v6562_v12 = vadd.f32 %v589_v11, %v485_v5  ;;  %v591_v13 = vpop.f32.mrb[11].mxu0 }
 0x23b   :  { %v592_v14 = vadd.f32 %v591_v13, %v489_v6 }
 0x23d   :  { %633 = vst.msk [vmem:[#allocation2 + $0x18] sm:$0xff] %vm492_vm5, %v592_v14  ;;  %v595_v15 = vpop.f32.mrb[12].mxu0 }
 0x23e   :  { %v6565_v16 = vadd.f32 %v595_v15, %v485_v5  ;;  %v597_v17 = vpop.f32.mrb[13].mxu0 }
 0x23f   :  { %v598_v18 = vadd.f32 %v597_v17, %v489_v6 }
 0x240   :  { %v1151_v63 = vld [vmem:[#allocation2 + $0x8] sm:$0xff] }
 0x241   :  { %635 = vst.msk [vmem:[#allocation2 + $0x28] sm:$0xff] %vm492_vm5, %v598_v18  ;;  %v601_v19 = vpop.f32.mrb[14].mxu0 }
 0x242   :  { %v6568_v20 = vadd.f32 %v601_v19, %v485_v5  ;;  %v603_v21 = vpop.f32.mrb[15].mxu0 }
 0x243   :  { %v604_v22 = vadd.f32 %v603_v21, %v489_v6 }
 0x245   :  { %637 = vst.msk [vmem:[#allocation2 + $0x38] sm:$0xff] %vm492_vm5, %v604_v22  ;;  %v607_v23 = vpop.f32.mrb[16].mxu0 }
 0x246   :  { %v6571_v24 = vadd.f32 %v607_v23, %v485_v5  ;;  %v609_v25 = vpop.f32.mrb[17].mxu0 }
 0x247   :  { %v610_v27 = vadd.f32 %v609_v25, %v489_v6  ;;  %v1275_v25 = vld [vmem:[#allocation2 + $0x18] sm:$0xff] }
 0x249   :  { %639 = vst.msk [vmem:[#allocation2 + $0x48] sm:$0xff] %vm492_vm5, %v610_v27  ;;  %v613_v28 = vpop.f32.mrb[18].mxu0 }
 0x24a   :  { %v614_v30 = vadd.f32 %v613_v28, %v485_v5  ;;  %v615_v31 = vpop.f32.mrb[19].mxu0 }
 0x24b   :  { %v616_v32 = vadd.f32 %v615_v31, %v489_v6 }
 0x24c   :  { %640 = vst [vmem:[#allocation2 + $0x50] sm:$0xff] %v614_v30 }
 0x24d   :  { %641 = vst.msk [vmem:[#allocation2 + $0x58] sm:$0xff] %vm492_vm5, %v616_v32  ;;  %v619_v34 = vpop.f32.mrb[20].mxu0 }
 0x24e   :  { %v620_v35 = vadd.f32 %v619_v34, %v485_v5  ;;  %v621_v37 = vpop.f32.mrb[21].mxu0 }
 0x24f   :  { %v622_v38 = vadd.f32 %v621_v37, %v489_v6 }
 0x250   :  { %642 = vst [vmem:[#allocation2 + $0x60] sm:$0xff] %v620_v35 }
 0x251   :  { %643 = vst.msk [vmem:[#allocation2 + $0x68] sm:$0xff] %vm492_vm5, %v622_v38  ;;  %v625_v40 = vpop.f32.mrb[22].mxu0 }
 0x252   :  { %v626_v43 = vadd.f32 %v625_v40, %v485_v5  ;;  %v627_v44 = vpop.f32.mrb[23].mxu0 }
 0x253   :  { %v628_v47 = vadd.f32 %v627_v44, %v489_v6 }
 0x254   :  { %644 = vst [vmem:[#allocation2 + $0x70] sm:$0xff] %v626_v43 }
 0x255   :  { %645 = vst.msk [vmem:[#allocation2 + $0x78] sm:$0xff] %vm492_vm5, %v628_v47  ;;  %v1237_v48 = vpop.f32.mrb[24].mxu0 }
 0x256   :  { %v1238_v49 = vadd.f32 %v1237_v48, %v6579_v45  ;;  %v1239_v50 = vpop.f32.mrb[25].mxu0 }
 0x257   :  { %v1241_v51 = vpop.f32.mrb[26].mxu0  ;;  %v1240_v60 = vadd.f32 %v1239_v50, %v6583_v59 }
 0x258   :  { %v1244_v52 = vadd.f32 %v1238_v49, %v584_v8  ;;  %v1242_v55 = vpop.f32.mrb[27].mxu0 }
 0x25a   :  { %v5043_v56 = vmul.f32 -1.442695, %v1244_v52 }
 0x25c   :  { %5815 = vpow2.f32 %v5043_v56  ;;  %v1404_v56 = vld [vmem:[#allocation2 + $0x28] sm:$0xff] }
 0x266   :  { %v5816_v57 = vpop.eup %5815 }
 0x267   :  { %v1248_v58 = vadd.f32 1.0, %v5816_v57 }
 0x269   :  { %5817 = vrcp.f32 %v1248_v58 }
 0x273   :  { %v5818_v61 = vpop.eup %5817 }
 0x274   :  { %v1251_v62 = vmul.f32 %v5818_v61, %v1240_v60  ;;  %v1254_v2 = vsub.f32 1.0, %v5818_v61  ;;  %v1260_v5 = vmul.f32 0.0, %v5818_v61 }
 0x276   :  { %v1252_v53 = vadd.f32 %v1251_v62, %v1151_v63 }
 0x278   :  { %5819 = vtanh.f32 %v1252_v53 }
 0x282   :  { %v5820_v1 = vpop.eup %5819 }
 0x283   :  { %1256 = vrot.lane.b32.xlu0 %v5820_v1, %s6214_s12 }
 0x2f5   :  { %v1257_v3 = vpop.permute.xlu0 %1256 }
 0x2f6   :  { %v1259_v6 = vmul.f32 %v1257_v3, %v1254_v2 }
 0x2f8   :  { %v6587_v7 = vadd.f32 %v1260_v5, %v1259_v6 }
 0x2fa   :  { %v1276_v4 = vpack.c.bf16 %v6587_v7, %v6587_v7 }
 0x2fc   :  { %1286 = vrot.lane.b32.xlu1 %v1276_v4, %s6214_s12 }
 0x36e   :  { %v1287_v8 = vpop.permute.xlu1 %1286 }
 0x36f   :  { %5052 = vmatmul.mubr.msk.bf16.vlgmr.msra.gmra.mrb[28].mxu0 %vm492_vm5, %v1287_v8 }
 0x370   :  { %1461 = vmatpush1.bf16.msra.mxu0 %v6478_v26  ;;  %1492 = vmatprep.mubr.bf16.mxu0 %v6213_v0 }
 0x371   :  { %1462 = vmatprep.subr.bf16.mxu0 %v6483_v29 }
 0x374   :  { %1463 = vmatpush1.bf16.msra.mxu0 %v6492_v33 }
 0x375   :  { %1464 = vmatprep.subr.bf16.mxu0 %v6498_v36 }
 0x378   :  { %1465 = vmatpush1.bf16.msra.mxu0 %v6508_v41 }
 0x379   :  { %1466 = vmatprep.subr.bf16.mxu0 %v6514_v42 }
 0x37c   :  { %1467 = vmatpush1.bf16.msra.mxu0 %v6522_v46 }
 0x37d   :  { %1589 = vmatprep.subr.bf16.mxu0 %v6454_v54 }
 0x442   :  { %v1365_v9 = vpop.f32.mrb[28].mxu0 }
 0x443   :  { %v1366_v10 = vadd.f32 %v1365_v9, %v6579_v45  ;;  %v1367_v11 = vpop.f32.mrb[29].mxu0 }
 0x444   :  { %v1369_v13 = vpop.f32.mrb[30].mxu0  ;;  %v1368_v21 = vadd.f32 %v1367_v11, %v6583_v59 }
 0x445   :  { %v1372_v14 = vadd.f32 %v1366_v10, %v6562_v12  ;;  %v1370_v15 = vpop.f32.mrb[31].mxu0 }
 0x447   :  { %v5053_v17 = vmul.f32 -1.442695, %v1372_v14 }
 0x449   :  { %5821 = vpow2.f32 %v5053_v17  ;;  %v1533_v17 = vld [vmem:[#allocation2 + $0x38] sm:$0xff] }
 0x453   :  { %v5822_v18 = vpop.eup %5821 }
 0x454   :  { %v1376_v19 = vadd.f32 1.0, %v5822_v18 }
 0x456   :  { %5823 = vrcp.f32 %v1376_v19  ;;  %v646_v19 = vld [vmem:[%s7965_s7] sm:$0x7] }
 0x457   :  { %5439 = vmatprep.subr.msk.mxu1 %vm775_vm6, %v646_v19 }
 0x458   :  { %5440 = vmatpush3.msk.msra.mxu1 %vm775_vm6, %v646_v19 }
 0x459   :  { %1718 = vmatprep.subr.bf16.mxu1 %v6454_v54  ;;  %v82_v54 = vld [vmem:[%s7985_s22 + $0x28] sm:$0xff] }
 0x460   :  { %v5824_v22 = vpop.eup %5823 }
 0x461   :  { %v1379_v23 = vmul.f32 %v5824_v22, %v1368_v21  ;;  %v1382_v30 = vsub.f32 1.0, %v5824_v22  ;;  %v1388_v12 = vmul.f32 %v5824_v22, %v6587_v7  ;;  %v78_v21 = vld [vmem:[%s7985_s22 + $0x8] sm:$0xff]  ;;  %v79_v22 = vld [vmem:[%s7985_s22 + $0x10] sm:$0xff] }
 0x463   :  { %v1380_v27 = vadd.f32 %v1379_v23, %v1275_v25  ;;  %v80_v23 = vld [vmem:[%s7985_s22 + $0x18] sm:$0xff]  ;;  %v81_v25 = vld [vmem:[%s7985_s22 + $0x20] sm:$0xff] }
 0x465   :  { %5825 = vtanh.f32 %v1380_v27 }
 0x46f   :  { %v5826_v28 = vpop.eup %5825 }
 0x470   :  { %1384 = vrot.lane.b32.xlu0 %v5826_v28, %s6214_s12  ;;  %v89_v28 = vld [vmem:[%s7985_s22 + $0x60] sm:$0xff] }
 0x4e2   :  { %v1385_v31 = vpop.permute.xlu0 %1384 }
 0x4e3   :  { %v1387_v32 = vmul.f32 %v1385_v31, %v1382_v30  ;;  %v91_v30 = vld [vmem:[%s7985_s22 + $0x70] sm:$0xff]  ;;  %v92_v31 = vld [vmem:[%s7985_s22 + $0x78] sm:$0xff] }
 0x4e5   :  { %v6607_v34 = vadd.f32 %v1388_v12, %v1387_v32  ;;  %v93_v12 = vld [vmem:[%s7985_s22 + $0x80] sm:$0xff]  ;;  %v94_v32 = vld [vmem:[%s7985_s22 + $0x88] sm:$0xff] }
 0x4e7   :  { %v1405_v35 = vpack.c.bf16 %v6607_v34, %v6607_v34 }
 0x4e9   :  { %1415 = vrot.lane.b32.xlu1 %v1405_v35, %s6214_s12  ;;  %v95_v35 = vld [vmem:[%s7985_s22 + $0x90] sm:$0xff] }
 0x55b   :  { %v1416_v37 = vpop.permute.xlu1 %1415 }
 0x55c   :  { %5062 = vmatmul.mubr.msk.bf16.vlgmr.msra.gmra.mrb[32].mxu0 %vm492_vm5, %v1416_v37  ;;  %v96_v37 = vld [vmem:[%s7985_s22 + $0x98] sm:$0xff] }
 0x55d   :  { %1590 = vmatpush1.bf16.msra.mxu0 %v6478_v26  ;;  %1621 = vmatprep.mubr.bf16.mxu0 %v6213_v0 }
 0x55e   :  { %1591 = vmatprep.subr.bf16.mxu0 %v6483_v29 }
 0x561   :  { %1592 = vmatpush1.bf16.msra.mxu0 %v6492_v33 }
 0x562   :  { %1593 = vmatprep.subr.bf16.mxu0 %v6498_v36 }
 0x565   :  { %1594 = vmatpush1.bf16.msra.mxu0 %v6508_v41 }
 0x566   :  { %1595 = vmatprep.subr.bf16.mxu0 %v6514_v42 }
 0x569   :  { %1596 = vmatpush1.bf16.msra.mxu0 %v6522_v46 }
 0x62f   :  { %v1494_v38 = vpop.f32.mrb[32].mxu0 }
 0x630   :  { %v1495_v39 = vadd.f32 %v1494_v38, %v6579_v45  ;;  %v1496_v40 = vpop.f32.mrb[33].mxu0  ;;  %v97_v38 = vld [vmem:[%s7985_s22 + $0xa0] sm:$0xff] }
 0x631   :  { %v1498_v43 = vpop.f32.mrb[34].mxu0  ;;  %v1497_v51 = vadd.f32 %v1496_v40, %v6583_v59  ;;  %v99_v40 = vld [vmem:[%s7985_s22 + $0xb0] sm:$0xff] }
 0x632   :  { %v1501_v44 = vadd.f32 %v1495_v39, %v6565_v16  ;;  %v1499_v47 = vpop.f32.mrb[35].mxu0  ;;  %v98_v39 = vld [vmem:[%s7985_s22 + $0xa8] sm:$0xff]  ;;  %v100_v43 = vld [vmem:[%s7985_s22 + $0xb8] sm:$0xff] }
 0x633   :  { %v102_v47 = vld [vmem:[%s7985_s22 + $0xc8] sm:$0xff] }
 0x634   :  { %v5063_v48 = vmul.f32 -1.442695, %v1501_v44  ;;  %v101_v44 = vld [vmem:[%s7985_s22 + $0xc0] sm:$0xff] }
 0x636   :  { %5827 = vpow2.f32 %v5063_v48  ;;  %v103_v48 = vld [vmem:[%s7985_s22 + $0xd0] sm:$0xff] }
 0x640   :  { %v5828_v49 = vpop.eup %5827 }
 0x641   :  { %v1505_v50 = vadd.f32 1.0, %v5828_v49  ;;  %v104_v49 = vld [vmem:[%s7985_s22 + $0xd8] sm:$0xff] }
 0x643   :  { %5829 = vrcp.f32 %v1505_v50  ;;  %v105_v50 = vld [vmem:[%s7985_s22 + $0xe0] sm:$0xff] }
 0x64d   :  { %v5830_v52 = vpop.eup %5829 }
 0x64e   :  { %v1508_v55 = vmul.f32 %v5830_v52, %v1497_v51  ;;  %v1511_v60 = vsub.f32 1.0, %v5830_v52  ;;  %v1517_v16 = vmul.f32 %v5830_v52, %v6607_v34  ;;  %v106_v51 = vld [vmem:[%s7985_s22 + $0xe8] sm:$0xff]  ;;  %v107_v52 = vld [vmem:[%s7985_s22 + $0xf0] sm:$0xff] }
 0x650   :  { %v1509_v57 = vadd.f32 %v1508_v55, %v1404_v56  ;;  %v108_v55 = vld [vmem:[%s7985_s22 + $0xf8] sm:$0xff]  ;;  %v109_v56 = vld [vmem:[%s7985_s22 + $0x100] sm:$0xff] }
 0x652   :  { %5831 = vtanh.f32 %v1509_v57  ;;  %v110_v57 = vld [vmem:[%s7985_s22 + $0x108] sm:$0xff] }
 0x65c   :  { %v5832_v58 = vpop.eup %5831 }
 0x65d   :  { %1513 = vrot.lane.b32.xlu0 %v5832_v58, %s6214_s12  ;;  %v111_v58 = vld [vmem:[%s7985_s22 + $0x110] sm:$0xff] }
 0x6cf   :  { %v1514_v61 = vpop.permute.xlu0 %1513 }
 0x6d0   :  { %v1516_v62 = vmul.f32 %v1514_v61, %v1511_v60  ;;  %v112_v60 = vld [vmem:[%s7985_s22 + $0x118] sm:$0xff]  ;;  %v113_v61 = vld [vmem:[%s7985_s22 + $0x120] sm:$0xff] }
 0x6d2   :  { %v6626_v63 = vadd.f32 %v1517_v16, %v1516_v62  ;;  %v114_v16 = vld [vmem:[%s7985_s22 + $0x128] sm:$0xff]  ;;  %v115_v62 = vld [vmem:[%s7985_s22 + $0x130] sm:$0xff] }
 0x6d4   :  { %v1534_v53 = vpack.c.bf16 %v6626_v63, %v6626_v63 }
 0x6d6   :  { %1544 = vrot.lane.b32.xlu1 %v1534_v53, %s6214_s12  ;;  %v116_v53 = vld [vmem:[%s7985_s22 + $0x138] sm:$0xff] }
 0x748   :  { %v1545_v1 = vpop.permute.xlu1 %1544 }
 0x749   :  { %5072 = vmatmul.mubr.msk.bf16.vlgmr.msra.gmra.mrb[36].mxu0 %vm492_vm5, %v1545_v1 }
 0x74a   :  { %1879 = vmatprep.mubr.bf16.mxu0 %v6213_v0 }
 0x81c   :  { %v1623_v2 = vpop.f32.mrb[36].mxu0 }
 0x81d   :  { %v1624_v3 = vadd.f32 %v1623_v2, %v6579_v45  ;;  %v1625_v5 = vpop.f32.mrb[37].mxu0 }
 0x81e   :  { %v1627_v6 = vpop.f32.mrb[38].mxu0  ;;  %v1626_v13 = vadd.f32 %v1625_v5, %v6583_v59 }
 0x81f   :  { %v1630_v4 = vadd.f32 %v1624_v3, %v6568_v20  ;;  %v1628_v8 = vpop.f32.mrb[39].mxu0  ;;  %v77_v20 = vld [vmem:[%s7985_s22] sm:$0xff] }
 0x820   :  { %5441 = vmatprep.mubr.msk.f32.mxu1 %vm654_vm7, %v77_v20  ;;  %v6823_v8 = vld [vmem:[%s7966_s8] ss:$0 sm:$0xff] }
 0x821   :  { %v5073_v9 = vmul.f32 -1.442695, %v1630_v4  ;;  %5442 = vmatmul.mubr.msk.f32.vlgmr.msra.gmra.mrb[8].mxu1 %vm654_vm7, %v78_v21 }
 0x822   :  { %1719 = vmatpush1.bf16.msra.mxu1 %v6478_v26  ;;  %5444 = vmatprep.mubr.msk.f32.mxu1 %vm654_vm7, %v79_v22  ;;  %v83_v26 = vld [vmem:[%s7985_s22 + $0x30] sm:$0xff] }
 0x823   :  { %5833 = vpow2.f32 %v5073_v9  ;;  %1720 = vmatprep.subr.bf16.mxu1 %v6483_v29  ;;  %v84_v29 = vld [vmem:[%s7985_s22 + $0x38] sm:$0xff] }
 0x825   :  { %5445 = vmatmul.mubr.msk.f32.gmra.mrb[10].mxu1 %vm654_vm7, %v80_v23 }
 0x826   :  { %5447 = vmatprep.mubr.msk.f32.mxu1 %vm654_vm7, %v81_v25  ;;  %1721 = vmatpush1.bf16.msra.mxu1 %v6492_v33  ;;  %v85_v33 = vld [vmem:[%s7985_s22 + $0x40] sm:$0xff] }
 0x827   :  { %1722 = vmatprep.subr.bf16.mxu1 %v6498_v36  ;;  %v86_v36 = vld [vmem:[%s7985_s22 + $0x48] sm:$0xff] }
 0x829   :  { %5448 = vmatmul.mubr.msk.f32.gmra.mrb[12].mxu1 %vm654_vm7, %v82_v54 }
 0x82a   :  { %5450 = vmatprep.mubr.msk.f32.mxu1 %vm654_vm7, %v83_v26  ;;  %1723 = vmatpush1.bf16.msra.mxu1 %v6508_v41  ;;  %v87_v41 = vld [vmem:[%s7985_s22 + $0x50] sm:$0xff] }
 0x82b   :  { %1724 = vmatprep.subr.bf16.mxu1 %v6514_v42  ;;  %v88_v42 = vld [vmem:[%s7985_s22 + $0x58] sm:$0xff] }
 0x82d   :  { %v5834_v10 = vpop.eup %5833  ;;  %5451 = vmatmul.mubr.msk.f32.gmra.mrb[14].mxu1 %vm654_vm7, %v84_v29 }
 0x82e   :  { %v1634_v11 = vadd.f32 1.0, %v5834_v10  ;;  %5453 = vmatprep.mubr.msk.f32.mxu1 %vm654_vm7, %v85_v33  ;;  %1725 = vmatpush1.bf16.msra.mxu1 %v6522_v46  ;;  %v90_v46 = vld [vmem:[%s7985_s22 + $0x68] sm:$0xff] }
 0x830   :  { %5835 = vrcp.f32 %v1634_v11 }
 0x831   :  { %5454 = vmatmul.mubr.msk.f32.gmra.mrb[16].mxu1 %vm654_vm7, %v86_v36 }
 0x832   :  { %5456 = vmatprep.mubr.msk.f32.mxu1 %vm654_vm7, %v87_v41 }
 0x835   :  { %5457 = vmatmul.mubr.msk.f32.gmra.mrb[18].mxu1 %vm654_vm7, %v88_v42 }
 0x836   :  { %5459 = vmatprep.mubr.msk.f32.mxu1 %vm654_vm7, %v89_v28 }
 0x839   :  { %5460 = vmatmul.mubr.msk.f32.gmra.mrb[20].mxu1 %vm654_vm7, %v90_v46 }
 0x83a   :  { %v6636_v14 = vpop.eup %5835  ;;  %5462 = vmatprep.mubr.msk.f32.mxu1 %vm654_vm7, %v91_v30 }
 0x83b   :  { %v1637_v15 = vmul.f32 %v6636_v14, %v1626_v13  ;;  %v1640_v1 = vsub.f32 1.0, %v6636_v14  ;;  %v1646_v3 = vmul.f32 %v6636_v14, %v6626_v63 }
 0x83d   :  { %v1638_v18 = vadd.f32 %v1637_v15, %v1533_v17  ;;  %5463 = vmatmul.mubr.msk.f32.gmra.mrb[22].mxu1 %vm654_vm7, %v92_v31 }
 0x83e   :  { %5465 = vmatprep.mubr.msk.f32.mxu1 %vm654_vm7, %v93_v12 }
 0x83f   :  { %5837 = vtanh.f32 %v1638_v18 }
 0x841   :  { %5466 = vmatmul.mubr.msk.f32.gmra.mrb[24].mxu1 %vm654_vm7, %v94_v32 }
 0x842   :  { %5468 = vmatprep.mubr.msk.f32.mxu1 %vm654_vm7, %v95_v35 }
 0x845   :  { %5469 = vmatmul.mubr.msk.f32.gmra.mrb[26].mxu1 %vm654_vm7, %v96_v37 }
 0x846   :  { %5471 = vmatprep.mubr.msk.f32.mxu1 %vm654_vm7, %v97_v38 }
 0x849   :  { %v5838_v27 = vpop.eup %5837  ;;  %5472 = vmatmul.mubr.msk.f32.gmra.mrb[28].mxu1 %vm654_vm7, %v98_v39 }
 0x84a   :  { %1642 = vrot.lane.b32.xlu0 %v5838_v27, %s6214_s12  ;;  %5474 = vmatprep.mubr.msk.f32.mxu1 %vm654_vm7, %v99_v40 }
 0x84d   :  { %5475 = vmatmul.mubr.msk.f32.gmra.mrb[30].mxu1 %vm654_vm7, %v100_v43 }
 0x84e   :  { %5477 = vmatprep.mubr.msk.f32.mxu1 %vm654_vm7, %v101_v44 }
 0x851   :  { %5478 = vmatmul.mubr.msk.f32.gmra.mrb[32].mxu1 %vm654_vm7, %v102_v47 }
 0x852   :  { %5480 = vmatprep.mubr.msk.f32.mxu1 %vm654_vm7, %v103_v48 }
 0x855   :  { %5481 = vmatmul.mubr.msk.f32.gmra.mrb[34].mxu1 %vm654_vm7, %v104_v49 }
 0x856   :  { %5483 = vmatprep.mubr.msk.f32.mxu1 %vm654_vm7, %v105_v50 }
 0x859   :  { %5484 = vmatmul.mubr.msk.f32.gmra.mrb[36].mxu1 %vm654_vm7, %v106_v51 }
 0x85a   :  { %5486 = vmatprep.mubr.msk.f32.mxu1 %vm654_vm7, %v107_v52 }
 0x85d   :  { %5487 = vmatmul.mubr.msk.f32.gmra.mrb[38].mxu1 %vm654_vm7, %v108_v55 }
 0x85e   :  { %5489 = vmatprep.mubr.msk.f32.mxu1 %vm654_vm7, %v109_v56 }
 0x861   :  { %5490 = vmatmul.mubr.msk.f32.gmra.mrb[40].mxu1 %vm654_vm7, %v110_v57 }
 0x862   :  { %5492 = vmatprep.mubr.msk.f32.mxu1 %vm654_vm7, %v111_v58 }
 0x865   :  { %5493 = vmatmul.mubr.msk.f32.gmra.mrb[42].mxu1 %vm654_vm7, %v112_v60 }
 0x866   :  { %5495 = vmatprep.mubr.msk.f32.mxu1 %vm654_vm7, %v113_v61 }
 0x869   :  { %5496 = vmatmul.mubr.msk.f32.gmra.mrb[44].mxu1 %vm654_vm7, %v114_v16 }
 0x86a   :  { %5498 = vmatprep.mubr.msk.f32.mxu1 %vm654_vm7, %v115_v62 }
 0x86d   :  { %5499 = vmatmul.mubr.msk.f32.gmra.mrb[46].mxu1 %vm654_vm7, %v116_v53 }
 0x86e   :  { %1750 = vmatprep.mubr.bf16.mxu1 %v6213_v0 }
 0x8bc   :  { %v1643_v2 = vpop.permute.xlu0 %1642 }
 0x8bd   :  { %v1645_v5 = vmul.f32 %v1643_v2, %v1640_v1 }
 0x8bf   :  { %v6815_v6 = vadd.f32 %v1646_v3, %v1645_v5 }
 0x8c1   :  { %v1663_v4 = vpack.c.bf16 %v6815_v6, %v6815_v6 }
 0x8c3   :  { %1673 = vrot.lane.b32.xlu1 %v1663_v4, %s6214_s12 }
 0x8f4   :  { %v5443_v9 = vpop.f32.mrb[8].mxu1 }
 0x8f5   :  { %v851_v10 = vadd.f32 %v5443_v9, %v6823_v8  ;;  %v845_v11 = vpop.f32.mrb[9].mxu1 }
 0x8f6   :  { %v846_v13 = vadd.f32 %v6823_v8, %v845_v11 }
 0x8f7   :  { %v1045_v14 = vmax.f32 %v851_v10, 0.0 }
 0x8f8   :  { %v1044_v15 = vmax.f32 %v846_v13, 0.0  ;;  %v5446_v17 = vpop.f32.mrb[10].mxu1 }
 0x8f9   :  { %1085 = vst.msk [vmem:[#allocation3 + $0x8] sm:$0xff] %vm455_vm4, %v1045_v14  ;;  %v861_v18 = vadd.f32 %v5446_v17, %v6823_v8  ;;  %v855_v19 = vpop.f32.mrb[11].mxu1 }
 0x8fa   :  { %1084 = vst.msk [vmem:[#allocation3] sm:$0xff] %vm455_vm4, %v1044_v15  ;;  %v856_v20 = vadd.f32 %v6823_v8, %v855_v19 }
 0x8fb   :  { %v1047_v21 = vmax.f32 %v861_v18, 0.0 }
 0x8fc   :  { %v1046_v22 = vmax.f32 %v856_v20, 0.0  ;;  %v5449_v23 = vpop.f32.mrb[12].mxu1 }
 0x8fd   :  { %1087 = vst.msk [vmem:[#allocation3 + $0x18] sm:$0xff] %vm455_vm4, %v1047_v21  ;;  %v871_v25 = vadd.f32 %v5449_v23, %v6823_v8  ;;  %v865_v27 = vpop.f32.mrb[13].mxu1 }
 0x8fe   :  { %1086 = vst.msk [vmem:[#allocation3 + $0x10] sm:$0xff] %vm455_vm4, %v1046_v22  ;;  %v866_v54 = vadd.f32 %v6823_v8, %v865_v27 }
 0x8ff   :  { %v1049_v26 = vmax.f32 %v871_v25, 0.0 }
 0x900   :  { %v1048_v29 = vmax.f32 %v866_v54, 0.0  ;;  %v5452_v33 = vpop.f32.mrb[14].mxu1 }
 0x901   :  { %1089 = vst.msk [vmem:[#allocation3 + $0x28] sm:$0xff] %vm455_vm4, %v1049_v26  ;;  %v881_v36 = vadd.f32 %v5452_v33, %v6823_v8  ;;  %v875_v41 = vpop.f32.mrb[15].mxu1 }
 0x902   :  { %1088 = vst.msk [vmem:[#allocation3 + $0x20] sm:$0xff] %vm455_vm4, %v1048_v29  ;;  %v876_v42 = vadd.f32 %v6823_v8, %v875_v41 }
 0x903   :  { %v1051_v28 = vmax.f32 %v881_v36, 0.0 }
 0x904   :  { %v1050_v46 = vmax.f32 %v876_v42, 0.0  ;;  %v5455_v30 = vpop.f32.mrb[16].mxu1 }
 0x905   :  { %1091 = vst.msk [vmem:[#allocation3 + $0x38] sm:$0xff] %vm455_vm4, %v1051_v28  ;;  %v891_v31 = vadd.f32 %v5455_v30, %v6823_v8  ;;  %v885_v12 = vpop.f32.mrb[17].mxu1 }
 0x906   :  { %1090 = vst.msk [vmem:[#allocation3 + $0x30] sm:$0xff] %vm455_vm4, %v1050_v46  ;;  %v886_v32 = vadd.f32 %v6823_v8, %v885_v12 }
 0x907   :  { %v1053_v35 = vmax.f32 %v891_v31, 0.0 }
 0x908   :  { %v1052_v37 = vmax.f32 %v886_v32, 0.0  ;;  %v5458_v38 = vpop.f32.mrb[18].mxu1 }
 0x909   :  { %1093 = vst.msk [vmem:[#allocation3 + $0x48] sm:$0xff] %vm455_vm4, %v1053_v35  ;;  %v901_v39 = vadd.f32 %v5458_v38, %v6823_v8  ;;  %v895_v40 = vpop.f32.mrb[19].mxu1 }
 0x90a   :  { %1092 = vst.msk [vmem:[#allocation3 + $0x40] sm:$0xff] %vm455_vm4, %v1052_v37  ;;  %v896_v43 = vadd.f32 %v6823_v8, %v895_v40 }
 0x90b   :  { %v1055_v44 = vmax.f32 %v901_v39, 0.0 }
 0x90c   :  { %v1054_v47 = vmax.f32 %v896_v43, 0.0  ;;  %v5461_v48 = vpop.f32.mrb[20].mxu1 }
 0x90d   :  { %1095 = vst.msk [vmem:[#allocation3 + $0x58] sm:$0xff] %vm455_vm4, %v1055_v44  ;;  %v911_v49 = vadd.f32 %v5461_v48, %v6823_v8  ;;  %v905_v50 = vpop.f32.mrb[21].mxu1 }
 0x90e   :  { %1094 = vst.msk [vmem:[#allocation3 + $0x50] sm:$0xff] %vm455_vm4, %v1054_v47  ;;  %v906_v51 = vadd.f32 %v6823_v8, %v905_v50 }
 0x90f   :  { %v1057_v52 = vmax.f32 %v911_v49, 0.0 }
 0x910   :  { %v1056_v56 = vmax.f32 %v906_v51, 0.0  ;;  %v5464_v57 = vpop.f32.mrb[22].mxu1 }
 0x911   :  { %1097 = vst.msk [vmem:[#allocation3 + $0x68] sm:$0xff] %vm455_vm4, %v1057_v52  ;;  %v921_v58 = vadd.f32 %v5464_v57, %v6823_v8  ;;  %v915_v60 = vpop.f32.mrb[23].mxu1 }
 0x912   :  { %1096 = vst.msk [vmem:[#allocation3 + $0x60] sm:$0xff] %vm455_vm4, %v1056_v56  ;;  %v916_v61 = vadd.f32 %v6823_v8, %v915_v60 }
 0x913   :  { %v1059_v16 = vmax.f32 %v921_v58, 0.0 }
 0x914   :  { %v1058_v62 = vmax.f32 %v916_v61, 0.0  ;;  %v5467_v53 = vpop.f32.mrb[24].mxu1 }
 0x915   :  { %1099 = vst.msk [vmem:[#allocation3 + $0x78] sm:$0xff] %vm455_vm4, %v1059_v16  ;;  %v931_v1 = vadd.f32 %v5467_v53, %v6823_v8  ;;  %v925_v2 = vpop.f32.mrb[25].mxu1 }
 0x916   :  { %1098 = vst.msk [vmem:[#allocation3 + $0x70] sm:$0xff] %vm455_vm4, %v1058_v62  ;;  %v926_v3 = vadd.f32 %v6823_v8, %v925_v2 }
 0x917   :  { %v1061_v5 = vmax.f32 %v931_v1, 0.0 }
 0x918   :  { %v1060_v4 = vmax.f32 %v926_v3, 0.0  ;;  %v5470_v9 = vpop.f32.mrb[26].mxu1 }
 0x919   :  { %1101 = vst.msk [vmem:[#allocation3 + $0x88] sm:$0xff] %vm455_vm4, %v1061_v5  ;;  %v941_v10 = vadd.f32 %v5470_v9, %v6823_v8  ;;  %v935_v11 = vpop.f32.mrb[27].mxu1 }
 0x91a   :  { %1100 = vst.msk [vmem:[#allocation3 + $0x80] sm:$0xff] %vm455_vm4, %v1060_v4  ;;  %v936_v13 = vadd.f32 %v6823_v8, %v935_v11 }
 0x91b   :  { %v1063_v14 = vmax.f32 %v941_v10, 0.0 }
 0x91c   :  { %v1062_v15 = vmax.f32 %v936_v13, 0.0  ;;  %v5473_v17 = vpop.f32.mrb[28].mxu1 }
 0x91d   :  { %1103 = vst.msk [vmem:[#allocation3 + $0x98] sm:$0xff] %vm455_vm4, %v1063_v14  ;;  %v951_v18 = vadd.f32 %v5473_v17, %v6823_v8  ;;  %v945_v19 = vpop.f32.mrb[29].mxu1 }
 0x91e   :  { %1102 = vst.msk [vmem:[#allocation3 + $0x90] sm:$0xff] %vm455_vm4, %v1062_v15  ;;  %v946_v20 = vadd.f32 %v6823_v8, %v945_v19 }
 0x91f   :  { %v1065_v21 = vmax.f32 %v951_v18, 0.0 }
 0x920   :  { %v1064_v22 = vmax.f32 %v946_v20, 0.0  ;;  %v5476_v23 = vpop.f32.mrb[30].mxu1 }
 0x921   :  { %1105 = vst.msk [vmem:[#allocation3 + $0xa8] sm:$0xff] %vm455_vm4, %v1065_v21  ;;  %v961_v25 = vadd.f32 %v5476_v23, %v6823_v8  ;;  %v955_v27 = vpop.f32.mrb[31].mxu1 }
 0x922   :  { %1104 = vst.msk [vmem:[#allocation3 + $0xa0] sm:$0xff] %vm455_vm4, %v1064_v22  ;;  %v956_v54 = vadd.f32 %v6823_v8, %v955_v27 }
 0x923   :  { %v1067_v26 = vmax.f32 %v961_v25, 0.0 }
 0x924   :  { %v1066_v29 = vmax.f32 %v956_v54, 0.0  ;;  %v5479_v33 = vpop.f32.mrb[32].mxu1 }
 0x925   :  { %1107 = vst.msk [vmem:[#allocation3 + $0xb8] sm:$0xff] %vm455_vm4, %v1067_v26  ;;  %v971_v36 = vadd.f32 %v5479_v33, %v6823_v8  ;;  %v965_v41 = vpop.f32.mrb[33].mxu1 }
 0x926   :  { %1106 = vst.msk [vmem:[#allocation3 + $0xb0] sm:$0xff] %vm455_vm4, %v1066_v29  ;;  %v966_v42 = vadd.f32 %v6823_v8, %v965_v41 }
 0x927   :  { %v1069_v28 = vmax.f32 %v971_v36, 0.0 }
 0x928   :  { %v1068_v46 = vmax.f32 %v966_v42, 0.0  ;;  %v5482_v30 = vpop.f32.mrb[34].mxu1 }
 0x929   :  { %1109 = vst.msk [vmem:[#allocation3 + $0xc8] sm:$0xff] %vm455_vm4, %v1069_v28  ;;  %v981_v31 = vadd.f32 %v5482_v30, %v6823_v8  ;;  %v975_v12 = vpop.f32.mrb[35].mxu1  ;;  %v1662_v28 = vld [vmem:[#allocation2 + $0x48] sm:$0xff] }
 0x92a   :  { %1108 = vst.msk [vmem:[#allocation3 + $0xc0] sm:$0xff] %vm455_vm4, %v1068_v46  ;;  %v976_v32 = vadd.f32 %v6823_v8, %v975_v12  ;;  %v5773_v30 = vld [vmem:[%s7969_s11] ss:$8 sps:$4 sm:$0xff]   ;;  %v5776_v12 = vld [vmem:[%s7969_s11 + $0x10] ss:$8 sps:$4 sm:$0xff]  }
 0x92b   :  { %v1071_v35 = vmax.f32 %v981_v31, 0.0  ;;  %v5778_v31 = vld [vmem:[%s7969_s11 + $0x14] ss:$8 sps:$4 sm:$0xff]  }
 0x92c   :  { %v1070_v37 = vmax.f32 %v976_v32, 0.0  ;;  %v5485_v38 = vpop.f32.mrb[36].mxu1  ;;  %v5781_v32 = vld [vmem:[%s7969_s11 + $0x24] ss:$8 sps:$4 sm:$0xff]  }
 0x92d   :  { %1111 = vst.msk [vmem:[#allocation3 + $0xd8] sm:$0xff] %vm455_vm4, %v1071_v35  ;;  %v991_v39 = vadd.f32 %v5485_v38, %v6823_v8  ;;  %v985_v40 = vpop.f32.mrb[37].mxu1  ;;  %v5784_v38 = vld [vmem:[%s7969_s11 + $0x34] ss:$8 sps:$4 sm:$0xff]  }
 0x92e   :  { %1110 = vst.msk [vmem:[#allocation3 + $0xd0] sm:$0xff] %vm455_vm4, %v1070_v37  ;;  %v986_v43 = vadd.f32 %v6823_v8, %v985_v40  ;;  %v5779_v37 = vld [vmem:[%s7969_s11 + $0x20] ss:$8 sps:$4 sm:$0xff]  }
 0x92f   :  { %v1073_v44 = vmax.f32 %v991_v39, 0.0  ;;  %v5782_v39 = vld [vmem:[%s7969_s11 + $0x30] ss:$8 sps:$4 sm:$0xff]  }
 0x930   :  { %v1072_v47 = vmax.f32 %v986_v43, 0.0  ;;  %v5488_v48 = vpop.f32.mrb[38].mxu1 }
 0x931   :  { %1113 = vst.msk [vmem:[#allocation3 + $0xe8] sm:$0xff] %vm455_vm4, %v1073_v44  ;;  %v1001_v49 = vadd.f32 %v5488_v48, %v6823_v8  ;;  %v995_v50 = vpop.f32.mrb[39].mxu1 }
 0x932   :  { %1112 = vst.msk [vmem:[#allocation3 + $0xe0] sm:$0xff] %vm455_vm4, %v1072_v47  ;;  %v996_v51 = vadd.f32 %v6823_v8, %v995_v50 }
 0x933   :  { %v1075_v52 = vmax.f32 %v1001_v49, 0.0 }
 0x934   :  { %v5491_v56 = vpop.f32.mrb[40].mxu1 }
 0x935   :  { %v1674_v55 = vpop.permute.xlu1 %1673  ;;  %1115 = vst.msk [vmem:[#allocation3 + $0xf8] sm:$0xff] %vm455_vm4, %v1075_v52  ;;  %v1011_v57 = vadd.f32 %v5491_v56, %v6823_v8  ;;  %v1005_v58 = vpop.f32.mrb[41].mxu1  ;;  %v1790_v56 = vld [vmem:[#allocation2 + $0x50] sm:$0xff] }
 0x936   :  { %5082 = vmatmul.mubr.msk.bf16.vlgmr.msra.gmra.mrb[48].mxu1 %vm492_vm5, %v1674_v55  ;;  %v1074_v55 = vmax.f32 %v996_v51, 0.0  ;;  %v1006_v60 = vadd.f32 %v6823_v8, %v1005_v58 }
 0x937   :  { %2008 = vmatprep.mubr.bf16.mxu1 %v6213_v0  ;;  %v1077_v61 = vmax.f32 %v1011_v57, 0.0 }
 0x938   :  { %1114 = vst.msk [vmem:[#allocation3 + $0xf0] sm:$0xff] %vm455_vm4, %v1074_v55  ;;  %v1076_v16 = vmax.f32 %v1006_v60, 0.0  ;;  %v5494_v62 = vpop.f32.mrb[42].mxu1 }
 0x939   :  { %1117 = vst.msk [vmem:[#allocation3 + $0x108] sm:$0xff] %vm455_vm4, %v1077_v61  ;;  %v1021_v53 = vadd.f32 %v5494_v62, %v6823_v8  ;;  %v1015_v1 = vpop.f32.mrb[43].mxu1 }
 0x93a   :  { %1116 = vst.msk [vmem:[#allocation3 + $0x100] sm:$0xff] %vm455_vm4, %v1076_v16  ;;  %v1016_v2 = vadd.f32 %v6823_v8, %v1015_v1 }
 0x93b   :  { %v1079_v3 = vmax.f32 %v1021_v53, 0.0 }
 0x93c   :  { %v1078_v5 = vmax.f32 %v1016_v2, 0.0  ;;  %v5497_v4 = vpop.f32.mrb[44].mxu1  ;;  %v1791_v2 = vld [vmem:[#allocation2 + $0x58] sm:$0xff] }
 0x93d   :  { %1119 = vst.msk [vmem:[#allocation3 + $0x118] sm:$0xff] %vm455_vm4, %v1079_v3  ;;  %v1031_v9 = vadd.f32 %v5497_v4, %v6823_v8  ;;  %v1025_v10 = vpop.f32.mrb[45].mxu1 }
 0x93e   :  { %1118 = vst.msk [vmem:[#allocation3 + $0x110] sm:$0xff] %vm455_vm4, %v1078_v5  ;;  %v1026_v11 = vadd.f32 %v6823_v8, %v1025_v10 }
 0x93f   :  { %v1081_v13 = vmax.f32 %v1031_v9, 0.0 }
 0x940   :  { %v1080_v14 = vmax.f32 %v1026_v11, 0.0  ;;  %v5500_v15 = vpop.f32.mrb[46].mxu1 }
 0x941   :  { %1121 = vst.msk [vmem:[#allocation3 + $0x128] sm:$0xff] %vm455_vm4, %v1081_v13  ;;  %v1041_v17 = vadd.f32 %v5500_v15, %v6823_v8  ;;  %v1035_v18 = vpop.f32.mrb[47].mxu1 }
 0x942   :  { %1120 = vst.msk [vmem:[#allocation3 + $0x120] sm:$0xff] %vm455_vm4, %v1080_v14  ;;  %v1036_v19 = vadd.f32 %v6823_v8, %v1035_v18 }
 0x943   :  { %v1083_v20 = vmax.f32 %v1041_v17, 0.0 }
 0x944   :  { %v1082_v21 = vmax.f32 %v1036_v19, 0.0 }
 0x945   :  { %1123 = vst.msk [vmem:[#allocation3 + $0x138] sm:$0xff] %vm455_vm4, %v1083_v20  ;;  %v1919_v20 = vld [vmem:[#allocation2 + $0x60] sm:$0xff] }
 0x946   :  { %1122 = vst.msk [vmem:[#allocation3 + $0x130] sm:$0xff] %vm455_vm4, %v1082_v21 }
 0xa09   :  { %v1752_v22 = vpop.f32.mrb[48].mxu1 }
 0xa0a   :  { %v1753_v23 = vadd.f32 %v1752_v22, %v6579_v45  ;;  %v1754_v25 = vpop.f32.mrb[49].mxu1 }
 0xa0b   :  { %v1756_v27 = vpop.f32.mrb[50].mxu1  ;;  %v1755_v8 = vadd.f32 %v1754_v25, %v6583_v59 }
 0xa0c   :  { %v1759_v54 = vadd.f32 %v1753_v23, %v6571_v24  ;;  %v1757_v26 = vpop.f32.mrb[51].mxu1  ;;  %v5775_v24 = vld [vmem:[%s7969_s11 + $0x4] ss:$8 sps:$4 sm:$0xff]   ;;  %s6215_s11 = smov 96  }
 0xa0d   :  { %1847 = vmatprep.subr.bf16.mxu0 %v5775_v24  ;;  %1976 = vmatprep.subr.bf16.mxu1 %v5775_v24 }
 0xa0e   :  { %v5083_v29 = vmul.f32 -1.442695, %v1759_v54  ;;  %1848 = vmatpush1.bf16.msra.mxu0 %v5773_v30  ;;  %1977 = vmatpush1.bf16.msra.mxu1 %v5773_v30 }
 0xa0f   :  { %1849 = vmatprep.subr.bf16.mxu0 %v5778_v31  ;;  %1978 = vmatprep.subr.bf16.mxu1 %v5778_v31 }
 0xa10   :  { %5839 = vpow2.f32 %v5083_v29 }
 0xa12   :  { %1850 = vmatpush1.bf16.msra.mxu0 %v5776_v12  ;;  %1979 = vmatpush1.bf16.msra.mxu1 %v5776_v12 }
 0xa13   :  { %1851 = vmatprep.subr.bf16.mxu0 %v5781_v32  ;;  %1980 = vmatprep.subr.bf16.mxu1 %v5781_v32 }
 0xa16   :  { %1852 = vmatpush1.bf16.msra.mxu0 %v5779_v37  ;;  %1981 = vmatpush1.bf16.msra.mxu1 %v5779_v37 }
 0xa17   :  { %1853 = vmatprep.subr.bf16.mxu0 %v5784_v38  ;;  %1982 = vmatprep.subr.bf16.mxu1 %v5784_v38 }
 0xa1a   :  { %v5840_v33 = vpop.eup %5839  ;;  %1854 = vmatpush1.bf16.msra.mxu0 %v5782_v39  ;;  %1983 = vmatpush1.bf16.msra.mxu1 %v5782_v39 }
 0xa1b   :  { %v1763_v36 = vadd.f32 1.0, %v5840_v33  ;;  %2105 = vmatprep.subr.bf16.mxu0 %v5775_v24 }
 0xa1d   :  { %5841 = vrcp.f32 %v1763_v36  ;;  %v1920_v36 = vld [vmem:[#allocation2 + $0x68] sm:$0xff] }
 0xa27   :  { %v5842_v41 = vpop.eup %5841 }
 0xa28   :  { %v1766_v42 = vmul.f32 %v5842_v41, %v1755_v8  ;;  %v1769_v40 = vsub.f32 1.0, %v5842_v41  ;;  %v1775_v44 = vmul.f32 %v5842_v41, %v6815_v6 }
 0xa2a   :  { %v1767_v46 = vadd.f32 %v1766_v42, %v1662_v28 }
 0xa2c   :  { %5843 = vtanh.f32 %v1767_v46 }
 0xa36   :  { %v5844_v35 = vpop.eup %5843 }
 0xa37   :  { %1771 = vrot.lane.b32.xlu0 %v5844_v35, %s6214_s12 }
 0xaa9   :  { %v1772_v43 = vpop.permute.xlu0 %1771 }
 0xaaa   :  { %v1774_v47 = vmul.f32 %v1772_v43, %v1769_v40 }
 0xaac   :  { %v6936_v48 = vadd.f32 %v1775_v44, %v1774_v47 }
 0xaae   :  { %v1792_v49 = vpack.c.bf16 %v6936_v48, %v6936_v48 }
 0xab0   :  { %1802 = vrot.lane.b32.xlu1 %v1792_v49, %s6214_s12 }
 0xb22   :  { %v1803_v50 = vpop.permute.xlu1 %1802 }
 0xb23   :  { %5092 = vmatmul.mubr.msk.bf16.vlgmr.msra.gmra.mrb[40].mxu0 %vm492_vm5, %v1803_v50 }
 0xb24   :  { %2106 = vmatpush1.bf16.msra.mxu0 %v5773_v30  ;;  %2137 = vmatprep.mubr.bf16.mxu0 %v6213_v0 }
 0xb25   :  { %2107 = vmatprep.subr.bf16.mxu0 %v5778_v31 }
 0xb28   :  { %2108 = vmatpush1.bf16.msra.mxu0 %v5776_v12 }
 0xb29   :  { %2109 = vmatprep.subr.bf16.mxu0 %v5781_v32 }
 0xb2c   :  { %2110 = vmatpush1.bf16.msra.mxu0 %v5779_v37 }
 0xb2d   :  { %2111 = vmatprep.subr.bf16.mxu0 %v5784_v38 }
 0xb30   :  { %2112 = vmatpush1.bf16.msra.mxu0 %v5782_v39 }
 0xbf6   :  { %v1881_v51 = vpop.f32.mrb[40].mxu0 }
 0xbf7   :  { %v1882_v52 = vadd.f32 %v1881_v51, %v6579_v45  ;;  %v1883_v55 = vpop.f32.mrb[41].mxu0 }
 0xbf8   :  { %v1885_v57 = vpop.f32.mrb[42].mxu0  ;;  %v1884_v0 = vadd.f32 %v1883_v55, %v6583_v59 }
 0xbf9   :  { %v1888_v58 = vadd.f32 %v1882_v52, %v1790_v56  ;;  %v1886_v60 = vpop.f32.mrb[43].mxu0 }
 0xbfb   :  { %v5093_v61 = vmul.f32 -1.442695, %v1888_v58  ;;  %v2048_v58 = vld [vmem:[#allocation2 + $0x70] sm:$0xff] }
 0xbfd   :  { %5845 = vpow2.f32 %v5093_v61 }
 0xc07   :  { %v5846_v16 = vpop.eup %5845 }
 0xc08   :  { %v1892_v62 = vadd.f32 1.0, %v5846_v16 }
 0xc0a   :  { %5847 = vrcp.f32 %v1892_v62 }
 0xc14   :  { %v5848_v53 = vpop.eup %5847 }
 0xc15   :  { %v1895_v1 = vmul.f32 %v5848_v53, %v1884_v0  ;;  %v1898_v4 = vsub.f32 1.0, %v5848_v53  ;;  %v1904_v10 = vmul.f32 %v5848_v53, %v6936_v48 }
 0xc17   :  { %v1896_v3 = vadd.f32 %v1895_v1, %v1791_v2 }
 0xc19   :  { %5849 = vtanh.f32 %v1896_v3 }
 0xc23   :  { %v5850_v5 = vpop.eup %5849 }
 0xc24   :  { %1900 = vrot.lane.b32.xlu0 %v5850_v5, %s6214_s12  ;;  %v2049_v5 = vld [vmem:[#allocation2 + $0x78] sm:$0xff] }
 0xc96   :  { %v1901_v9 = vpop.permute.xlu0 %1900 }
 0xc97   :  { %v1903_v11 = vmul.f32 %v1901_v9, %v1898_v4 }
 0xc99   :  { %v6947_v13 = vadd.f32 %v1904_v10, %v1903_v11 }
 0xc9b   :  { %v1921_v14 = vpack.c.bf16 %v6947_v13, %v6947_v13 }
 0xc9d   :  { %1931 = vrot.lane.b32.xlu1 %v1921_v14, %s6214_s12 }
 0xd0f   :  { %v1932_v15 = vpop.permute.xlu1 %1931 }
 0xd10   :  { %5102 = vmatmul.mubr.msk.bf16.vlgmr.msra.gmra.mrb[52].mxu1 %vm492_vm5, %v1932_v15 }
 0xde3   :  { %v2010_v17 = vpop.f32.mrb[52].mxu1 }
 0xde4   :  { %v2011_v18 = vadd.f32 %v2010_v17, %v6579_v45  ;;  %v2012_v19 = vpop.f32.mrb[53].mxu1 }
 0xde5   :  { %v2014_v21 = vpop.f32.mrb[54].mxu1  ;;  %v2013_v26 = vadd.f32 %v2012_v19, %v6583_v59  ;;  %v5785_v19 = vld [vmem:[%s7972_s14] sm:$0xff]  }
 0xde6   :  { %v2017_v22 = vadd.f32 %v2011_v18, %v1919_v20  ;;  %v2015_v23 = vpop.f32.mrb[55].mxu1  ;;  %5709 = vmatprep.subr.bf16.mxu1 %v5785_v19  ;;  %5501 = vmatprep.subr.bf16.mxu0 %v5785_v19  ;;  %v5786_v20 = vld [vmem:[%s7972_s14 + $0x8] sm:$0xff]   ;;  %v5787_v21 = vld [vmem:[%s7971_s13] sm:$0xff]  }
 0xde7   :  { %5711 = vmatpush3.bf16.msra.mxu1 %v5785_v19 }
 0xde8   :  { %v5103_v25 = vmul.f32 -1.442695, %v2017_v22  ;;  %5710 = vmatprep.subr.bf16.mxu1 %v5786_v20 }
 0xdea   :  { %5851 = vpow2.f32 %v5103_v25 }
 0xdeb   :  { %5712 = vmatpush3.bf16.msra.mxu1 %v5786_v20 }
 0xdec   :  { %5513 = vmatprep.subr.bf16.mxu1 %v5787_v21 }
 0xdf4   :  { %v5852_v27 = vpop.eup %5851 }
 0xdf5   :  { %v2021_v54 = vadd.f32 1.0, %v5852_v27 }
 0xdf7   :  { %5853 = vrcp.f32 %v2021_v54 }
 0xe01   :  { %v5854_v29 = vpop.eup %5853 }
 0xe02   :  { %v2024_v33 = vmul.f32 %v5854_v29, %v2013_v26  ;;  %v2027_v42 = vsub.f32 1.0, %v5854_v29  ;;  %v2033_v46 = vmul.f32 %v5854_v29, %v6947_v13 }
 0xe04   :  { %v2025_v8 = vadd.f32 %v2024_v33, %v1920_v36 }
 0xe06   :  { %5855 = vtanh.f32 %v2025_v8 }
 0xe10   :  { %v5856_v41 = vpop.eup %5855 }
 0xe11   :  { %2029 = vrot.lane.b32.xlu0 %v5856_v41, %s6214_s12 }
 0xe83   :  { %v2030_v28 = vpop.permute.xlu0 %2029 }
 0xe84   :  { %v2032_v30 = vmul.f32 %v2030_v28, %v2027_v42  ;;  %v2185_v28 = vld [vmem:[#allocation3 + $0x8] sm:$0xff] }
 0xe86   :  { %v2034_v24 = vadd.f32 %v2033_v46, %v2032_v30 }
 0xe88   :  { %v2050_v31 = vpack.c.bf16 %v2034_v24, %v2034_v24 }
 0xe8a   :  { %2060 = vrot.lane.b32.xlu1 %v2050_v31, %s6214_s12 }
 0xe8e   :  { %1778 = vrot.lane.b32.xlu1 %v6936_v48, %s6215_s11 }
 0xe92   :  { %2036 = vrot.lane.b32.xlu1 %v2034_v24, %s6215_s11 }
 0xe96   :  { %1263 = vrot.lane.b32.xlu1 %v6587_v7, %s6215_s11 }
 0xe9a   :  { %1520 = vrot.lane.b32.xlu1 %v6626_v63, %s6215_s11 }
 0xefc   :  { %v2061_v12 = vpop.permute.xlu1 %2060 }
 0xefd   :  { %5112 = vmatmul.mubr.msk.bf16.vlgmr.msra.gmra.mrb[44].mxu0 %vm492_vm5, %v2061_v12 }
 0xefe   :  { %5502 = vmatpush3.bf16.msra.mxu0 %v5785_v19 }
 0xeff   :  { %5503 = vmatprep.subr.bf16.mxu0 %v5786_v20 }
 0xf00   :  { %v1779_v32 = vpop.permute.xlu1 %1778 }
 0xf01   :  { %v1781_v35 = vadd.f32 %v1779_v32, %v6936_v48 }
 0xf02   :  { %5504 = vmatpush3.bf16.msra.mxu0 %v5786_v20 }
 0xf03   :  { %v1782_v37 = vmul.f32 0.5, %v1781_v35 }
 0xf04   :  { %v2037_v38 = vpop.permute.xlu1 %2036 }
 0xf05   :  { %v2039_v39 = vadd.f32 %v2037_v38, %v2034_v24  ;;  %1784 = vrot.lane.b32.xlu1 %v1782_v37, %s6214_s12  ;;  %v5788_v37 = vld [vmem:[%s7971_s13 + $0x8] sm:$0xff]  }
 0xf07   :  { %v2040_v40 = vmul.f32 0.5, %v2039_v39  ;;  %v2186_v39 = vld [vmem:[#allocation3 + $0x10] sm:$0xff] }
 0xf08   :  { %v1264_v43 = vpop.permute.xlu1 %1263 }
 0xf09   :  { %v1266_v44 = vadd.f32 %v1264_v43, %v6587_v7  ;;  %2042 = vrot.lane.b32.xlu1 %v2040_v40, %s6214_s12  ;;  %v2187_v40 = vld [vmem:[#allocation3 + $0x18] sm:$0xff]  ;;  %v2188_v43 = vld [vmem:[#allocation3 + $0x20] sm:$0xff] }
 0xf0b   :  { %v1267_v47 = vmul.f32 0.5, %v1266_v44  ;;  %v2189_v44 = vld [vmem:[#allocation3 + $0x28] sm:$0xff] }
 0xf0c   :  { %v1521_v49 = vpop.permute.xlu1 %1520 }
 0xf0d   :  { %v1523_v50 = vadd.f32 %v1521_v49, %v6626_v63  ;;  %1269 = vrot.lane.b32.xlu1 %v1267_v47, %s6214_s12 }
 0xf0f   :  { %v1524_v51 = vmul.f32 0.5, %v1523_v50 }
 0xf11   :  { %1526 = vrot.lane.b32.xlu1 %v1524_v51, %s6214_s12  ;;  %v2202_v51 = vmul.f32 0.5, %v2186_v39 }
 0xf77   :  { %v1785_v48 = vpop.permute.xlu1 %1784 }
 0xf78   :  { %1788 = vst.msk [vmem:[#allocation4 + $0x20] sm:$0xff] %vm455_vm4, %v1785_v48  ;;  %v2203_v48 = vmul.f32 0.5, %v2187_v40 }
 0xf7b   :  { %v2043_v52 = vpop.permute.xlu1 %2042 }
 0xf7c   :  { %2046 = vst.msk [vmem:[#allocation4 + $0x30] sm:$0xff] %vm455_vm4, %v2043_v52  ;;  %v2204_v52 = vmul.f32 0.5, %v2188_v43 }
 0xf7f   :  { %v1270_v55 = vpop.permute.xlu1 %1269  ;;  %v7004_v8 = vld [vmem:[#allocation4 + $0x20] sm:$0xff] }
 0xf80   :  { %1272 = vst.msk [vmem:[#allocation4] sm:$0xff] %vm455_vm4, %v1270_v55  ;;  %v2205_v55 = vmul.f32 0.5, %v2189_v44 }
 0xf83   :  { %v1527_v7 = vpop.permute.xlu1 %1526  ;;  %v7013_v12 = vld [vmem:[#allocation4 + $0x30] sm:$0xff] }
 0xf84   :  { %1530 = vst.msk [vmem:[#allocation4 + $0x10] sm:$0xff] %vm455_vm4, %v1527_v7 }
 0xf87   :  { %v7025_v47 = vld [vmem:[#allocation4] sm:$0xff] }
 0xf8b   :  { %v7032_v7 = vld [vmem:[#allocation4 + $0x10] sm:$0xff] }
 0xfd0   :  { %v2139_v56 = vpop.f32.mrb[44].mxu0 }
 0xfd1   :  { %v2140_v63 = vadd.f32 %v2139_v56, %v6579_v45  ;;  %v2141_v57 = vpop.f32.mrb[45].mxu0 }
 0xfd2   :  { %v2143_v60 = vpop.f32.mrb[46].mxu0  ;;  %v2142_v1 = vadd.f32 %v2141_v57, %v6583_v59  ;;  %v2209_v57 = vpack.c.bf16 %v2203_v48, %v2202_v51 }
 0xfd3   :  { %v2146_v61 = vadd.f32 %v2140_v63, %v2048_v58  ;;  %v2144_v16 = vpop.f32.mrb[47].mxu0  ;;  %v2210_v58 = vpack.c.bf16 %v2205_v55, %v2204_v52  ;;  %v2190_v60 = vld [vmem:[#allocation3 + $0x30] sm:$0xff] }
 0xfd4   :  { %v2206_v16 = vmul.f32 0.5, %v2190_v60 }
 0xfd5   :  { %v5113_v62 = vmul.f32 -1.442695, %v2146_v61  ;;  %v2191_v61 = vld [vmem:[#allocation3 + $0x38] sm:$0xff] }
 0xfd7   :  { %5857 = vpow2.f32 %v5113_v62  ;;  %v2207_v62 = vmul.f32 0.5, %v2191_v61 }
 0xfe1   :  { %v5858_v0 = vpop.eup %5857 }
 0xfe2   :  { %v2150_v53 = vadd.f32 1.0, %v5858_v0  ;;  %v2211_v0 = vpack.c.bf16 %v2207_v62, %v2206_v16 }
 0xfe4   :  { %5859 = vrcp.f32 %v2150_v53 }
 0xfee   :  { %v5860_v2 = vpop.eup %5859 }
 0xfef   :  { %v2153_v3 = vmul.f32 %v5860_v2, %v2142_v1  ;;  %v2156_v45 = vsub.f32 1.0, %v5860_v2  ;;  %v2162_v11 = vmul.f32 %v5860_v2, %v2034_v24  ;;  %v2201_v24 = vmul.f32 0.5, %v2185_v28  ;;  %v7045_v2 = vld [vmem:[%s7973_s15] ss:$0 sm:$0xff] }
 0xff1   :  { %v2154_v4 = vadd.f32 %v2153_v3, %v2049_v5 }
 0xff3   :  { %5861 = vtanh.f32 %v2154_v4 }
 0xffd   :  { %v5862_v9 = vpop.eup %5861 }
 0xffe   :  { %2158 = vrot.lane.b32.xlu0 %v5862_v9, %s6214_s12 }
0x1002   :  { %1907 = vrot.lane.b32.xlu0 %v6947_v13, %s6215_s11 }
0x1070   :  { %v2159_v10 = vpop.permute.xlu0 %2158 }
0x1071   :  { %v2161_v14 = vmul.f32 %v2159_v10, %v2156_v45 }
0x1073   :  { %v2163_v15 = vadd.f32 %v2162_v11, %v2161_v14 }
0x1074   :  { %v1908_v17 = vpop.permute.xlu0 %1907 }
0x1075   :  { %2165 = vrot.lane.b32.xlu0 %v2163_v15, %s6215_s11  ;;  %v1910_v59 = vadd.f32 %v1908_v17, %v6947_v13 }
0x1077   :  { %v1911_v18 = vmul.f32 0.5, %v1910_v59 }
0x1079   :  { %1391 = vrot.lane.b32.xlu0 %v6607_v34, %s6215_s11 }
0x107d   :  { %1649 = vrot.lane.b32.xlu0 %v6815_v6, %s6215_s11 }
0x1081   :  { %1913 = vrot.lane.b32.xlu0 %v1911_v18, %s6214_s12 }
0x10e7   :  { %v2166_v13 = vpop.permute.xlu0 %2165 }
0x10e8   :  { %v2168_v22 = vadd.f32 %v2166_v13, %v2163_v15 }
0x10ea   :  { %v2169_v23 = vmul.f32 0.5, %v2168_v22 }
0x10eb   :  { %v1392_v25 = vpop.permute.xlu0 %1391 }
0x10ec   :  { %v1394_v27 = vadd.f32 %v1392_v25, %v6607_v34  ;;  %2171 = vrot.lane.b32.xlu0 %v2169_v23, %s6214_s12 }
0x10ee   :  { %v1395_v54 = vmul.f32 0.5, %v1394_v27 }
0x10ef   :  { %v1650_v26 = vpop.permute.xlu0 %1649 }
0x10f0   :  { %v1652_v29 = vadd.f32 %v1650_v26, %v6815_v6  ;;  %1397 = vrot.lane.b32.xlu0 %v1395_v54, %s6214_s12  ;;  %v2184_v6 = vld [vmem:[#allocation3] sm:$0xff] }
0x10f1   :  { %v2200_v30 = vmul.f32 0.5, %v2184_v6 }
0x10f2   :  { %v1653_v33 = vmul.f32 0.5, %v1652_v29 }
0x10f3   :  { %v1914_v36 = vpop.permute.xlu0 %1913  ;;  %v2208_v38 = vpack.c.bf16 %v2201_v24, %v2200_v30 }
0x10f4   :  { %1917 = vst.msk [vmem:[#allocation4 + $0x28] sm:$0xff] %vm455_vm4, %v1914_v36  ;;  %1655 = vrot.lane.b32.xlu0 %v1653_v33, %s6214_s12 }
0x10fb   :  { %v7006_v41 = vld [vmem:[#allocation4 + $0x28] sm:$0xff] }
0x10fc   :  { %v2218_v34 = vpack.c.bf16 %v7006_v41, %v7004_v8 }
0x10fe   :  { %5509 = vmatprep.mubr.msk.bf16.mxu1 %vm455_vm4, %v2218_v34 }
0x115e   :  { %v2172_v42 = vpop.permute.xlu0 %2171 }
0x115f   :  { %2175 = vst.msk [vmem:[#allocation4 + $0x38] sm:$0xff] %vm455_vm4, %v2172_v42 }
0x1162   :  { %v1398_v46 = vpop.permute.xlu0 %1397 }
0x1163   :  { %1401 = vst.msk [vmem:[#allocation4 + $0x8] sm:$0xff] %vm455_vm4, %v1398_v46 }
0x1166   :  { %v1656_v31 = vpop.permute.xlu0 %1655  ;;  %v7015_v32 = vld [vmem:[#allocation4 + $0x38] sm:$0xff] }
0x1167   :  { %1659 = vst.msk [vmem:[#allocation4 + $0x18] sm:$0xff] %vm455_vm4, %v1656_v31  ;;  %v2219_v35 = vpack.c.bf16 %v7015_v32, %v7013_v12 }
0x1169   :  { %5510 = vmatmul.mubr.msk.bf16.vlgmr.msra.gmra.mrb[56].mxu1 %vm455_vm4, %v2219_v35 }
0x116a   :  { %5514 = vmatpush3.bf16.msra.mxu1 %v5787_v21  ;;  %5517 = vmatprep.mubr.msk.bf16.mxu1 %vm455_vm4, %v2208_v38  ;;  %v7027_v49 = vld [vmem:[#allocation4 + $0x8] sm:$0xff] }
0x116b   :  { %5515 = vmatprep.subr.bf16.mxu1 %v5788_v37  ;;  %v2216_v50 = vpack.c.bf16 %v7027_v49, %v7025_v47 }
0x116d   :  { %5505 = vmatprep.mubr.msk.bf16.mxu0 %vm455_vm4, %v2216_v50 }
0x116e   :  { %5516 = vmatpush3.bf16.msra.mxu1 %v5788_v37  ;;  %v7034_v56 = vld [vmem:[#allocation4 + $0x18] sm:$0xff] }
0x116f   :  { %v2217_v63 = vpack.c.bf16 %v7034_v56, %v7032_v7 }
0x1171   :  { %5506 = vmatmul.mubr.msk.bf16.vlgmr.msra.gmra.mrb[48].mxu0 %vm455_vm4, %v2217_v63  ;;  %5518 = vmatmul.mubr.msk.bf16.vlgmr.msra.gmra.mrb[60].mxu1 %vm455_vm4, %v2209_v57 }
0x1172   :  { %5521 = vmatprep.mubr.msk.bf16.mxu1 %vm455_vm4, %v2210_v58 }
0x1179   :  { %5522 = vmatmul.mubr.msk.bf16.gmra.mrb[56].mxu1 %vm455_vm4, %v2211_v0 }
0x1244   :  { %v5507_v53 = vpop.f32.mrb[48].mxu0  ;;  %v5519_v1 = vpop.f32.mrb[60].mxu1 }
0x1245   :  { %v2380_v3 = vadd.f32 %v5519_v1, %v5507_v53  ;;  %v2282_v5 = vpop.f32.mrb[49].mxu0  ;;  %v2371_v4 = vpop.f32.mrb[61].mxu1 }
0x1246   :  { %v2372_v9 = vadd.f32 %v2371_v4, %v2282_v5  ;;  %v5508_v45 = vpop.f32.mrb[50].mxu0  ;;  %v5520_v10 = vpop.f32.mrb[62].mxu1 }
0x1247   :  { %v2383_v11 = vadd.f32 %v5520_v10, %v5508_v45  ;;  %v2285_v14 = vpop.f32.mrb[51].mxu0  ;;  %v2374_v15 = vpop.f32.mrb[63].mxu1  ;;  %v7056_v19 = vadd.f32 %v7045_v2, %v2380_v3 }
0x1248   :  { %v7048_v17 = vadd.f32 %v7045_v2, %v2372_v9  ;;  %v2375_v59 = vadd.f32 %v2374_v15, %v2285_v14 }
0x1249   :  { %v7061_v21 = vadd.f32 %v7045_v2, %v2383_v11  ;;  %v5128_v36 = vmul.f32 -1.442695, %v7056_v19 }
0x124a   :  { %v7051_v18 = vadd.f32 %v7045_v2, %v2375_v59  ;;  %2466 = vrot.lane.b32.xlu1 %v7048_v17, %s6212_s19  ;;  %v5126_v29 = vmul.f32 -1.442695, %v7048_v17 }
0x124b   :  { %v5129_v34 = vmul.f32 -1.442695, %v7061_v21 }
0x124c   :  { %v5523_v20 = vpop.f32.mrb[56].mxu1  ;;  %2468 = vrot.lane.b32.xlu0 %v7051_v18, %s6212_s19  ;;  %v5127_v33 = vmul.f32 -1.442695, %v7051_v18  ;;  %5863 = vpow2.f32 %v5126_v29 }
0x124d   :  { %v2387_v13 = vpop.f32.mrb[57].mxu1  ;;  %v7076_v54 = vadd.f32 %v5523_v20, %v7045_v2 }
0x124e   :  { %v5524_v22 = vpop.f32.mrb[58].mxu1  ;;  %2470 = vrot.lane.b32.xlu1 %v7056_v19, %s6212_s19  ;;  %v7066_v25 = vadd.f32 %v7045_v2, %v2387_v13  ;;  %5865 = vpow2.f32 %v5127_v33 }
0x124f   :  { %v2390_v23 = vpop.f32.mrb[59].mxu1  ;;  %v7081_v26 = vadd.f32 %v5524_v22, %v7045_v2  ;;  %5867 = vpow2.f32 %v5128_v36  ;;  %v5132_v28 = vmul.f32 -1.442695, %v7076_v54 }
0x1250   :  { %2472 = vrot.lane.b32.xlu0 %v7061_v21, %s6212_s19  ;;  %v7071_v27 = vadd.f32 %v7045_v2, %v2390_v23  ;;  %v5130_v42 = vmul.f32 -1.442695, %v7066_v25  ;;  %5869 = vpow2.f32 %v5129_v34 }
0x1251   :  { %v5133_v30 = vmul.f32 -1.442695, %v7081_v26 }
0x1252   :  { %2474 = vrot.lane.b32.xlu1 %v7066_v25, %s6212_s19  ;;  %v5131_v6 = vmul.f32 -1.442695, %v7071_v27  ;;  %5871 = vpow2.f32 %v5130_v42 }
0x1254   :  { %2476 = vrot.lane.b32.xlu0 %v7071_v27, %s6212_s19  ;;  %5873 = vpow2.f32 %v5131_v6 }
0x1255   :  { %5875 = vpow2.f32 %v5132_v28 }
0x1256   :  { %2478 = vrot.lane.b32.xlu1 %v7076_v54, %s6212_s19  ;;  %v5864_v46 = vpop.eup %5863  ;;  %5877 = vpow2.f32 %v5133_v30 }
0x1257   :  { %v2434_v31 = vadd.f32 1.0, %v5864_v46 }
0x1258   :  { %2480 = vrot.lane.b32.xlu0 %v7081_v26, %s6212_s19  ;;  %v5866_v24 = vpop.eup %5865 }
0x1259   :  { %v5868_v35 = vpop.eup %5867  ;;  %v2435_v37 = vadd.f32 1.0, %v5866_v24  ;;  %5879 = vrcp.f32 %v2434_v31  ;;  %v5789_v31 = vld [vmem:[%s7974_s16] sm:$0xff]  }
0x125a   :  { %v5870_v38 = vpop.eup %5869  ;;  %v2436_v39 = vadd.f32 1.0, %v5868_v35  ;;  %5525 = vmatprep.subr.bf16.mxu0 %v5789_v31 }
0x125b   :  { %v2437_v43 = vadd.f32 1.0, %v5870_v38  ;;  %5881 = vrcp.f32 %v2435_v37  ;;  %5526 = vmatpush3.bf16.msra.mxu0 %v5789_v31  ;;  %v7232_v31 = vld [vmem:[%s7975_s17] ss:$0 sm:$0xff] }
0x125c   :  { %v5872_v40 = vpop.eup %5871  ;;  %5883 = vrcp.f32 %v2436_v39 }
0x125d   :  { %v2438_v50 = vadd.f32 1.0, %v5872_v40  ;;  %5885 = vrcp.f32 %v2437_v43  ;;  %v5790_v43 = vld [vmem:[%s7974_s16 + $0x8] sm:$0xff]  }
0x125e   :  { %v5874_v44 = vpop.eup %5873  ;;  %5527 = vmatprep.subr.bf16.mxu0 %v5790_v43 }
0x125f   :  { %v5876_v51 = vpop.eup %5875  ;;  %v2439_v48 = vadd.f32 1.0, %v5874_v44  ;;  %5887 = vrcp.f32 %v2438_v50  ;;  %5528 = vmatpush3.bf16.msra.mxu0 %v5790_v43 }
0x1260   :  { %v5878_v52 = vpop.eup %5877  ;;  %v2440_v55 = vadd.f32 1.0, %v5876_v51 }
0x1261   :  { %v2441_v57 = vadd.f32 1.0, %v5878_v52  ;;  %5889 = vrcp.f32 %v2439_v48 }
0x1262   :  { %5891 = vrcp.f32 %v2440_v55 }
0x1263   :  { %v7095_v63 = vpop.eup %5879  ;;  %5893 = vrcp.f32 %v2441_v57 }
0x1265   :  { %v7098_v61 = vpop.eup %5881 }
0x1266   :  { %v7102_v0 = vpop.eup %5883 }
0x1267   :  { %v7106_v3 = vpop.eup %5885  ;;  %v2548_v51 = vsub.f32 1.0, %v7102_v0 }
0x1269   :  { %v7110_v9 = vpop.eup %5887 }
0x126b   :  { %v7114_v11 = vpop.eup %5889 }
0x126c   :  { %v7118_v59 = vpop.eup %5891 }
0x126d   :  { %v7122_v22 = vpop.eup %5893 }
0x12bc   :  { %v2467_v58 = vpop.permute.xlu1 %2466 }
0x12bd   :  { %v2490_v60 = vmul.f32 %v7095_v63, %v2467_v58 }
0x12be   :  { %v2469_v16 = vpop.permute.xlu0 %2468 }
0x12bf   :  { %v2491_v62 = vmul.f32 %v7098_v61, %v2469_v16  ;;  %2506 = vrot.lane.b32.xlu1 %v2490_v60, %s6214_s12  ;;  %v2546_v60 = vsub.f32 1.0, %v7095_v63 }
0x12c0   :  { %v2471_v53 = vpop.permute.xlu1 %2470 }
0x12c1   :  { %v2492_v1 = vmul.f32 %v7102_v0, %v2471_v53  ;;  %2508 = vrot.lane.b32.xlu0 %v2491_v62, %s6214_s12 }
0x12c2   :  { %v2473_v5 = vpop.permute.xlu0 %2472 }
0x12c3   :  { %v2493_v4 = vmul.f32 %v7106_v3, %v2473_v5  ;;  %2510 = vrot.lane.b32.xlu1 %v2492_v1, %s6214_s12  ;;  %v2547_v5 = vsub.f32 1.0, %v7098_v61 }
0x12c4   :  { %v2475_v45 = vpop.permute.xlu1 %2474 }
0x12c5   :  { %v2494_v10 = vmul.f32 %v7110_v9, %v2475_v45  ;;  %2512 = vrot.lane.b32.xlu0 %v2493_v4, %s6214_s12 }
0x12c6   :  { %v2477_v14 = vpop.permute.xlu0 %2476 }
0x12c7   :  { %v2495_v15 = vmul.f32 %v7114_v11, %v2477_v14  ;;  %2514 = vrot.lane.b32.xlu1 %v2494_v10, %s6214_s12 }
0x12c8   :  { %v2479_v20 = vpop.permute.xlu1 %2478 }
0x12c9   :  { %v2496_v13 = vmul.f32 %v7118_v59, %v2479_v20  ;;  %2516 = vrot.lane.b32.xlu0 %v2495_v15, %s6214_s12 }
0x12ca   :  { %v2481_v23 = vpop.permute.xlu0 %2480 }
0x12cb   :  { %v2497_v29 = vmul.f32 %v7122_v22, %v2481_v23  ;;  %2518 = vrot.lane.b32.xlu1 %v2496_v13, %s6214_s12  ;;  %v5791_v23 = vld [vmem:[%s7972_s14] sm:$0xff]  }
0x12cc   :  { %5537 = vmatprep.subr.bf16.mxu0 %v5791_v23 }
0x12cd   :  { %2520 = vrot.lane.b32.xlu0 %v2497_v29, %s6214_s12 }
0x12cf   :  { %2602 = vrot.lane.b32.xlu1 %v7025_v47, %s6212_s19 }
0x12d1   :  { %2604 = vrot.lane.b32.xlu0 %v7027_v49, %s6212_s19 }
0x12d3   :  { %2606 = vrot.lane.b32.xlu1 %v7032_v7, %s6212_s19 }
0x12d5   :  { %2608 = vrot.lane.b32.xlu0 %v7034_v56, %s6212_s19 }
0x12d7   :  { %2610 = vrot.lane.b32.xlu1 %v7004_v8, %s6212_s19 }
0x12d9   :  { %2612 = vrot.lane.b32.xlu0 %v7006_v41, %s6212_s19 }
0x1331   :  { %v2507_v33 = vpop.permute.xlu1 %2506 }
0x1332   :  { %v2530_v49 = vadd.f32 %v2507_v33, %v7048_v17 }
0x1333   :  { %v2509_v36 = vpop.permute.xlu0 %2508 }
0x1334   :  { %v2531_v56 = vadd.f32 %v2509_v36, %v7051_v18  ;;  %v2551_v36 = vsub.f32 1.0, %v7114_v11 }
0x1335   :  { %v2511_v34 = vpop.permute.xlu1 %2510 }
0x1336   :  { %v2532_v47 = vadd.f32 %v2511_v34, %v7056_v19 }
0x1337   :  { %v2513_v42 = vpop.permute.xlu0 %2512 }
0x1338   :  { %5895 = vtanh.f32 %v2532_v47  ;;  %v2533_v7 = vadd.f32 %v2513_v42, %v7061_v21 }
0x1339   :  { %v2515_v6 = vpop.permute.xlu1 %2514 }
0x133a   :  { %5897 = vtanh.f32 %v2533_v7  ;;  %v2534_v30 = vadd.f32 %v2515_v6, %v7066_v25  ;;  %v2552_v7 = vsub.f32 1.0, %v7118_v59 }
0x133b   :  { %v2517_v28 = vpop.permute.xlu0 %2516  ;;  %5899 = vtanh.f32 %v2530_v49 }
0x133c   :  { %5901 = vtanh.f32 %v2531_v56  ;;  %v2535_v24 = vadd.f32 %v2517_v28, %v7071_v27  ;;  %v2553_v56 = vsub.f32 1.0, %v7122_v22 }
0x133d   :  { %v2519_v8 = vpop.permute.xlu1 %2518 }
0x133e   :  { %v2536_v41 = vadd.f32 %v2519_v8, %v7076_v54 }
0x133f   :  { %v2521_v46 = vpop.permute.xlu0 %2520 }
0x1340   :  { %5903 = vtanh.f32 %v2536_v41  ;;  %v2537_v19 = vadd.f32 %v2521_v46, %v7081_v26 }
0x1341   :  { %v2603_v37 = vpop.permute.xlu1 %2602 }
0x1342   :  { %v5896_v17 = vpop.eup %5895  ;;  %5905 = vtanh.f32 %v2537_v19  ;;  %v2626_v45 = vmul.f32 %v7095_v63, %v2603_v37  ;;  %v2550_v63 = vsub.f32 1.0, %v7110_v9 }
0x1343   :  { %2566 = vrot.lane.b32.xlu1 %v5896_v17, %s6215_s11  ;;  %5907 = vtanh.f32 %v2534_v30  ;;  %v2605_v38 = vpop.permute.xlu0 %2604 }
0x1344   :  { %v5898_v18 = vpop.eup %5897  ;;  %5909 = vtanh.f32 %v2535_v24  ;;  %v2627_v10 = vmul.f32 %v7098_v61, %v2605_v38 }
0x1345   :  { %2568 = vrot.lane.b32.xlu0 %v5898_v18, %s6215_s11  ;;  %v5900_v21 = vpop.eup %5899  ;;  %v2607_v39 = vpop.permute.xlu1 %2606 }
0x1346   :  { %v5902_v54 = vpop.eup %5901 }
0x1347   :  { %2562 = vrot.lane.b32.xlu1 %v5900_v21, %s6215_s11  ;;  %v2609_v40 = vpop.permute.xlu0 %2608  ;;  %v5792_v21 = vld [vmem:[%s7972_s14 + $0x8] sm:$0xff]  }
0x1348   :  { %v2629_v57 = vmul.f32 %v7106_v3, %v2609_v40 }
0x1349   :  { %2564 = vrot.lane.b32.xlu0 %v5902_v54, %s6215_s11  ;;  %v2611_v44 = vpop.permute.xlu1 %2610 }
0x134a   :  { %v5904_v25 = vpop.eup %5903  ;;  %v2630_v47 = vmul.f32 %v7110_v9, %v2611_v44 }
0x134b   :  { %2574 = vrot.lane.b32.xlu1 %v5904_v25, %s6215_s11  ;;  %v2613_v50 = vpop.permute.xlu0 %2612 }
0x134c   :  { %v5906_v26 = vpop.eup %5905  ;;  %v2631_v42 = vmul.f32 %v7114_v11, %v2613_v50 }
0x134d   :  { %2576 = vrot.lane.b32.xlu0 %v5906_v26, %s6215_s11  ;;  %v5908_v27 = vpop.eup %5907  ;;  %v5793_v26 = vld [vmem:[%s7971_s13] sm:$0xff]  }
0x134e   :  { %v5910_v35 = vpop.eup %5909 }
0x134f   :  { %2570 = vrot.lane.b32.xlu1 %v5908_v27, %s6215_s11  ;;  %v5794_v27 = vld [vmem:[%s7971_s13 + $0x8] sm:$0xff]  }
0x1351   :  { %2572 = vrot.lane.b32.xlu0 %v5910_v35, %s6215_s11 }
0x1353   :  { %2614 = vrot.lane.b32.xlu1 %v7013_v12, %s6212_s19  ;;  %v2549_v12 = vsub.f32 1.0, %v7106_v3 }
0x1355   :  { %2616 = vrot.lane.b32.xlu0 %v7015_v32, %s6212_s19  ;;  %v2628_v32 = vmul.f32 %v7102_v0, %v2607_v39 }
0x13b5   :  { %v2567_v48 = vpop.permute.xlu1 %2566 }
0x13b6   :  { %v2588_v52 = vmul.f32 %v2567_v48, %v2548_v51  ;;  %v2778_v51 = vld [vmem:[#allocation3 + $0x50] sm:$0xff] }
0x13b7   :  { %v2569_v55 = vpop.permute.xlu0 %2568 }
0x13b8   :  { %v2589_v58 = vmul.f32 %v2569_v55, %v2549_v12  ;;  %v7170_v62 = vadd.f32 %v2628_v32, %v2588_v52  ;;  %v2776_v55 = vld [vmem:[#allocation3 + $0x40] sm:$0xff] }
0x13b9   :  { %v2563_v16 = vpop.permute.xlu1 %2562 }
0x13ba   :  { %v7172_v53 = vadd.f32 %v2629_v57, %v2589_v58  ;;  %v2586_v1 = vmul.f32 %v2563_v16, %v2546_v60  ;;  %v2779_v58 = vld [vmem:[#allocation3 + $0x58] sm:$0xff] }
0x13bb   :  { %v2565_v4 = vpop.permute.xlu0 %2564 }
0x13bc   :  { %v2587_v14 = vmul.f32 %v2565_v4, %v2547_v5  ;;  %v2643_v0 = vpack.c.bf16 %v7172_v53, %v7170_v62  ;;  %v7179_v15 = vadd.f32 %v2626_v45, %v2586_v1  ;;  %v2777_v1 = vld [vmem:[#allocation3 + $0x48] sm:$0xff] }
0x13bd   :  { %v2575_v3 = vpop.permute.xlu1 %2574 }
0x13be   :  { %v7181_v20 = vadd.f32 %v2627_v10, %v2587_v14  ;;  %2656 = vrot.lane.b32.xlu0 %v2643_v0, %s6215_s11  ;;  %v2592_v30 = vmul.f32 %v2575_v3, %v2552_v7  ;;  %v2782_v7 = vld [vmem:[#allocation3 + $0x70] sm:$0xff] }
0x13bf   :  { %v2577_v13 = vpop.permute.xlu0 %2576 }
0x13c0   :  { %v2642_v61 = vpack.c.bf16 %v7181_v20, %v7179_v15  ;;  %v2593_v19 = vmul.f32 %v2577_v13, %v2553_v56 }
0x13c1   :  { %v2571_v29 = vpop.permute.xlu1 %2570 }
0x13c2   :  { %v2590_v33 = vmul.f32 %v2571_v29, %v2550_v63  ;;  %2654 = vrot.lane.b32.xlu1 %v2642_v61, %s6215_s11 }
0x13c3   :  { %v2573_v34 = vpop.permute.xlu0 %2572 }
0x13c4   :  { %v2591_v49 = vmul.f32 %v2573_v34, %v2551_v36  ;;  %v7196_v28 = vadd.f32 %v2630_v47, %v2590_v33 }
0x13c5   :  { %v2615_v6 = vpop.permute.xlu1 %2614 }
0x13c6   :  { %v7198_v8 = vadd.f32 %v2631_v42, %v2591_v49  ;;  %v2632_v41 = vmul.f32 %v7118_v59, %v2615_v6 }
0x13c7   :  { %v2617_v46 = vpop.permute.xlu0 %2616 }
0x13c8   :  { %v2633_v17 = vmul.f32 %v7122_v22, %v2617_v46  ;;  %v2644_v9 = vpack.c.bf16 %v7198_v8, %v7196_v28  ;;  %v7204_v11 = vadd.f32 %v2632_v41, %v2592_v30  ;;  %v2780_v30 = vld [vmem:[#allocation3 + $0x60] sm:$0xff] }
0x13ca   :  { %v7206_v24 = vadd.f32 %v2633_v17, %v2593_v19  ;;  %2658 = vrot.lane.b32.xlu1 %v2644_v9, %s6215_s11  ;;  %v2783_v9 = vld [vmem:[#allocation3 + $0x78] sm:$0xff] }
0x13cc   :  { %v2645_v18 = vpack.c.bf16 %v7206_v24, %v7204_v11 }
0x13ce   :  { %2660 = vrot.lane.b32.xlu0 %v2645_v18, %s6215_s11 }
0x1430   :  { %v2657_v22 = vpop.permute.xlu0 %2656 }
0x1434   :  { %v2655_v59 = vpop.permute.xlu1 %2654 }
0x1435   :  { %5529 = vmatprep.mubr.msk.bf16.mxu0 %vm455_vm4, %v2655_v59 }
0x1436   :  { %5530 = vmatmul.mubr.msk.bf16.vlgmr.msra.gmra.mrb[52].mxu0 %vm455_vm4, %v2657_v22 }
0x1437   :  { %5538 = vmatpush3.bf16.msra.mxu0 %v5791_v23 }
0x1438   :  { %5539 = vmatprep.subr.bf16.mxu0 %v5792_v21 }
0x143b   :  { %5540 = vmatpush3.bf16.msra.mxu0 %v5792_v21  ;;  %v2781_v21 = vld [vmem:[#allocation3 + $0x68] sm:$0xff] }
0x143c   :  { %v2659_v54 = vpop.permute.xlu1 %2658  ;;  %5549 = vmatprep.subr.bf16.mxu0 %v5793_v26 }
0x143d   :  { %5533 = vmatprep.mubr.msk.bf16.mxu0 %vm455_vm4, %v2659_v54 }
0x1440   :  { %v2661_v25 = vpop.permute.xlu0 %2660 }
0x1441   :  { %5534 = vmatmul.mubr.msk.bf16.gmra.mrb[56].mxu0 %vm455_vm4, %v2661_v25 }
0x1442   :  { %5541 = vmatprep.mubr.msk.bf16.mxu0 %vm455_vm4, %v2655_v59 }
0x1449   :  { %5542 = vmatmul.mubr.msk.bf16.vlgmr.msra.gmra.mrb[60].mxu0 %vm455_vm4, %v2657_v22 }
0x144a   :  { %5545 = vmatprep.mubr.msk.bf16.mxu0 %vm455_vm4, %v2659_v54  ;;  %5550 = vmatpush3.bf16.msra.mxu0 %v5793_v26 }
0x144b   :  { %5551 = vmatprep.subr.bf16.mxu0 %v5794_v27 }
0x144e   :  { %5552 = vmatpush3.bf16.msra.mxu0 %v5794_v27 }
0x1451   :  { %5546 = vmatmul.mubr.msk.bf16.gmra.mrb[64].mxu0 %vm455_vm4, %v2661_v25 }
0x1509   :  { %v5531_v35 = vpop.f32.mrb[52].mxu0 }
0x150a   :  { %v2729_v37 = vadd.f32 %v5531_v35, %v7232_v31  ;;  %v2720_v38 = vpop.f32.mrb[53].mxu0 }
0x150b   :  { %v2721_v39 = vadd.f32 %v7232_v31, %v2720_v38  ;;  %v5532_v40 = vpop.f32.mrb[54].mxu0 }
0x150c   :  { %v2753_v43 = vmax.f32 %v2729_v37, 0.0  ;;  %5911 = vtanh.f32 %v2729_v37  ;;  %v2732_v44 = vadd.f32 %v5532_v40, %v7232_v31  ;;  %v2723_v50 = vpop.f32.mrb[55].mxu0 }
0x150d   :  { %v2751_v48 = vmax.f32 %v2721_v39, 0.0  ;;  %5913 = vtanh.f32 %v2721_v39  ;;  %v2724_v52 = vadd.f32 %v7232_v31, %v2723_v50 }
0x150e   :  { %v2786_v12 = vadd.f32 %v2778_v51, %v2753_v43  ;;  %v2754_v32 = vmax.f32 %v2732_v44, 0.0  ;;  %5915 = vtanh.f32 %v2732_v44 }
0x150f   :  { %v2784_v57 = vadd.f32 %v2776_v55, %v2751_v48  ;;  %v2752_v60 = vmax.f32 %v2724_v52, 0.0  ;;  %5917 = vtanh.f32 %v2724_v52 }
0x1510   :  { %v2787_v16 = vadd.f32 %v2779_v58, %v2754_v32  ;;  %v2794_v4 = vmul.f32 0.5, %v2786_v12 }
0x1511   :  { %v2785_v5 = vadd.f32 %v2777_v1, %v2752_v60  ;;  %v2792_v10 = vmul.f32 0.5, %v2784_v57 }
0x1512   :  { %v2795_v45 = vmul.f32 0.5, %v2787_v16 }
0x1513   :  { %v2793_v14 = vmul.f32 0.5, %v2785_v5 }
0x1514   :  { %v2801_v0 = vpack.c.bf16 %v2795_v45, %v2794_v4  ;;  %v5535_v3 = vpop.f32.mrb[56].mxu0 }
0x1515   :  { %v2800_v13 = vpack.c.bf16 %v2793_v14, %v2792_v10  ;;  %v2745_v23 = vadd.f32 %v5535_v3, %v7232_v31  ;;  %v2736_v63 = vpop.f32.mrb[57].mxu0 }
0x1516   :  { %v5912_v61 = vpop.eup %5911  ;;  %v2737_v29 = vadd.f32 %v7232_v31, %v2736_v63  ;;  %v5536_v33 = vpop.f32.mrb[58].mxu0 }
0x1517   :  { %v5914_v36 = vpop.eup %5913  ;;  %2769 = vst [vmem:[#allocation5 + $0x10] sm:$0xff] %v5912_v61  ;;  %v2757_v34 = vmax.f32 %v2745_v23, 0.0  ;;  %5919 = vtanh.f32 %v2745_v23  ;;  %v2748_v47 = vadd.f32 %v5536_v33, %v7232_v31  ;;  %v2739_v42 = vpop.f32.mrb[59].mxu0  ;;  %5553 = vmatprep.mubr.msk.bf16.mxu0 %vm455_vm4, %v2800_v13 }
0x1518   :  { %v5916_v49 = vpop.eup %5915  ;;  %2767 = vst [vmem:[#allocation5] sm:$0xff] %v5914_v36  ;;  %v2755_v6 = vmax.f32 %v2737_v29, 0.0  ;;  %5921 = vtanh.f32 %v2737_v29  ;;  %v2740_v56 = vadd.f32 %v7232_v31, %v2739_v42  ;;  %5554 = vmatmul.mubr.msk.bf16.vlgmr.msra.gmra.mrb[60].mxu0 %vm455_vm4, %v2801_v0 }
0x1519   :  { %v5918_v41 = vpop.eup %5917  ;;  %2770 = vst [vmem:[#allocation5 + $0x18] sm:$0xff] %v5916_v49  ;;  %v2790_v46 = vadd.f32 %v2782_v7, %v2757_v34  ;;  %v2758_v19 = vmax.f32 %v2748_v47, 0.0  ;;  %5923 = vtanh.f32 %v2748_v47 }
0x151a   :  { %2768 = vst [vmem:[#allocation5 + $0x8] sm:$0xff] %v5918_v41  ;;  %v2788_v17 = vadd.f32 %v2780_v30, %v2755_v6  ;;  %v2756_v18 = vmax.f32 %v2740_v56, 0.0  ;;  %5925 = vtanh.f32 %v2740_v56 }
0x151b   :  { %v2791_v59 = vadd.f32 %v2783_v9, %v2758_v19  ;;  %v2798_v54 = vmul.f32 0.5, %v2790_v46 }
0x151c   :  { %v2789_v22 = vadd.f32 %v2781_v21, %v2756_v18  ;;  %v2796_v26 = vmul.f32 0.5, %v2788_v17 }
0x151d   :  { %v2799_v25 = vmul.f32 0.5, %v2791_v59 }
0x151e   :  { %v2797_v27 = vmul.f32 0.5, %v2789_v22 }
0x151f   :  { %v2803_v35 = vpack.c.bf16 %v2799_v25, %v2798_v54 }
0x1520   :  { %v2802_v37 = vpack.c.bf16 %v2797_v27, %v2796_v26 }
0x1521   :  { %v5920_v38 = vpop.eup %5919 }
0x1522   :  { %v5922_v39 = vpop.eup %5921  ;;  %2773 = vst [vmem:[#allocation5 + $0x30] sm:$0xff] %v5920_v38  ;;  %5557 = vmatprep.mubr.msk.bf16.mxu0 %vm455_vm4, %v2802_v37 }
0x1523   :  { %v5924_v40 = vpop.eup %5923  ;;  %2771 = vst [vmem:[#allocation5 + $0x20] sm:$0xff] %v5922_v39  ;;  %5558 = vmatmul.mubr.msk.bf16.gmra.mrb[64].mxu0 %vm455_vm4, %v2803_v35 }
0x1524   :  { %v5926_v43 = vpop.eup %5925  ;;  %2774 = vst [vmem:[#allocation5 + $0x38] sm:$0xff] %v5924_v40 }
0x1525   :  { %2772 = vst [vmem:[#allocation5 + $0x28] sm:$0xff] %v5926_v43 }
0x15eb   :  { %v5555_v44 = vpop.f32.mrb[60].mxu0 }
0x15ec   :  { %v2947_v50 = vpop.f32.mrb[61].mxu0  ;;  %v7255_v55 = vadd.f32 %v5555_v44, %v7045_v2 }
0x15ed   :  { %v7247_v51 = vadd.f32 %v7045_v2, %v2947_v50  ;;  %v5556_v48 = vpop.f32.mrb[62].mxu0 }
0x15ee   :  { %v2950_v52 = vpop.f32.mrb[63].mxu0  ;;  %v7260_v32 = vadd.f32 %v5556_v48, %v7045_v2  ;;  %v5154_v0 = vmul.f32 -1.442695, %v7255_v55 }
0x15ef   :  { %v7250_v12 = vadd.f32 %v7045_v2, %v2950_v52  ;;  %3042 = vrot.lane.b32.xlu1 %v7247_v51, %s6212_s19  ;;  %v5152_v10 = vmul.f32 -1.442695, %v7247_v51 }
0x15f0   :  { %v5155_v3 = vmul.f32 -1.442695, %v7260_v32 }
0x15f1   :  { %3044 = vrot.lane.b32.xlu0 %v7250_v12, %s6212_s19  ;;  %v5153_v14 = vmul.f32 -1.442695, %v7250_v12  ;;  %5927 = vpow2.f32 %v5152_v10 }
0x15f3   :  { %3046 = vrot.lane.b32.xlu1 %v7255_v55, %s6212_s19  ;;  %5929 = vpow2.f32 %v5153_v14 }
0x15f4   :  { %5931 = vpow2.f32 %v5154_v0 }
0x15f5   :  { %3048 = vrot.lane.b32.xlu0 %v7260_v32, %s6212_s19  ;;  %5933 = vpow2.f32 %v5155_v3 }
0x15f6   :  { %v5559_v57 = vpop.f32.mrb[64].mxu0 }
0x15f7   :  { %v2963_v58 = vpop.f32.mrb[65].mxu0  ;;  %v7275_v4 = vadd.f32 %v5559_v57, %v7045_v2 }
0x15f8   :  { %v7267_v60 = vadd.f32 %v7045_v2, %v2963_v58  ;;  %v5560_v16 = vpop.f32.mrb[66].mxu0 }
0x15f9   :  { %v2966_v1 = vpop.f32.mrb[67].mxu0  ;;  %v7280_v45 = vadd.f32 %v5560_v16, %v7045_v2  ;;  %v5158_v63 = vmul.f32 -1.442695, %v7275_v4 }
0x15fa   :  { %v7270_v5 = vadd.f32 %v7045_v2, %v2966_v1  ;;  %3050 = vrot.lane.b32.xlu1 %v7267_v60, %s6212_s19  ;;  %v5156_v2 = vmul.f32 -1.442695, %v7267_v60 }
0x15fb   :  { %v5928_v13 = vpop.eup %5927  ;;  %v5159_v33 = vmul.f32 -1.442695, %v7280_v45 }
0x15fc   :  { %3052 = vrot.lane.b32.xlu0 %v7270_v5, %s6212_s19  ;;  %v5157_v23 = vmul.f32 -1.442695, %v7270_v5  ;;  %5935 = vpow2.f32 %v5156_v2  ;;  %v3010_v29 = vadd.f32 1.0, %v5928_v13 }
0x15fd   :  { %v5930_v61 = vpop.eup %5929 }
0x15fe   :  { %3054 = vrot.lane.b32.xlu1 %v7275_v4, %s6212_s19  ;;  %5937 = vpow2.f32 %v5157_v23  ;;  %v5932_v36 = vpop.eup %5931  ;;  %v3011_v34 = vadd.f32 1.0, %v5930_v61 }
0x15ff   :  { %5939 = vpow2.f32 %v5158_v63  ;;  %v5934_v47 = vpop.eup %5933  ;;  %v3012_v42 = vadd.f32 1.0, %v5932_v36 }
0x1600   :  { %3056 = vrot.lane.b32.xlu0 %v7280_v45, %s6212_s19  ;;  %5941 = vrcp.f32 %v3010_v29  ;;  %v3013_v49 = vadd.f32 1.0, %v5934_v47 }
0x1601   :  { %5943 = vpow2.f32 %v5159_v33 }
0x1602   :  { %5945 = vrcp.f32 %v3011_v34 }
0x1603   :  { %5947 = vrcp.f32 %v3012_v42 }
0x1604   :  { %5949 = vrcp.f32 %v3013_v49 }
0x1606   :  { %v5936_v7 = vpop.eup %5935 }
0x1607   :  { %v3014_v56 = vadd.f32 1.0, %v5936_v7  ;;  %v5795_v7 = vld [vmem:[%s7974_s16] sm:$0xff]  }
0x1608   :  { %v5938_v6 = vpop.eup %5937  ;;  %5561 = vmatprep.subr.bf16.mxu1 %v5795_v7 }
0x1609   :  { %v5940_v41 = vpop.eup %5939  ;;  %v3015_v30 = vadd.f32 1.0, %v5938_v6  ;;  %5951 = vrcp.f32 %v3014_v56  ;;  %5562 = vmatpush3.bf16.msra.mxu1 %v5795_v7 }
0x160a   :  { %v7294_v46 = vpop.eup %5941  ;;  %v3016_v9 = vadd.f32 1.0, %v5940_v41 }
0x160b   :  { %v5944_v19 = vpop.eup %5943  ;;  %5953 = vrcp.f32 %v3015_v30  ;;  %v3122_v41 = vsub.f32 1.0, %v7294_v46 }
0x160c   :  { %v7297_v59 = vpop.eup %5945  ;;  %v3017_v22 = vadd.f32 1.0, %v5944_v19  ;;  %5955 = vrcp.f32 %v3016_v9 }
0x160d   :  { %v7301_v25 = vpop.eup %5947 }
0x160e   :  { %v7305_v35 = vpop.eup %5949  ;;  %5957 = vrcp.f32 %v3017_v22 }
0x1613   :  { %v7310_v39 = vpop.eup %5951 }
0x1615   :  { %v7313_v44 = vpop.eup %5953 }
0x1616   :  { %v7317_v52 = vpop.eup %5955 }
0x1618   :  { %v7321_v16 = vpop.eup %5957 }
0x1661   :  { %v3043_v17 = vpop.permute.xlu1 %3042 }
0x1662   :  { %v3066_v18 = vmul.f32 %v7294_v46, %v3043_v17  ;;  %v3123_v17 = vsub.f32 1.0, %v7297_v59 }
0x1663   :  { %v3045_v21 = vpop.permute.xlu0 %3044 }
0x1664   :  { %v3067_v54 = vmul.f32 %v7297_v59, %v3045_v21  ;;  %3082 = vrot.lane.b32.xlu1 %v3066_v18, %s6214_s12  ;;  %v3170_v18 = vmul.f32 %v7294_v46, %v7179_v15  ;;  %v3171_v21 = vmul.f32 %v7297_v59, %v7181_v20  ;;  %v3172_v15 = vmul.f32 %v7301_v25, %v7170_v62  ;;  %v5797_v62 = vld [vmem:[%s7972_s14] sm:$0xff]  }
0x1665   :  { %v3047_v26 = vpop.permute.xlu1 %3046  ;;  %v3173_v20 = vmul.f32 %v7305_v35, %v7172_v53  ;;  %v3127_v53 = vsub.f32 1.0, %v7313_v44 }
0x1666   :  { %v3068_v27 = vmul.f32 %v7301_v25, %v3047_v26  ;;  %3084 = vrot.lane.b32.xlu0 %v3067_v54, %s6214_s12  ;;  %v3124_v54 = vsub.f32 1.0, %v7301_v25 }
0x1667   :  { %v3049_v37 = vpop.permute.xlu0 %3048 }
0x1668   :  { %v3069_v38 = vmul.f32 %v7305_v35, %v3049_v37  ;;  %3086 = vrot.lane.b32.xlu1 %v3068_v27, %s6214_s12 }
0x166a   :  { %3088 = vrot.lane.b32.xlu0 %v3069_v38, %s6214_s12 }
0x166c   :  { %v3051_v40 = vpop.permute.xlu1 %3050 }
0x166d   :  { %v3070_v43 = vmul.f32 %v7310_v39, %v3051_v40  ;;  %v3125_v40 = vsub.f32 1.0, %v7305_v35 }
0x166e   :  { %v3053_v50 = vpop.permute.xlu0 %3052 }
0x166f   :  { %v3071_v48 = vmul.f32 %v7313_v44, %v3053_v50  ;;  %3090 = vrot.lane.b32.xlu1 %v3070_v43, %s6214_s12 }
0x1670   :  { %v3055_v57 = vpop.permute.xlu1 %3054 }
0x1671   :  { %v3072_v58 = vmul.f32 %v7317_v52, %v3055_v57  ;;  %3092 = vrot.lane.b32.xlu0 %v3071_v48, %s6214_s12  ;;  %v3126_v57 = vsub.f32 1.0, %v7310_v39 }
0x1672   :  { %v3057_v1 = vpop.permute.xlu0 %3056 }
0x1673   :  { %v3073_v10 = vmul.f32 %v7321_v16, %v3057_v1  ;;  %3094 = vrot.lane.b32.xlu1 %v3072_v58, %s6214_s12 }
0x1675   :  { %3096 = vrot.lane.b32.xlu0 %v3073_v10, %s6214_s12  ;;  %v3174_v10 = vmul.f32 %v7310_v39, %v7196_v28  ;;  %v3176_v28 = vmul.f32 %v7317_v52, %v7204_v11  ;;  %v5798_v11 = vld [vmem:[%s7972_s14 + $0x8] sm:$0xff]  }
0x16d6   :  { %v3083_v14 = vpop.permute.xlu1 %3082 }
0x16d7   :  { %v3106_v0 = vadd.f32 %v3083_v14, %v7247_v51  ;;  %v3175_v14 = vmul.f32 %v7313_v44, %v7198_v8  ;;  %v3177_v8 = vmul.f32 %v7321_v16, %v7206_v24 }
0x16d8   :  { %v3085_v3 = vpop.permute.xlu0 %3084 }
0x16d9   :  { %5959 = vtanh.f32 %v3106_v0  ;;  %v3107_v2 = vadd.f32 %v3085_v3, %v7250_v12  ;;  %v3128_v3 = vsub.f32 1.0, %v7317_v52 }
0x16da   :  { %v3087_v13 = vpop.permute.xlu1 %3086 }
0x16db   :  { %5961 = vtanh.f32 %v3107_v2  ;;  %v3108_v23 = vadd.f32 %v3087_v13, %v7255_v55 }
0x16dc   :  { %v3089_v63 = vpop.permute.xlu0 %3088 }
0x16dd   :  { %5963 = vtanh.f32 %v3108_v23  ;;  %v3109_v61 = vadd.f32 %v3089_v63, %v7260_v32 }
0x16df   :  { %5965 = vtanh.f32 %v3109_v61  ;;  %v3129_v61 = vsub.f32 1.0, %v7321_v16 }
0x16e1   :  { %v3091_v29 = vpop.permute.xlu1 %3090 }
0x16e2   :  { %v3110_v33 = vadd.f32 %v3091_v29, %v7267_v60 }
0x16e3   :  { %v5960_v36 = vpop.eup %5959  ;;  %v3093_v34 = vpop.permute.xlu0 %3092 }
0x16e4   :  { %5967 = vtanh.f32 %v3110_v33  ;;  %v3111_v51 = vadd.f32 %v3093_v34, %v7270_v5  ;;  %3138 = vrot.lane.b32.xlu1 %v5960_v36, %s6215_s11 }
0x16e5   :  { %v5962_v12 = vpop.eup %5961  ;;  %v3095_v47 = vpop.permute.xlu1 %3094 }
0x16e6   :  { %5969 = vtanh.f32 %v3111_v51  ;;  %v3112_v55 = vadd.f32 %v3095_v47, %v7275_v4  ;;  %3140 = vrot.lane.b32.xlu0 %v5962_v12, %s6215_s11  ;;  %v5796_v4 = vld [vmem:[%s7974_s16 + $0x8] sm:$0xff]   ;;  %v5799_v12 = vld [vmem:[%s7971_s13] sm:$0xff]  }
0x16e7   :  { %v5964_v42 = vpop.eup %5963  ;;  %v3097_v32 = vpop.permute.xlu0 %3096  ;;  %5563 = vmatprep.subr.bf16.mxu1 %v5796_v4  ;;  %v5800_v47 = vld [vmem:[%s7971_s13 + $0x8] sm:$0xff]  }
0x16e8   :  { %5971 = vtanh.f32 %v3112_v55  ;;  %v3113_v49 = vadd.f32 %v3097_v32, %v7280_v45  ;;  %3142 = vrot.lane.b32.xlu1 %v5964_v42, %s6215_s11  ;;  %5564 = vmatpush3.bf16.msra.mxu1 %v5796_v4 }
0x16e9   :  { %v5966_v60 = vpop.eup %5965  ;;  %5573 = vmatprep.subr.bf16.mxu1 %v5797_v62 }
0x16ea   :  { %5973 = vtanh.f32 %v3113_v49  ;;  %3144 = vrot.lane.b32.xlu0 %v5966_v60, %s6215_s11 }
0x16ee   :  { %v5968_v5 = vpop.eup %5967 }
0x16ef   :  { %3146 = vrot.lane.b32.xlu1 %v5968_v5, %s6215_s11 }
0x16f0   :  { %v5970_v6 = vpop.eup %5969 }
0x16f1   :  { %3148 = vrot.lane.b32.xlu0 %v5970_v6, %s6215_s11  ;;  %v3323_v6 = vld [vmem:[#allocation3 + $0x90] sm:$0xff] }
0x16f2   :  { %v5972_v45 = vpop.eup %5971 }
0x16f3   :  { %3150 = vrot.lane.b32.xlu1 %v5972_v45, %s6215_s11 }
0x16f4   :  { %v5974_v56 = vpop.eup %5973 }
0x16f5   :  { %3152 = vrot.lane.b32.xlu0 %v5974_v56, %s6215_s11 }
0x1756   :  { %v3139_v30 = vpop.permute.xlu1 %3138 }
0x1757   :  { %v3162_v19 = vmul.f32 %v3139_v30, %v3122_v41  ;;  %v3321_v30 = vld [vmem:[#allocation3 + $0x80] sm:$0xff] }
0x1758   :  { %v3141_v9 = vpop.permute.xlu0 %3140 }
0x1759   :  { %v3163_v22 = vmul.f32 %v3141_v9, %v3123_v17  ;;  %v7355_v27 = vadd.f32 %v3170_v18, %v3162_v19  ;;  %v3324_v9 = vld [vmem:[#allocation3 + $0x98] sm:$0xff] }
0x175a   :  { %v3143_v26 = vpop.permute.xlu1 %3142 }
0x175b   :  { %v7357_v37 = vadd.f32 %v3171_v21, %v3163_v22  ;;  %v3164_v38 = vmul.f32 %v3143_v26, %v3124_v54  ;;  %v3322_v22 = vld [vmem:[#allocation3 + $0x88] sm:$0xff] }
0x175c   :  { %v3145_v43 = vpop.permute.xlu0 %3144 }
0x175d   :  { %v3186_v50 = vpack.c.bf16 %v7357_v37, %v7355_v27  ;;  %v3165_v46 = vmul.f32 %v3145_v43, %v3125_v40  ;;  %v7366_v59 = vadd.f32 %v3172_v15, %v3164_v38 }
0x175f   :  { %v7368_v48 = vadd.f32 %v3173_v20, %v3165_v46  ;;  %3198 = vrot.lane.b32.xlu1 %v3186_v50, %s6215_s11 }
0x1761   :  { %v3187_v58 = vpack.c.bf16 %v7368_v48, %v7366_v59  ;;  %v3147_v1 = vpop.permute.xlu1 %3146 }
0x1762   :  { %v3166_v25 = vmul.f32 %v3147_v1, %v3126_v57 }
0x1763   :  { %3200 = vrot.lane.b32.xlu0 %v3187_v58, %s6215_s11  ;;  %v3149_v35 = vpop.permute.xlu0 %3148 }
0x1764   :  { %v3167_v0 = vmul.f32 %v3149_v35, %v3127_v53  ;;  %v7384_v13 = vadd.f32 %v3174_v10, %v3166_v25 }
0x1765   :  { %v3151_v2 = vpop.permute.xlu1 %3150 }
0x1766   :  { %v7386_v23 = vadd.f32 %v3175_v14, %v3167_v0  ;;  %v3168_v63 = vmul.f32 %v3151_v2, %v3128_v3  ;;  %v3327_v0 = vld [vmem:[#allocation3 + $0xb0] sm:$0xff] }
0x1767   :  { %v3153_v29 = vpop.permute.xlu0 %3152 }
0x1768   :  { %v3188_v33 = vpack.c.bf16 %v7386_v23, %v7384_v13  ;;  %v3169_v39 = vmul.f32 %v3153_v29, %v3129_v61  ;;  %v7395_v44 = vadd.f32 %v3176_v28, %v3168_v63  ;;  %v3325_v29 = vld [vmem:[#allocation3 + $0xa0] sm:$0xff] }
0x176a   :  { %v7397_v36 = vadd.f32 %v3177_v8, %v3169_v39  ;;  %3202 = vrot.lane.b32.xlu1 %v3188_v33, %s6215_s11  ;;  %v3328_v8 = vld [vmem:[#allocation3 + $0xb8] sm:$0xff] }
0x176c   :  { %v3189_v34 = vpack.c.bf16 %v7397_v36, %v7395_v44 }
0x176e   :  { %3204 = vrot.lane.b32.xlu0 %v3189_v34, %s6215_s11 }
0x17d1   :  { %v3199_v51 = vpop.permute.xlu1 %3198 }
0x17d2   :  { %5565 = vmatprep.mubr.msk.bf16.mxu1 %vm455_vm4, %v3199_v51 }
0x17d5   :  { %v3201_v24 = vpop.permute.xlu0 %3200 }
0x17d6   :  { %5566 = vmatmul.mubr.msk.bf16.vlgmr.msra.gmra.mrb[64].mxu1 %vm455_vm4, %v3201_v24 }
0x17d7   :  { %5574 = vmatpush3.bf16.msra.mxu1 %v5797_v62 }
0x17d8   :  { %5575 = vmatprep.subr.bf16.mxu1 %v5798_v11 }
0x17db   :  { %5576 = vmatpush3.bf16.msra.mxu1 %v5798_v11 }
0x17dc   :  { %v3203_v52 = vpop.permute.xlu1 %3202  ;;  %5585 = vmatprep.subr.bf16.mxu1 %v5799_v12 }
0x17dd   :  { %5569 = vmatprep.mubr.msk.bf16.mxu1 %vm455_vm4, %v3203_v52 }
0x17e0   :  { %v3205_v16 = vpop.permute.xlu0 %3204 }
0x17e1   :  { %5570 = vmatmul.mubr.msk.bf16.gmra.mrb[68].mxu1 %vm455_vm4, %v3205_v16 }
0x17e2   :  { %5577 = vmatprep.mubr.msk.bf16.mxu1 %vm455_vm4, %v3199_v51  ;;  %v3326_v51 = vld [vmem:[#allocation3 + $0xa8] sm:$0xff] }
0x17e9   :  { %5578 = vmatmul.mubr.msk.bf16.vlgmr.msra.gmra.mrb[72].mxu1 %vm455_vm4, %v3201_v24 }
0x17ea   :  { %5581 = vmatprep.mubr.msk.bf16.mxu1 %vm455_vm4, %v3203_v52  ;;  %5586 = vmatpush3.bf16.msra.mxu1 %v5799_v12 }
0x17eb   :  { %5587 = vmatprep.subr.bf16.mxu1 %v5800_v47 }
0x17ee   :  { %5588 = vmatpush3.bf16.msra.mxu1 %v5800_v47 }
0x17f1   :  { %5582 = vmatmul.mubr.msk.bf16.gmra.mrb[76].mxu1 %vm455_vm4, %v3205_v16 }
0x18a9   :  { %v5567_v55 = vpop.f32.mrb[64].mxu1 }
0x18aa   :  { %v3273_v42 = vadd.f32 %v5567_v55, %v7232_v31  ;;  %v3264_v32 = vpop.f32.mrb[65].mxu1 }
0x18ab   :  { %v3265_v49 = vadd.f32 %v7232_v31, %v3264_v32  ;;  %v5568_v60 = vpop.f32.mrb[66].mxu1 }
0x18ac   :  { %v3297_v5 = vmax.f32 %v3273_v42, 0.0  ;;  %5975 = vtanh.f32 %v3273_v42  ;;  %v3276_v7 = vadd.f32 %v5568_v60, %v7232_v31  ;;  %v3267_v4 = vpop.f32.mrb[67].mxu1 }
0x18ad   :  { %v3295_v45 = vmax.f32 %v3265_v49, 0.0  ;;  %5977 = vtanh.f32 %v3265_v49  ;;  %v3268_v56 = vadd.f32 %v7232_v31, %v3267_v4 }
0x18ae   :  { %v3331_v41 = vadd.f32 %v3323_v6, %v3297_v5  ;;  %v3298_v19 = vmax.f32 %v3276_v7, 0.0  ;;  %5979 = vtanh.f32 %v3276_v7  ;;  %v7435_v7 = vld [vmem:[%s7973_s15] ss:$0 sm:$0xff] }
0x18af   :  { %v3329_v17 = vadd.f32 %v3321_v30, %v3295_v45  ;;  %v3296_v18 = vmax.f32 %v3268_v56, 0.0  ;;  %5981 = vtanh.f32 %v3268_v56 }
0x18b0   :  { %v3332_v21 = vadd.f32 %v3324_v9, %v3298_v19  ;;  %v3339_v26 = vmul.f32 0.5, %v3331_v41 }
0x18b1   :  { %v3330_v54 = vadd.f32 %v3322_v22, %v3296_v18  ;;  %v3337_v40 = vmul.f32 0.5, %v3329_v17 }
0x18b2   :  { %v3340_v38 = vmul.f32 0.5, %v3332_v21 }
0x18b3   :  { %v3338_v43 = vmul.f32 0.5, %v3330_v54 }
0x18b4   :  { %v3346_v50 = vpack.c.bf16 %v3340_v38, %v3339_v26  ;;  %v5571_v15 = vpop.f32.mrb[68].mxu1 }
0x18b5   :  { %v3345_v20 = vpack.c.bf16 %v3338_v43, %v3337_v40  ;;  %v3289_v46 = vadd.f32 %v5571_v15, %v7232_v31  ;;  %v3280_v57 = vpop.f32.mrb[69].mxu1 }
0x18b6   :  { %v5976_v58 = vpop.eup %5975  ;;  %v3281_v1 = vadd.f32 %v7232_v31, %v3280_v57  ;;  %v5572_v62 = vpop.f32.mrb[70].mxu1 }
0x18b7   :  { %v5978_v25 = vpop.eup %5977  ;;  %3314 = vst [vmem:[#allocation5 + $0x50] sm:$0xff] %v5976_v58  ;;  %v3301_v53 = vmax.f32 %v3289_v46, 0.0  ;;  %5983 = vtanh.f32 %v3289_v46  ;;  %v3292_v35 = vadd.f32 %v5572_v62, %v7232_v31  ;;  %v3283_v10 = vpop.f32.mrb[71].mxu1  ;;  %5589 = vmatprep.mubr.msk.bf16.mxu1 %vm455_vm4, %v3345_v20 }
0x18b8   :  { %v5980_v14 = vpop.eup %5979  ;;  %3312 = vst [vmem:[#allocation5 + $0x40] sm:$0xff] %v5978_v25  ;;  %v3299_v3 = vmax.f32 %v3281_v1, 0.0  ;;  %5985 = vtanh.f32 %v3281_v1  ;;  %v3284_v2 = vadd.f32 %v7232_v31, %v3283_v10  ;;  %5590 = vmatmul.mubr.msk.bf16.vlgmr.msra.gmra.mrb[72].mxu1 %vm455_vm4, %v3346_v50 }
0x18b9   :  { %v5982_v63 = vpop.eup %5981  ;;  %3315 = vst [vmem:[#allocation5 + $0x58] sm:$0xff] %v5980_v14  ;;  %v3335_v61 = vadd.f32 %v3327_v0, %v3301_v53  ;;  %v3302_v33 = vmax.f32 %v3292_v35, 0.0  ;;  %5987 = vtanh.f32 %v3292_v35 }
0x18ba   :  { %3313 = vst [vmem:[#allocation5 + $0x48] sm:$0xff] %v5982_v63  ;;  %v3333_v28 = vadd.f32 %v3325_v29, %v3299_v3  ;;  %v3300_v39 = vmax.f32 %v3284_v2, 0.0  ;;  %5989 = vtanh.f32 %v3284_v2 }
0x18bb   :  { %v3336_v34 = vadd.f32 %v3328_v8, %v3302_v33  ;;  %v3343_v24 = vmul.f32 0.5, %v3335_v61 }
0x18bc   :  { %v3334_v11 = vadd.f32 %v3326_v51, %v3300_v39  ;;  %v3341_v16 = vmul.f32 0.5, %v3333_v28 }
0x18bd   :  { %v3344_v52 = vmul.f32 0.5, %v3336_v34 }
0x18be   :  { %v3342_v31 = vmul.f32 0.5, %v3334_v11 }
0x18bf   :  { %v3348_v12 = vpack.c.bf16 %v3344_v52, %v3343_v24 }
0x18c0   :  { %v3347_v47 = vpack.c.bf16 %v3342_v31, %v3341_v16 }
0x18c1   :  { %v5984_v55 = vpop.eup %5983 }
0x18c2   :  { %v5986_v42 = vpop.eup %5985  ;;  %3318 = vst [vmem:[#allocation5 + $0x70] sm:$0xff] %v5984_v55  ;;  %5593 = vmatprep.mubr.msk.bf16.mxu1 %vm455_vm4, %v3347_v47 }
0x18c3   :  { %v5988_v32 = vpop.eup %5987  ;;  %3316 = vst [vmem:[#allocation5 + $0x60] sm:$0xff] %v5986_v42  ;;  %5594 = vmatmul.mubr.msk.bf16.gmra.mrb[76].mxu1 %vm455_vm4, %v3348_v12 }
0x18c4   :  { %v5990_v49 = vpop.eup %5989  ;;  %3319 = vst [vmem:[#allocation5 + $0x78] sm:$0xff] %v5988_v32 }
0x18c5   :  { %3317 = vst [vmem:[#allocation5 + $0x68] sm:$0xff] %v5990_v49 }
0x198b   :  { %v5591_v60 = vpop.f32.mrb[72].mxu1 }
0x198c   :  { %v3492_v5 = vpop.f32.mrb[73].mxu1  ;;  %v7446_v41 = vadd.f32 %v7435_v7, %v5591_v60 }
0x198d   :  { %v7438_v4 = vadd.f32 %v7435_v7, %v3492_v5  ;;  %v5592_v6 = vpop.f32.mrb[74].mxu1 }
0x198e   :  { %v3495_v45 = vpop.f32.mrb[75].mxu1  ;;  %v7451_v30 = vadd.f32 %v7435_v7, %v5592_v6  ;;  %v5180_v43 = vmul.f32 -1.442695, %v7446_v41 }
0x198f   :  { %v7441_v56 = vadd.f32 %v7435_v7, %v3495_v45  ;;  %3587 = vrot.lane.b32.xlu1 %v7438_v4, %s6212_s19  ;;  %v5178_v38 = vmul.f32 -1.442695, %v7438_v4 }
0x1990   :  { %v5181_v50 = vmul.f32 -1.442695, %v7451_v30 }
0x1991   :  { %3589 = vrot.lane.b32.xlu0 %v7441_v56, %s6212_s19  ;;  %v5179_v40 = vmul.f32 -1.442695, %v7441_v56  ;;  %5991 = vpow2.f32 %v5178_v38 }
0x1993   :  { %3591 = vrot.lane.b32.xlu1 %v7446_v41, %s6212_s19  ;;  %5993 = vpow2.f32 %v5179_v40 }
0x1994   :  { %5995 = vpow2.f32 %v5180_v43 }
0x1995   :  { %3593 = vrot.lane.b32.xlu0 %v7451_v30, %s6212_s19  ;;  %5997 = vpow2.f32 %v5181_v50 }
0x1996   :  { %v5595_v19 = vpop.f32.mrb[76].mxu1 }
0x1997   :  { %v3508_v17 = vpop.f32.mrb[77].mxu1  ;;  %v7466_v54 = vadd.f32 %v7435_v7, %v5595_v19 }
0x1998   :  { %v7458_v9 = vadd.f32 %v7435_v7, %v3508_v17  ;;  %v5596_v18 = vpop.f32.mrb[78].mxu1 }
0x1999   :  { %v3511_v21 = vpop.f32.mrb[79].mxu1  ;;  %v7471_v26 = vadd.f32 %v7435_v7, %v5596_v18  ;;  %v5184_v57 = vmul.f32 -1.442695, %v7466_v54 }
0x199a   :  { %v7461_v22 = vadd.f32 %v7435_v7, %v3511_v21  ;;  %3595 = vrot.lane.b32.xlu1 %v7458_v9, %s6212_s19  ;;  %v5182_v15 = vmul.f32 -1.442695, %v7458_v9 }
0x199b   :  { %v5992_v20 = vpop.eup %5991  ;;  %v5185_v62 = vmul.f32 -1.442695, %v7471_v26 }
0x199c   :  { %3597 = vrot.lane.b32.xlu0 %v7461_v22, %s6212_s19  ;;  %v5183_v46 = vmul.f32 -1.442695, %v7461_v22  ;;  %5999 = vpow2.f32 %v5182_v15  ;;  %v3555_v1 = vadd.f32 1.0, %v5992_v20 }
0x199d   :  { %v5994_v58 = vpop.eup %5993 }
0x199e   :  { %3599 = vrot.lane.b32.xlu1 %v7466_v54, %s6212_s19  ;;  %6001 = vpow2.f32 %v5183_v46  ;;  %v5996_v25 = vpop.eup %5995  ;;  %v3556_v53 = vadd.f32 1.0, %v5994_v58 }
0x199f   :  { %6003 = vpow2.f32 %v5184_v57  ;;  %v5998_v35 = vpop.eup %5997  ;;  %v3557_v10 = vadd.f32 1.0, %v5996_v25 }
0x19a0   :  { %3601 = vrot.lane.b32.xlu0 %v7471_v26, %s6212_s19  ;;  %6005 = vrcp.f32 %v3555_v1  ;;  %v3558_v14 = vadd.f32 1.0, %v5998_v35 }
0x19a1   :  { %6007 = vpow2.f32 %v5185_v62 }
0x19a2   :  { %6009 = vrcp.f32 %v3556_v53 }
0x19a3   :  { %6011 = vrcp.f32 %v3557_v10 }
0x19a4   :  { %6013 = vrcp.f32 %v3558_v14 }
0x19a6   :  { %v6000_v0 = vpop.eup %5999 }
0x19a7   :  { %v3559_v2 = vadd.f32 1.0, %v6000_v0  ;;  %v5801_v0 = vld [vmem:[%s7974_s16] sm:$0xff]  }
0x19a8   :  { %v6002_v3 = vpop.eup %6001  ;;  %5597 = vmatprep.subr.bf16.mxu0 %v5801_v0 }
0x19a9   :  { %v6004_v63 = vpop.eup %6003  ;;  %v3560_v29 = vadd.f32 1.0, %v6002_v3  ;;  %6015 = vrcp.f32 %v3559_v2  ;;  %5598 = vmatpush3.bf16.msra.mxu0 %v5801_v0 }
0x19aa   :  { %v7485_v61 = vpop.eup %6005  ;;  %v3561_v8 = vadd.f32 1.0, %v6004_v63 }
0x19ab   :  { %v6008_v33 = vpop.eup %6007  ;;  %6017 = vrcp.f32 %v3560_v29  ;;  %v3667_v63 = vsub.f32 1.0, %v7485_v61 }
0x19ac   :  { %v7488_v34 = vpop.eup %6009  ;;  %v3562_v11 = vadd.f32 1.0, %v6008_v33  ;;  %6019 = vrcp.f32 %v3561_v8 }
0x19ad   :  { %v7492_v52 = vpop.eup %6011 }
0x19ae   :  { %v7496_v12 = vpop.eup %6013  ;;  %6021 = vrcp.f32 %v3562_v11 }
0x19b3   :  { %v7501_v42 = vpop.eup %6015 }
0x19b5   :  { %v7504_v60 = vpop.eup %6017 }
0x19b6   :  { %v7508_v45 = vpop.eup %6019 }
0x19b8   :  { %v7512_v18 = vpop.eup %6021 }
0x1a01   :  { %v3588_v28 = vpop.permute.xlu1 %3587 }
0x1a02   :  { %v3611_v39 = vmul.f32 %v7485_v61, %v3588_v28  ;;  %v3668_v28 = vsub.f32 1.0, %v7488_v34 }
0x1a03   :  { %v3590_v51 = vpop.permute.xlu0 %3589 }
0x1a04   :  { %v3612_v24 = vmul.f32 %v7488_v34, %v3590_v51  ;;  %3627 = vrot.lane.b32.xlu1 %v3611_v39, %s6214_s12  ;;  %v3715_v39 = vmul.f32 %v7485_v61, %v7355_v27  ;;  %v3716_v51 = vmul.f32 %v7488_v34, %v7357_v37  ;;  %v3717_v27 = vmul.f32 %v7492_v52, %v7366_v59  ;;  %v5803_v59 = vld [vmem:[%s7972_s14] sm:$0xff]  }
0x1a05   :  { %v3592_v16 = vpop.permute.xlu1 %3591  ;;  %v3718_v37 = vmul.f32 %v7496_v12, %v7368_v48  ;;  %v3672_v48 = vsub.f32 1.0, %v7504_v60 }
0x1a06   :  { %v3613_v31 = vmul.f32 %v7492_v52, %v3592_v16  ;;  %3629 = vrot.lane.b32.xlu0 %v3612_v24, %s6214_s12  ;;  %v3669_v24 = vsub.f32 1.0, %v7492_v52 }
0x1a07   :  { %v3594_v47 = vpop.permute.xlu0 %3593 }
0x1a08   :  { %v3614_v55 = vmul.f32 %v7496_v12, %v3594_v47  ;;  %3631 = vrot.lane.b32.xlu1 %v3613_v31, %s6214_s12 }
0x1a0a   :  { %3633 = vrot.lane.b32.xlu0 %v3614_v55, %s6214_s12 }
0x1a0c   :  { %v3596_v32 = vpop.permute.xlu1 %3595 }
0x1a0d   :  { %v3615_v49 = vmul.f32 %v7501_v42, %v3596_v32  ;;  %v3670_v32 = vsub.f32 1.0, %v7496_v12 }
0x1a0e   :  { %v3598_v5 = vpop.permute.xlu0 %3597 }
0x1a0f   :  { %v3616_v6 = vmul.f32 %v7504_v60, %v3598_v5  ;;  %3635 = vrot.lane.b32.xlu1 %v3615_v49, %s6214_s12 }
0x1a10   :  { %v3600_v19 = vpop.permute.xlu1 %3599 }
0x1a11   :  { %v3617_v17 = vmul.f32 %v7508_v45, %v3600_v19  ;;  %3637 = vrot.lane.b32.xlu0 %v3616_v6, %s6214_s12  ;;  %v3671_v19 = vsub.f32 1.0, %v7501_v42 }
0x1a12   :  { %v3602_v21 = vpop.permute.xlu0 %3601 }
0x1a13   :  { %v3618_v38 = vmul.f32 %v7512_v18, %v3602_v21  ;;  %3639 = vrot.lane.b32.xlu1 %v3617_v17, %s6214_s12 }
0x1a15   :  { %3641 = vrot.lane.b32.xlu0 %v3618_v38, %s6214_s12  ;;  %v3719_v38 = vmul.f32 %v7501_v42, %v7384_v13  ;;  %v3721_v13 = vmul.f32 %v7508_v45, %v7395_v44  ;;  %v5804_v44 = vld [vmem:[%s7972_s14 + $0x8] sm:$0xff]  }
0x1a76   :  { %v3628_v40 = vpop.permute.xlu1 %3627 }
0x1a77   :  { %v3651_v43 = vadd.f32 %v3628_v40, %v7438_v4  ;;  %v3720_v40 = vmul.f32 %v7504_v60, %v7386_v23  ;;  %v3722_v23 = vmul.f32 %v7512_v18, %v7397_v36 }
0x1a78   :  { %v3630_v50 = vpop.permute.xlu0 %3629 }
0x1a79   :  { %6023 = vtanh.f32 %v3651_v43  ;;  %v3652_v15 = vadd.f32 %v3630_v50, %v7441_v56  ;;  %v3673_v50 = vsub.f32 1.0, %v7508_v45 }
0x1a7a   :  { %v3632_v20 = vpop.permute.xlu1 %3631 }
0x1a7b   :  { %6025 = vtanh.f32 %v3652_v15  ;;  %v3653_v46 = vadd.f32 %v3632_v20, %v7446_v41 }
0x1a7c   :  { %v3634_v57 = vpop.permute.xlu0 %3633 }
0x1a7d   :  { %6027 = vtanh.f32 %v3653_v46  ;;  %v3654_v58 = vadd.f32 %v3634_v57, %v7451_v30 }
0x1a7f   :  { %6029 = vtanh.f32 %v3654_v58  ;;  %v3674_v58 = vsub.f32 1.0, %v7512_v18 }
0x1a81   :  { %v3636_v1 = vpop.permute.xlu1 %3635 }
0x1a82   :  { %v3655_v62 = vadd.f32 %v3636_v1, %v7458_v9 }
0x1a83   :  { %v6024_v25 = vpop.eup %6023  ;;  %v3638_v53 = vpop.permute.xlu0 %3637 }
0x1a84   :  { %6031 = vtanh.f32 %v3655_v62  ;;  %v3656_v4 = vadd.f32 %v3638_v53, %v7461_v22  ;;  %3683 = vrot.lane.b32.xlu1 %v6024_v25, %s6215_s11 }
0x1a85   :  { %v6026_v56 = vpop.eup %6025  ;;  %v3640_v35 = vpop.permute.xlu1 %3639 }
0x1a86   :  { %6033 = vtanh.f32 %v3656_v4  ;;  %v3657_v41 = vadd.f32 %v3640_v35, %v7466_v54  ;;  %3685 = vrot.lane.b32.xlu0 %v6026_v56, %s6215_s11  ;;  %v5802_v54 = vld [vmem:[%s7974_s16 + $0x8] sm:$0xff]   ;;  %v5805_v56 = vld [vmem:[%s7971_s13] sm:$0xff]  }
0x1a87   :  { %v6028_v10 = vpop.eup %6027  ;;  %v3642_v30 = vpop.permute.xlu0 %3641  ;;  %5599 = vmatprep.subr.bf16.mxu0 %v5802_v54  ;;  %v5806_v35 = vld [vmem:[%s7971_s13 + $0x8] sm:$0xff]  }
0x1a88   :  { %6035 = vtanh.f32 %v3657_v41  ;;  %v3658_v14 = vadd.f32 %v3642_v30, %v7471_v26  ;;  %3687 = vrot.lane.b32.xlu1 %v6028_v10, %s6215_s11  ;;  %5600 = vmatpush3.bf16.msra.mxu0 %v5802_v54  ;;  %v7614_v10 = vld [vmem:[%s7975_s17] ss:$0 sm:$0xff] }
0x1a89   :  { %v6030_v9 = vpop.eup %6029  ;;  %5609 = vmatprep.subr.bf16.mxu0 %v5803_v59 }
0x1a8a   :  { %6037 = vtanh.f32 %v3658_v14  ;;  %3689 = vrot.lane.b32.xlu0 %v6030_v9, %s6215_s11 }
0x1a8e   :  { %v6032_v22 = vpop.eup %6031 }
0x1a8f   :  { %3691 = vrot.lane.b32.xlu1 %v6032_v22, %s6215_s11 }
0x1a90   :  { %v6034_v3 = vpop.eup %6033 }
0x1a91   :  { %3693 = vrot.lane.b32.xlu0 %v6034_v3, %s6215_s11 }
0x1a92   :  { %v6036_v26 = vpop.eup %6035 }
0x1a93   :  { %3695 = vrot.lane.b32.xlu1 %v6036_v26, %s6215_s11  ;;  %v3868_v26 = vld [vmem:[#allocation3 + $0xd0] sm:$0xff] }
0x1a94   :  { %v6038_v2 = vpop.eup %6037 }
0x1a95   :  { %3697 = vrot.lane.b32.xlu0 %v6038_v2, %s6215_s11 }
0x1af6   :  { %v3684_v29 = vpop.permute.xlu1 %3683 }
0x1af7   :  { %v3707_v33 = vmul.f32 %v3684_v29, %v3667_v63 }
0x1af8   :  { %v3686_v8 = vpop.permute.xlu0 %3685 }
0x1af9   :  { %v3708_v11 = vmul.f32 %v3686_v8, %v3668_v28  ;;  %v7546_v31 = vadd.f32 %v3715_v39, %v3707_v33  ;;  %v3866_v33 = vld [vmem:[#allocation3 + $0xc0] sm:$0xff]  ;;  %v3869_v39 = vld [vmem:[#allocation3 + $0xd8] sm:$0xff] }
0x1afa   :  { %v3688_v16 = vpop.permute.xlu1 %3687 }
0x1afb   :  { %v7548_v47 = vadd.f32 %v3716_v51, %v3708_v11  ;;  %v3709_v55 = vmul.f32 %v3688_v16, %v3669_v24  ;;  %v3867_v24 = vld [vmem:[#allocation3 + $0xc8] sm:$0xff] }
0x1afc   :  { %v3690_v49 = vpop.permute.xlu0 %3689 }
0x1afd   :  { %v3731_v5 = vpack.c.bf16 %v7548_v47, %v7546_v31  ;;  %v3710_v61 = vmul.f32 %v3690_v49, %v3670_v32  ;;  %v7557_v34 = vadd.f32 %v3717_v27, %v3709_v55 }
0x1aff   :  { %v7559_v6 = vadd.f32 %v3718_v37, %v3710_v61  ;;  %3743 = vrot.lane.b32.xlu1 %v3731_v5, %s6215_s11 }
0x1b01   :  { %v3732_v17 = vpack.c.bf16 %v7559_v6, %v7557_v34  ;;  %v3692_v21 = vpop.permute.xlu1 %3691 }
0x1b02   :  { %v3711_v52 = vmul.f32 %v3692_v21, %v3671_v19 }
0x1b03   :  { %3745 = vrot.lane.b32.xlu0 %v3732_v17, %s6215_s11  ;;  %v3694_v12 = vpop.permute.xlu0 %3693 }
0x1b04   :  { %v3712_v43 = vmul.f32 %v3694_v12, %v3672_v48  ;;  %v7575_v20 = vadd.f32 %v3719_v38, %v3711_v52 }
0x1b05   :  { %v3696_v15 = vpop.permute.xlu1 %3695 }
0x1b06   :  { %v7577_v46 = vadd.f32 %v3720_v40, %v3712_v43  ;;  %v3713_v57 = vmul.f32 %v3696_v15, %v3673_v50  ;;  %v3872_v50 = vld [vmem:[#allocation3 + $0xf0] sm:$0xff] }
0x1b07   :  { %v3698_v1 = vpop.permute.xlu0 %3697 }
0x1b08   :  { %v3733_v62 = vpack.c.bf16 %v7577_v46, %v7575_v20  ;;  %v3714_v42 = vmul.f32 %v3698_v1, %v3674_v58  ;;  %v7586_v60 = vadd.f32 %v3721_v13, %v3713_v57 }
0x1b0a   :  { %v7588_v25 = vadd.f32 %v3722_v23, %v3714_v42  ;;  %3747 = vrot.lane.b32.xlu1 %v3733_v62, %s6215_s11  ;;  %v3870_v62 = vld [vmem:[#allocation3 + $0xe0] sm:$0xff]  ;;  %v3873_v42 = vld [vmem:[#allocation3 + $0xf8] sm:$0xff] }
0x1b0c   :  { %v3734_v53 = vpack.c.bf16 %v7588_v25, %v7586_v60 }
0x1b0e   :  { %3749 = vrot.lane.b32.xlu0 %v3734_v53, %s6215_s11 }
0x1b71   :  { %v3744_v4 = vpop.permute.xlu1 %3743 }
0x1b72   :  { %5601 = vmatprep.mubr.msk.bf16.mxu0 %vm455_vm4, %v3744_v4 }
0x1b75   :  { %v3746_v36 = vpop.permute.xlu0 %3745 }
0x1b76   :  { %5602 = vmatmul.mubr.msk.bf16.vlgmr.msra.gmra.mrb[68].mxu0 %vm455_vm4, %v3746_v36 }
0x1b77   :  { %5610 = vmatpush3.bf16.msra.mxu0 %v5803_v59 }
0x1b78   :  { %5611 = vmatprep.subr.bf16.mxu0 %v5804_v44 }
0x1b7b   :  { %5612 = vmatpush3.bf16.msra.mxu0 %v5804_v44  ;;  %v3871_v44 = vld [vmem:[#allocation3 + $0xe8] sm:$0xff] }
0x1b7c   :  { %v3748_v45 = vpop.permute.xlu1 %3747  ;;  %5621 = vmatprep.subr.bf16.mxu0 %v5805_v56 }
0x1b7d   :  { %5605 = vmatprep.mubr.msk.bf16.mxu0 %vm455_vm4, %v3748_v45 }
0x1b80   :  { %v3750_v18 = vpop.permute.xlu0 %3749 }
0x1b81   :  { %5606 = vmatmul.mubr.msk.bf16.gmra.mrb[72].mxu0 %vm455_vm4, %v3750_v18 }
0x1b82   :  { %5613 = vmatprep.mubr.msk.bf16.mxu0 %vm455_vm4, %v3744_v4 }
0x1b89   :  { %5614 = vmatmul.mubr.msk.bf16.vlgmr.msra.gmra.mrb[76].mxu0 %vm455_vm4, %v3746_v36 }
0x1b8a   :  { %5617 = vmatprep.mubr.msk.bf16.mxu0 %vm455_vm4, %v3748_v45  ;;  %5622 = vmatpush3.bf16.msra.mxu0 %v5805_v56 }
0x1b8b   :  { %5623 = vmatprep.subr.bf16.mxu0 %v5806_v35 }
0x1b8e   :  { %5624 = vmatpush3.bf16.msra.mxu0 %v5806_v35 }
0x1b91   :  { %5618 = vmatmul.mubr.msk.bf16.gmra.mrb[80].mxu0 %vm455_vm4, %v3750_v18 }
0x1c49   :  { %v5603_v41 = vpop.f32.mrb[68].mxu0 }
0x1c4a   :  { %v3818_v30 = vadd.f32 %v7614_v10, %v5603_v41  ;;  %v3809_v14 = vpop.f32.mrb[69].mxu0 }
0x1c4b   :  { %v3810_v9 = vadd.f32 %v7614_v10, %v3809_v14  ;;  %v5604_v22 = vpop.f32.mrb[70].mxu0 }
0x1c4c   :  { %v3842_v0 = vmax.f32 %v3818_v30, 0.0  ;;  %6039 = vtanh.f32 %v3818_v30  ;;  %v3821_v54 = vadd.f32 %v7614_v10, %v5604_v22  ;;  %v3812_v3 = vpop.f32.mrb[71].mxu0 }
0x1c4d   :  { %v3840_v2 = vmax.f32 %v3810_v9, 0.0  ;;  %6041 = vtanh.f32 %v3810_v9  ;;  %v3813_v63 = vadd.f32 %v7614_v10, %v3812_v3 }
0x1c4e   :  { %v3876_v29 = vadd.f32 %v3868_v26, %v3842_v0  ;;  %v3843_v28 = vmax.f32 %v3821_v54, 0.0  ;;  %6043 = vtanh.f32 %v3821_v54 }
0x1c4f   :  { %v3874_v8 = vadd.f32 %v3866_v33, %v3840_v2  ;;  %v3841_v51 = vmax.f32 %v3813_v63, 0.0  ;;  %6045 = vtanh.f32 %v3813_v63 }
0x1c50   :  { %v3877_v11 = vadd.f32 %v3869_v39, %v3843_v28  ;;  %v3884_v55 = vmul.f32 0.5, %v3876_v29 }
0x1c51   :  { %v3875_v16 = vadd.f32 %v3867_v24, %v3841_v51  ;;  %v3882_v49 = vmul.f32 0.5, %v3874_v8 }
0x1c52   :  { %v3885_v32 = vmul.f32 0.5, %v3877_v11 }
0x1c53   :  { %v3883_v5 = vmul.f32 0.5, %v3875_v16 }
0x1c54   :  { %v3891_v27 = vpack.c.bf16 %v3885_v32, %v3884_v55  ;;  %v5607_v37 = vpop.f32.mrb[72].mxu0 }
0x1c55   :  { %v3890_v61 = vpack.c.bf16 %v3883_v5, %v3882_v49  ;;  %v3834_v19 = vadd.f32 %v7614_v10, %v5607_v37  ;;  %v3825_v17 = vpop.f32.mrb[73].mxu0 }
0x1c56   :  { %v6040_v21 = vpop.eup %6039  ;;  %v3826_v59 = vadd.f32 %v7614_v10, %v3825_v17  ;;  %v5608_v52 = vpop.f32.mrb[74].mxu0 }
0x1c57   :  { %v6042_v48 = vpop.eup %6041  ;;  %3859 = vst [vmem:[#allocation5 + $0x90] sm:$0xff] %v6040_v21  ;;  %v3846_v12 = vmax.f32 %v3834_v19, 0.0  ;;  %6047 = vtanh.f32 %v3834_v19  ;;  %v3837_v38 = vadd.f32 %v7614_v10, %v5608_v52  ;;  %v3828_v40 = vpop.f32.mrb[75].mxu0  ;;  %5625 = vmatprep.mubr.msk.bf16.mxu0 %vm455_vm4, %v3890_v61 }
0x1c58   :  { %v6044_v43 = vpop.eup %6043  ;;  %3857 = vst [vmem:[#allocation5 + $0x80] sm:$0xff] %v6042_v48  ;;  %v3844_v15 = vmax.f32 %v3826_v59, 0.0  ;;  %6049 = vtanh.f32 %v3826_v59  ;;  %v3829_v57 = vadd.f32 %v7614_v10, %v3828_v40  ;;  %5626 = vmatmul.mubr.msk.bf16.vlgmr.msra.gmra.mrb[76].mxu0 %vm455_vm4, %v3891_v27 }
0x1c59   :  { %v6046_v58 = vpop.eup %6045  ;;  %3860 = vst [vmem:[#allocation5 + $0x98] sm:$0xff] %v6044_v43  ;;  %v3880_v1 = vadd.f32 %v3872_v50, %v3846_v12  ;;  %v3847_v13 = vmax.f32 %v3837_v38, 0.0  ;;  %6051 = vtanh.f32 %v3837_v38 }
0x1c5a   :  { %3858 = vst [vmem:[#allocation5 + $0x88] sm:$0xff] %v6046_v58  ;;  %v3878_v23 = vadd.f32 %v3870_v62, %v3844_v15  ;;  %v3845_v53 = vmax.f32 %v3829_v57, 0.0  ;;  %6053 = vtanh.f32 %v3829_v57 }
0x1c5b   :  { %v3881_v4 = vadd.f32 %v3873_v42, %v3847_v13  ;;  %v3888_v45 = vmul.f32 0.5, %v3880_v1 }
0x1c5c   :  { %v3879_v36 = vadd.f32 %v3871_v44, %v3845_v53  ;;  %v3886_v56 = vmul.f32 0.5, %v3878_v23 }
0x1c5d   :  { %v3889_v18 = vmul.f32 0.5, %v3881_v4 }
0x1c5e   :  { %v3887_v35 = vmul.f32 0.5, %v3879_v36 }
0x1c5f   :  { %v3893_v41 = vpack.c.bf16 %v3889_v18, %v3888_v45 }
0x1c60   :  { %v3892_v30 = vpack.c.bf16 %v3887_v35, %v3886_v56 }
0x1c61   :  { %v6048_v14 = vpop.eup %6047 }
0x1c62   :  { %v6050_v9 = vpop.eup %6049  ;;  %3863 = vst [vmem:[#allocation5 + $0xb0] sm:$0xff] %v6048_v14  ;;  %5629 = vmatprep.mubr.msk.bf16.mxu0 %vm455_vm4, %v3892_v30 }
0x1c63   :  { %v6052_v22 = vpop.eup %6051  ;;  %3861 = vst [vmem:[#allocation5 + $0xa0] sm:$0xff] %v6050_v9  ;;  %5630 = vmatmul.mubr.msk.bf16.gmra.mrb[80].mxu0 %vm455_vm4, %v3893_v41 }
0x1c64   :  { %v6054_v0 = vpop.eup %6053  ;;  %3864 = vst [vmem:[#allocation5 + $0xb8] sm:$0xff] %v6052_v22 }
0x1c65   :  { %3862 = vst [vmem:[#allocation5 + $0xa8] sm:$0xff] %v6054_v0 }
0x1d2b   :  { %v5627_v54 = vpop.f32.mrb[76].mxu0 }
0x1d2c   :  { %v4037_v3 = vpop.f32.mrb[77].mxu0  ;;  %v7637_v33 = vadd.f32 %v7435_v7, %v5627_v54 }
0x1d2d   :  { %v7629_v26 = vadd.f32 %v7435_v7, %v4037_v3  ;;  %v5628_v2 = vpop.f32.mrb[78].mxu0 }
0x1d2e   :  { %v4040_v63 = vpop.f32.mrb[79].mxu0  ;;  %v7642_v28 = vadd.f32 %v7435_v7, %v5628_v2  ;;  %v5206_v27 = vmul.f32 -1.442695, %v7637_v33 }
0x1d2f   :  { %v7632_v29 = vadd.f32 %v7435_v7, %v4040_v63  ;;  %4132 = vrot.lane.b32.xlu1 %v7629_v26, %s6212_s19  ;;  %v5204_v49 = vmul.f32 -1.442695, %v7629_v26 }
0x1d30   :  { %v5207_v37 = vmul.f32 -1.442695, %v7642_v28 }
0x1d31   :  { %4134 = vrot.lane.b32.xlu0 %v7632_v29, %s6212_s19  ;;  %v5205_v5 = vmul.f32 -1.442695, %v7632_v29  ;;  %6055 = vpow2.f32 %v5204_v49 }
0x1d33   :  { %4136 = vrot.lane.b32.xlu1 %v7637_v33, %s6212_s19  ;;  %6057 = vpow2.f32 %v5205_v5 }
0x1d34   :  { %6059 = vpow2.f32 %v5206_v27 }
0x1d35   :  { %4138 = vrot.lane.b32.xlu0 %v7642_v28, %s6212_s19  ;;  %6061 = vpow2.f32 %v5207_v37 }
0x1d36   :  { %v5631_v8 = vpop.f32.mrb[80].mxu0 }
0x1d37   :  { %v4053_v39 = vpop.f32.mrb[81].mxu0  ;;  %v7657_v55 = vadd.f32 %v7435_v7, %v5631_v8 }
0x1d38   :  { %v7649_v51 = vadd.f32 %v7435_v7, %v4053_v39  ;;  %v5632_v11 = vpop.f32.mrb[82].mxu0 }
0x1d39   :  { %v4056_v24 = vpop.f32.mrb[83].mxu0  ;;  %v7662_v32 = vadd.f32 %v7435_v7, %v5632_v11  ;;  %v5210_v17 = vmul.f32 -1.442695, %v7657_v55 }
0x1d3a   :  { %v7652_v16 = vadd.f32 %v7435_v7, %v4056_v24  ;;  %4140 = vrot.lane.b32.xlu1 %v7649_v51, %s6212_s19  ;;  %v5208_v7 = vmul.f32 -1.442695, %v7649_v51 }
0x1d3b   :  { %v6056_v61 = vpop.eup %6055  ;;  %v5211_v52 = vmul.f32 -1.442695, %v7662_v32 }
0x1d3c   :  { %4142 = vrot.lane.b32.xlu0 %v7652_v16, %s6212_s19  ;;  %v5209_v19 = vmul.f32 -1.442695, %v7652_v16  ;;  %6063 = vpow2.f32 %v5208_v7  ;;  %v4100_v59 = vadd.f32 1.0, %v6056_v61 }
0x1d3d   :  { %v6058_v21 = vpop.eup %6057 }
0x1d3e   :  { %4144 = vrot.lane.b32.xlu1 %v7657_v55, %s6212_s19  ;;  %6065 = vpow2.f32 %v5209_v19  ;;  %v6060_v48 = vpop.eup %6059  ;;  %v4101_v12 = vadd.f32 1.0, %v6058_v21 }
0x1d3f   :  { %6067 = vpow2.f32 %v5210_v17  ;;  %v6062_v38 = vpop.eup %6061  ;;  %v4102_v40 = vadd.f32 1.0, %v6060_v48 }
0x1d40   :  { %4146 = vrot.lane.b32.xlu0 %v7662_v32, %s6212_s19  ;;  %6069 = vrcp.f32 %v4100_v59  ;;  %v4103_v43 = vadd.f32 1.0, %v6062_v38 }
0x1d41   :  { %6071 = vpow2.f32 %v5211_v52 }
0x1d42   :  { %6073 = vrcp.f32 %v4101_v12 }
0x1d43   :  { %6075 = vrcp.f32 %v4102_v40 }
0x1d44   :  { %6077 = vrcp.f32 %v4103_v43 }
0x1d46   :  { %v6064_v50 = vpop.eup %6063 }
0x1d47   :  { %v4104_v57 = vadd.f32 1.0, %v6064_v50  ;;  %v5807_v50 = vld [vmem:[%s7974_s16] sm:$0xff]  }
0x1d48   :  { %v6066_v15 = vpop.eup %6065  ;;  %5633 = vmatprep.subr.bf16.mxu1 %v5807_v50 }
0x1d49   :  { %v6068_v58 = vpop.eup %6067  ;;  %v4105_v62 = vadd.f32 1.0, %v6066_v15  ;;  %6079 = vrcp.f32 %v4104_v57  ;;  %5634 = vmatpush3.bf16.msra.mxu1 %v5807_v50 }
0x1d4a   :  { %v7676_v1 = vpop.eup %6069  ;;  %v4106_v42 = vadd.f32 1.0, %v6068_v58 }
0x1d4b   :  { %v6072_v13 = vpop.eup %6071  ;;  %6081 = vrcp.f32 %v4105_v62  ;;  %v4212_v58 = vsub.f32 1.0, %v7676_v1 }
0x1d4c   :  { %v7679_v4 = vpop.eup %6073  ;;  %v4107_v36 = vadd.f32 1.0, %v6072_v13  ;;  %6083 = vrcp.f32 %v4106_v42 }
0x1d4d   :  { %v7683_v18 = vpop.eup %6075 }
0x1d4e   :  { %v7687_v41 = vpop.eup %6077  ;;  %6085 = vrcp.f32 %v4107_v36 }
0x1d53   :  { %v7692_v9 = vpop.eup %6079 }
0x1d55   :  { %v7695_v54 = vpop.eup %6081 }
0x1d56   :  { %v7699_v63 = vpop.eup %6083 }
0x1d58   :  { %v7703_v11 = vpop.eup %6085 }
0x1da1   :  { %v4133_v23 = vpop.permute.xlu1 %4132 }
0x1da2   :  { %v4156_v53 = vmul.f32 %v7676_v1, %v4133_v23  ;;  %v4213_v23 = vsub.f32 1.0, %v7679_v4 }
0x1da3   :  { %v4135_v44 = vpop.permute.xlu0 %4134 }
0x1da4   :  { %v4157_v45 = vmul.f32 %v7679_v4, %v4135_v44  ;;  %4172 = vrot.lane.b32.xlu1 %v4156_v53, %s6214_s12  ;;  %v4260_v53 = vmul.f32 %v7676_v1, %v7546_v31  ;;  %v4261_v44 = vmul.f32 %v7679_v4, %v7548_v47  ;;  %v4262_v31 = vmul.f32 %v7683_v18, %v7557_v34  ;;  %v5809_v34 = vld [vmem:[%s7972_s14] sm:$0xff]  }
0x1da5   :  { %v4137_v56 = vpop.permute.xlu1 %4136  ;;  %v4263_v47 = vmul.f32 %v7687_v41, %v7559_v6  ;;  %v4217_v6 = vsub.f32 1.0, %v7695_v54 }
0x1da6   :  { %v4158_v35 = vmul.f32 %v7683_v18, %v4137_v56  ;;  %4174 = vrot.lane.b32.xlu0 %v4157_v45, %s6214_s12  ;;  %v4214_v45 = vsub.f32 1.0, %v7683_v18 }
0x1da7   :  { %v4139_v30 = vpop.permute.xlu0 %4138 }
0x1da8   :  { %v4159_v14 = vmul.f32 %v7687_v41, %v4139_v30  ;;  %4176 = vrot.lane.b32.xlu1 %v4158_v35, %s6214_s12 }
0x1daa   :  { %4178 = vrot.lane.b32.xlu0 %v4159_v14, %s6214_s12 }
0x1dac   :  { %v4141_v22 = vpop.permute.xlu1 %4140 }
0x1dad   :  { %v4160_v0 = vmul.f32 %v7692_v9, %v4141_v22  ;;  %v4215_v22 = vsub.f32 1.0, %v7687_v41 }
0x1dae   :  { %v4143_v3 = vpop.permute.xlu0 %4142 }
0x1daf   :  { %v4161_v2 = vmul.f32 %v7695_v54, %v4143_v3  ;;  %4180 = vrot.lane.b32.xlu1 %v4160_v0, %s6214_s12 }
0x1db0   :  { %v4145_v8 = vpop.permute.xlu1 %4144 }
0x1db1   :  { %v4162_v39 = vmul.f32 %v7699_v63, %v4145_v8  ;;  %4182 = vrot.lane.b32.xlu0 %v4161_v2, %s6214_s12  ;;  %v4216_v8 = vsub.f32 1.0, %v7692_v9 }
0x1db2   :  { %v4147_v24 = vpop.permute.xlu0 %4146 }
0x1db3   :  { %v4163_v49 = vmul.f32 %v7703_v11, %v4147_v24  ;;  %4184 = vrot.lane.b32.xlu1 %v4162_v39, %s6214_s12 }
0x1db5   :  { %4186 = vrot.lane.b32.xlu0 %v4163_v49, %s6214_s12  ;;  %v4264_v49 = vmul.f32 %v7692_v9, %v7575_v20  ;;  %v4266_v20 = vmul.f32 %v7699_v63, %v7586_v60  ;;  %v5810_v60 = vld [vmem:[%s7972_s14 + $0x8] sm:$0xff]  }
0x1e16   :  { %v4173_v5 = vpop.permute.xlu1 %4172 }
0x1e17   :  { %v4196_v27 = vadd.f32 %v4173_v5, %v7629_v26  ;;  %v4265_v5 = vmul.f32 %v7695_v54, %v7577_v46  ;;  %v4267_v46 = vmul.f32 %v7703_v11, %v7588_v25 }
0x1e18   :  { %v4175_v37 = vpop.permute.xlu0 %4174 }
0x1e19   :  { %6087 = vtanh.f32 %v4196_v27  ;;  %v4197_v7 = vadd.f32 %v4175_v37, %v7632_v29  ;;  %v4218_v37 = vsub.f32 1.0, %v7699_v63 }
0x1e1a   :  { %v4177_v61 = vpop.permute.xlu1 %4176 }
0x1e1b   :  { %6089 = vtanh.f32 %v4197_v7  ;;  %v4198_v19 = vadd.f32 %v4177_v61, %v7637_v33 }
0x1e1c   :  { %v4179_v17 = vpop.permute.xlu0 %4178 }
0x1e1d   :  { %6091 = vtanh.f32 %v4198_v19  ;;  %v4199_v21 = vadd.f32 %v4179_v17, %v7642_v28 }
0x1e1f   :  { %6093 = vtanh.f32 %v4199_v21  ;;  %v4219_v21 = vsub.f32 1.0, %v7703_v11 }
0x1e21   :  { %v4181_v59 = vpop.permute.xlu1 %4180 }
0x1e22   :  { %v4200_v52 = vadd.f32 %v4181_v59, %v7649_v51 }
0x1e23   :  { %v6088_v48 = vpop.eup %6087  ;;  %v4183_v12 = vpop.permute.xlu0 %4182 }
0x1e24   :  { %6095 = vtanh.f32 %v4200_v52  ;;  %v4201_v26 = vadd.f32 %v4183_v12, %v7652_v16  ;;  %4228 = vrot.lane.b32.xlu1 %v6088_v48, %s6215_s11 }
0x1e25   :  { %v6090_v29 = vpop.eup %6089  ;;  %v4185_v38 = vpop.permute.xlu1 %4184 }
0x1e26   :  { %6097 = vtanh.f32 %v4201_v26  ;;  %v4202_v33 = vadd.f32 %v4185_v38, %v7657_v55  ;;  %4230 = vrot.lane.b32.xlu0 %v6090_v29, %s6215_s11  ;;  %v5808_v55 = vld [vmem:[%s7974_s16 + $0x8] sm:$0xff]   ;;  %v5811_v29 = vld [vmem:[%s7971_s13] sm:$0xff]  }
0x1e27   :  { %v6092_v40 = vpop.eup %6091  ;;  %v4187_v28 = vpop.permute.xlu0 %4186  ;;  %5635 = vmatprep.subr.bf16.mxu1 %v5808_v55  ;;  %v5812_v38 = vld [vmem:[%s7971_s13 + $0x8] sm:$0xff]  }
0x1e28   :  { %6099 = vtanh.f32 %v4202_v33  ;;  %v4203_v43 = vadd.f32 %v4187_v28, %v7662_v32  ;;  %4232 = vrot.lane.b32.xlu1 %v6092_v40, %s6215_s11  ;;  %5636 = vmatpush3.bf16.msra.mxu1 %v5808_v55 }
0x1e29   :  { %v6094_v51 = vpop.eup %6093  ;;  %5645 = vmatprep.subr.bf16.mxu1 %v5809_v34 }
0x1e2a   :  { %6101 = vtanh.f32 %v4203_v43  ;;  %4234 = vrot.lane.b32.xlu0 %v6094_v51, %s6215_s11 }
0x1e2e   :  { %v6096_v16 = vpop.eup %6095 }
0x1e2f   :  { %4236 = vrot.lane.b32.xlu1 %v6096_v16, %s6215_s11 }
0x1e30   :  { %v6098_v15 = vpop.eup %6097 }
0x1e31   :  { %4238 = vrot.lane.b32.xlu0 %v6098_v15, %s6215_s11  ;;  %v4413_v15 = vld [vmem:[#allocation3 + $0x110] sm:$0xff] }
0x1e32   :  { %v6100_v32 = vpop.eup %6099 }
0x1e33   :  { %4240 = vrot.lane.b32.xlu1 %v6100_v32, %s6215_s11 }
0x1e34   :  { %v6102_v57 = vpop.eup %6101 }
0x1e35   :  { %4242 = vrot.lane.b32.xlu0 %v6102_v57, %s6215_s11 }
0x1e96   :  { %v4229_v62 = vpop.permute.xlu1 %4228 }
0x1e97   :  { %v4252_v13 = vmul.f32 %v4229_v62, %v4212_v58  ;;  %v4411_v62 = vld [vmem:[#allocation3 + $0x100] sm:$0xff] }
0x1e98   :  { %v4231_v42 = vpop.permute.xlu0 %4230 }
0x1e99   :  { %v4253_v36 = vmul.f32 %v4231_v42, %v4213_v23  ;;  %v7737_v35 = vadd.f32 %v4260_v53, %v4252_v13  ;;  %v4414_v42 = vld [vmem:[#allocation3 + $0x118] sm:$0xff] }
0x1e9a   :  { %v4233_v56 = vpop.permute.xlu1 %4232 }
0x1e9b   :  { %v7739_v30 = vadd.f32 %v4261_v44, %v4253_v36  ;;  %v4254_v14 = vmul.f32 %v4233_v56, %v4214_v45  ;;  %v4412_v36 = vld [vmem:[#allocation3 + $0x108] sm:$0xff] }
0x1e9c   :  { %v4235_v0 = vpop.permute.xlu0 %4234 }
0x1e9d   :  { %v4276_v3 = vpack.c.bf16 %v7739_v30, %v7737_v35  ;;  %v4255_v1 = vmul.f32 %v4235_v0, %v4215_v22  ;;  %v7748_v4 = vadd.f32 %v4262_v31, %v4254_v14 }
0x1e9f   :  { %v7750_v2 = vadd.f32 %v4263_v47, %v4255_v1  ;;  %4288 = vrot.lane.b32.xlu1 %v4276_v3, %s6215_s11 }
0x1ea1   :  { %v4277_v39 = vpack.c.bf16 %v7750_v2, %v7748_v4  ;;  %v4237_v24 = vpop.permute.xlu1 %4236 }
0x1ea2   :  { %v4256_v18 = vmul.f32 %v4237_v24, %v4216_v8 }
0x1ea3   :  { %4290 = vrot.lane.b32.xlu0 %v4277_v39, %s6215_s11  ;;  %v4239_v41 = vpop.permute.xlu0 %4238 }
0x1ea4   :  { %v4257_v27 = vmul.f32 %v4239_v41, %v4217_v6  ;;  %v7766_v61 = vadd.f32 %v4264_v49, %v4256_v18 }
0x1ea5   :  { %v4241_v7 = vpop.permute.xlu1 %4240 }
0x1ea6   :  { %v7768_v19 = vadd.f32 %v4265_v5, %v4257_v27  ;;  %v4258_v17 = vmul.f32 %v4241_v7, %v4218_v37  ;;  %v4417_v27 = vld [vmem:[#allocation3 + $0x130] sm:$0xff] }
0x1ea7   :  { %v4243_v59 = vpop.permute.xlu0 %4242 }
0x1ea8   :  { %v4278_v52 = vpack.c.bf16 %v7768_v19, %v7766_v61  ;;  %v4259_v9 = vmul.f32 %v4243_v59, %v4219_v21  ;;  %v7777_v54 = vadd.f32 %v4266_v20, %v4258_v17  ;;  %v4415_v59 = vld [vmem:[#allocation3 + $0x120] sm:$0xff] }
0x1eaa   :  { %v7779_v48 = vadd.f32 %v4267_v46, %v4259_v9  ;;  %4292 = vrot.lane.b32.xlu1 %v4278_v52, %s6215_s11  ;;  %v4418_v46 = vld [vmem:[#allocation3 + $0x138] sm:$0xff] }
0x1eac   :  { %v4279_v12 = vpack.c.bf16 %v7779_v48, %v7777_v54 }
0x1eae   :  { %4294 = vrot.lane.b32.xlu0 %v4279_v12, %s6215_s11 }
0x1f11   :  { %v4289_v26 = vpop.permute.xlu1 %4288 }
0x1f12   :  { %5637 = vmatprep.mubr.msk.bf16.mxu1 %vm455_vm4, %v4289_v26 }
0x1f15   :  { %v4291_v25 = vpop.permute.xlu0 %4290 }
0x1f16   :  { %5638 = vmatmul.mubr.msk.bf16.vlgmr.msra.gmra.mrb[80].mxu1 %vm455_vm4, %v4291_v25 }
0x1f17   :  { %5646 = vmatpush3.bf16.msra.mxu1 %v5809_v34 }
0x1f18   :  { %5647 = vmatprep.subr.bf16.mxu1 %v5810_v60 }
0x1f1b   :  { %5648 = vmatpush3.bf16.msra.mxu1 %v5810_v60 }
0x1f1c   :  { %v4293_v63 = vpop.permute.xlu1 %4292  ;;  %5657 = vmatprep.subr.bf16.mxu1 %v5811_v29 }
0x1f1d   :  { %5641 = vmatprep.mubr.msk.bf16.mxu1 %vm455_vm4, %v4293_v63 }
0x1f20   :  { %v4295_v11 = vpop.permute.xlu0 %4294 }
0x1f21   :  { %5642 = vmatmul.mubr.msk.bf16.gmra.mrb[84].mxu1 %vm455_vm4, %v4295_v11 }
0x1f22   :  { %5649 = vmatprep.mubr.msk.bf16.mxu1 %vm455_vm4, %v4289_v26  ;;  %v4416_v26 = vld [vmem:[#allocation3 + $0x128] sm:$0xff] }
0x1f29   :  { %5650 = vmatmul.mubr.msk.bf16.vlgmr.msra.gmra.mrb[88].mxu1 %vm455_vm4, %v4291_v25 }
0x1f2a   :  { %5653 = vmatprep.mubr.msk.bf16.mxu1 %vm455_vm4, %v4293_v63  ;;  %5658 = vmatpush3.bf16.msra.mxu1 %v5811_v29 }
0x1f2b   :  { %5659 = vmatprep.subr.bf16.mxu1 %v5812_v38 }
0x1f2e   :  { %5660 = vmatpush3.bf16.msra.mxu1 %v5812_v38 }
0x1f31   :  { %5654 = vmatmul.mubr.msk.bf16.gmra.mrb[92].mxu1 %vm455_vm4, %v4295_v11 }
0x1fe9   :  { %v5639_v33 = vpop.f32.mrb[80].mxu1 }
0x1fea   :  { %v4363_v40 = vadd.f32 %v7614_v10, %v5639_v33  ;;  %v4354_v28 = vpop.f32.mrb[81].mxu1 }
0x1feb   :  { %v4355_v43 = vadd.f32 %v7614_v10, %v4354_v28  ;;  %v5640_v51 = vpop.f32.mrb[82].mxu1 }
0x1fec   :  { %v4387_v16 = vmax.f32 %v4363_v40, 0.0  ;;  %6103 = vtanh.f32 %v4363_v40  ;;  %v4366_v50 = vadd.f32 %v7614_v10, %v5640_v51  ;;  %v4357_v55 = vpop.f32.mrb[83].mxu1 }
0x1fed   :  { %v4385_v32 = vmax.f32 %v4355_v43, 0.0  ;;  %6105 = vtanh.f32 %v4355_v43  ;;  %v4358_v57 = vadd.f32 %v7614_v10, %v4357_v55 }
0x1fee   :  { %v4421_v58 = vadd.f32 %v4413_v15, %v4387_v16  ;;  %v4388_v13 = vmax.f32 %v4366_v50, 0.0  ;;  %6107 = vtanh.f32 %v4366_v50  ;;  %v6185_v50 = vld [vmem:[%s7973_s15] ss:$0 sm:$0xff] }
0x1fef   :  { %v4419_v23 = vadd.f32 %v4411_v62, %v4385_v32  ;;  %v4386_v53 = vmax.f32 %v4358_v57, 0.0  ;;  %6109 = vtanh.f32 %v4358_v57 }
0x1ff0   :  { %v4422_v44 = vadd.f32 %v4414_v42, %v4388_v13  ;;  %v4429_v56 = vmul.f32 0.5, %v4421_v58 }
0x1ff1   :  { %v4420_v45 = vadd.f32 %v4412_v36, %v4386_v53  ;;  %v4427_v22 = vmul.f32 0.5, %v4419_v23 }
0x1ff2   :  { %v4430_v14 = vmul.f32 0.5, %v4422_v44 }
0x1ff3   :  { %v4428_v0 = vmul.f32 0.5, %v4420_v45 }
0x1ff4   :  { %v4436_v3 = vpack.c.bf16 %v4430_v14, %v4429_v56  ;;  %v5643_v31 = vpop.f32.mrb[84].mxu1 }
0x1ff5   :  { %v4435_v47 = vpack.c.bf16 %v4428_v0, %v4427_v22  ;;  %v4379_v1 = vadd.f32 %v7614_v10, %v5643_v31  ;;  %v4370_v8 = vpop.f32.mrb[85].mxu1 }
0x1ff6   :  { %v6104_v39 = vpop.eup %6103  ;;  %v4371_v24 = vadd.f32 %v7614_v10, %v4370_v8  ;;  %v5644_v34 = vpop.f32.mrb[86].mxu1 }
0x1ff7   :  { %v6106_v18 = vpop.eup %6105  ;;  %4404 = vst [vmem:[#allocation5 + $0xd0] sm:$0xff] %v6104_v39  ;;  %v4391_v6 = vmax.f32 %v4379_v1, 0.0  ;;  %6111 = vtanh.f32 %v4379_v1  ;;  %v4382_v41 = vadd.f32 %v7614_v10, %v5644_v34  ;;  %v4373_v49 = vpop.f32.mrb[87].mxu1  ;;  %5661 = vmatprep.mubr.msk.bf16.mxu1 %vm455_vm4, %v4435_v47 }
0x1ff8   :  { %v6108_v5 = vpop.eup %6107  ;;  %4402 = vst [vmem:[#allocation5 + $0xc0] sm:$0xff] %v6106_v18  ;;  %v4389_v37 = vmax.f32 %v4371_v24, 0.0  ;;  %6113 = vtanh.f32 %v4371_v24  ;;  %v4374_v7 = vadd.f32 %v7614_v10, %v4373_v49  ;;  %5662 = vmatmul.mubr.msk.bf16.vlgmr.msra.gmra.mrb[88].mxu1 %vm455_vm4, %v4436_v3 }
0x1ff9   :  { %v6110_v17 = vpop.eup %6109  ;;  %4405 = vst [vmem:[#allocation5 + $0xd8] sm:$0xff] %v6108_v5  ;;  %v4425_v21 = vadd.f32 %v4417_v27, %v4391_v6  ;;  %v4392_v52 = vmax.f32 %v4382_v41, 0.0  ;;  %6115 = vtanh.f32 %v4382_v41 }
0x1ffa   :  { %4403 = vst [vmem:[#allocation5 + $0xc8] sm:$0xff] %v6110_v17  ;;  %v4423_v20 = vadd.f32 %v4415_v59, %v4389_v37  ;;  %v4390_v9 = vmax.f32 %v4374_v7, 0.0  ;;  %6117 = vtanh.f32 %v4374_v7 }
0x1ffb   :  { %v4426_v12 = vadd.f32 %v4418_v46, %v4392_v52  ;;  %v4433_v25 = vmul.f32 0.5, %v4425_v21 }
0x1ffc   :  { %v4424_v60 = vadd.f32 %v4416_v26, %v4390_v9  ;;  %v4431_v11 = vmul.f32 0.5, %v4423_v20 }
0x1ffd   :  { %v4434_v63 = vmul.f32 0.5, %v4426_v12 }
0x1ffe   :  { %v4432_v10 = vmul.f32 0.5, %v4424_v60 }
0x1fff   :  { %v4438_v29 = vpack.c.bf16 %v4434_v63, %v4433_v25 }
0x2000   :  { %v4437_v38 = vpack.c.bf16 %v4432_v10, %v4431_v11 }
0x2001   :  { %v6112_v33 = vpop.eup %6111 }
0x2002   :  { %v6114_v40 = vpop.eup %6113  ;;  %4408 = vst [vmem:[#allocation5 + $0xf0] sm:$0xff] %v6112_v33  ;;  %5665 = vmatprep.mubr.msk.bf16.mxu1 %vm455_vm4, %v4437_v38 }
0x2003   :  { %v6116_v28 = vpop.eup %6115  ;;  %4406 = vst [vmem:[#allocation5 + $0xe0] sm:$0xff] %v6114_v40  ;;  %5666 = vmatmul.mubr.msk.bf16.gmra.mrb[92].mxu1 %vm455_vm4, %v4438_v29 }
0x2004   :  { %v6118_v43 = vpop.eup %6117  ;;  %4409 = vst [vmem:[#allocation5 + $0xf8] sm:$0xff] %v6116_v28 }
0x2005   :  { %4407 = vst [vmem:[#allocation5 + $0xe8] sm:$0xff] %v6118_v43 }
0x20cb   :  { %v5663_v51 = vpop.f32.mrb[88].mxu1 }
0x20cc   :  { %v4582_v16 = vpop.f32.mrb[89].mxu1  ;;  %v7823_v58 = vadd.f32 %v6185_v50, %v5663_v51 }
0x20cd   :  { %v7817_v55 = vadd.f32 %v6185_v50, %v4582_v16  ;;  %v5664_v15 = vpop.f32.mrb[90].mxu1 }
0x20ce   :  { %v4585_v32 = vpop.f32.mrb[91].mxu1  ;;  %v7827_v62 = vadd.f32 %v6185_v50, %v5664_v15  ;;  %v5232_v0 = vmul.f32 -1.442695, %v7823_v58 }
0x20cf   :  { %v7819_v57 = vadd.f32 %v6185_v50, %v4585_v32  ;;  %4677 = vrot.lane.b32.xlu1 %v7817_v55, %s6212_s19  ;;  %v5230_v14 = vmul.f32 -1.442695, %v7817_v55 }
0x20d0   :  { %v5233_v3 = vmul.f32 -1.442695, %v7827_v62 }
0x20d1   :  { %4679 = vrot.lane.b32.xlu0 %v7819_v57, %s6212_s19  ;;  %v5231_v22 = vmul.f32 -1.442695, %v7819_v57  ;;  %6119 = vpow2.f32 %v5230_v14 }
0x20d3   :  { %4681 = vrot.lane.b32.xlu1 %v7823_v58, %s6212_s19  ;;  %6121 = vpow2.f32 %v5231_v22 }
0x20d4   :  { %6123 = vpow2.f32 %v5232_v0 }
0x20d5   :  { %4683 = vrot.lane.b32.xlu0 %v7827_v62, %s6212_s19  ;;  %6125 = vpow2.f32 %v5233_v3 }
0x20d6   :  { %v5667_v13 = vpop.f32.mrb[92].mxu1 }
0x20d7   :  { %v4598_v23 = vpop.f32.mrb[93].mxu1  ;;  %v7839_v45 = vadd.f32 %v6185_v50, %v5667_v13 }
0x20d8   :  { %v7833_v42 = vadd.f32 %v6185_v50, %v4598_v23  ;;  %v5668_v53 = vpop.f32.mrb[94].mxu1 }
0x20d9   :  { %v4601_v44 = vpop.f32.mrb[95].mxu1  ;;  %v7843_v56 = vadd.f32 %v6185_v50, %v5668_v53  ;;  %v5236_v8 = vmul.f32 -1.442695, %v7839_v45 }
0x20da   :  { %v7835_v36 = vadd.f32 %v6185_v50, %v4601_v44  ;;  %4685 = vrot.lane.b32.xlu1 %v7833_v42, %s6212_s19  ;;  %v5234_v31 = vmul.f32 -1.442695, %v7833_v42 }
0x20db   :  { %v6120_v47 = vpop.eup %6119  ;;  %v5237_v34 = vmul.f32 -1.442695, %v7843_v56 }
0x20dc   :  { %4687 = vrot.lane.b32.xlu0 %v7835_v36, %s6212_s19  ;;  %v5235_v1 = vmul.f32 -1.442695, %v7835_v36  ;;  %6127 = vpow2.f32 %v5234_v31  ;;  %v4645_v24 = vadd.f32 1.0, %v6120_v47 }
0x20dd   :  { %v6122_v39 = vpop.eup %6121 }
0x20de   :  { %4689 = vrot.lane.b32.xlu1 %v7839_v45, %s6212_s19  ;;  %6129 = vpow2.f32 %v5235_v1  ;;  %v6124_v18 = vpop.eup %6123  ;;  %v4646_v6 = vadd.f32 1.0, %v6122_v39 }
0x20df   :  { %6131 = vpow2.f32 %v5236_v8  ;;  %v6126_v41 = vpop.eup %6125  ;;  %v4647_v49 = vadd.f32 1.0, %v6124_v18 }
0x20e0   :  { %4691 = vrot.lane.b32.xlu0 %v7843_v56, %s6212_s19  ;;  %6133 = vrcp.f32 %v4645_v24  ;;  %v4648_v5 = vadd.f32 1.0, %v6126_v41 }
0x20e1   :  { %6135 = vpow2.f32 %v5237_v34 }
0x20e2   :  { %6137 = vrcp.f32 %v4646_v6 }
0x20e3   :  { %6139 = vrcp.f32 %v4647_v49 }
0x20e4   :  { %6141 = vrcp.f32 %v4648_v5  ;;  %v5813_v5 = vld [vmem:[%s7974_s16] sm:$0xff]  }
0x20e5   :  { %5669 = vmatprep.subr.bf16.mxu0 %v5813_v5 }
0x20e6   :  { %v6128_v27 = vpop.eup %6127  ;;  %5670 = vmatpush3.bf16.msra.mxu0 %v5813_v5 }
0x20e7   :  { %v4649_v7 = vadd.f32 1.0, %v6128_v27 }
0x20e8   :  { %v6130_v37 = vpop.eup %6129 }
0x20e9   :  { %v6132_v17 = vpop.eup %6131  ;;  %v4650_v59 = vadd.f32 1.0, %v6130_v37  ;;  %6143 = vrcp.f32 %v4649_v7 }
0x20ea   :  { %v7857_v21 = vpop.eup %6133  ;;  %v4651_v46 = vadd.f32 1.0, %v6132_v17 }
0x20eb   :  { %v6136_v52 = vpop.eup %6135  ;;  %6145 = vrcp.f32 %v4650_v59  ;;  %v4757_v7 = vsub.f32 1.0, %v7857_v21 }
0x20ec   :  { %v7860_v12 = vpop.eup %6137  ;;  %v4652_v60 = vadd.f32 1.0, %v6136_v52  ;;  %6147 = vrcp.f32 %v4651_v46  ;;  %v4805_v46 = vmul.f32 %v7857_v21, %v7737_v35 }
0x20ed   :  { %v7864_v63 = vpop.eup %6139  ;;  %v4758_v52 = vsub.f32 1.0, %v7860_v12 }
0x20ee   :  { %v7868_v29 = vpop.eup %6141  ;;  %6149 = vrcp.f32 %v4652_v60  ;;  %v4759_v60 = vsub.f32 1.0, %v7864_v63 }
0x20ef   :  { %v4808_v35 = vmul.f32 %v7868_v29, %v7750_v2 }
0x20f3   :  { %v7873_v40 = vpop.eup %6143 }
0x20f5   :  { %v7876_v51 = vpop.eup %6145 }
0x20f6   :  { %v7880_v15 = vpop.eup %6147  ;;  %v4810_v2 = vmul.f32 %v7876_v51, %v7768_v19 }
0x20f8   :  { %v7884_v23 = vpop.eup %6149 }
0x2141   :  { %v4678_v20 = vpop.permute.xlu1 %4677 }
0x2142   :  { %v4701_v9 = vmul.f32 %v7857_v21, %v4678_v20 }
0x2143   :  { %v4680_v26 = vpop.permute.xlu0 %4679 }
0x2144   :  { %v4702_v25 = vmul.f32 %v7860_v12, %v4680_v26  ;;  %4717 = vrot.lane.b32.xlu1 %v4701_v9, %s6214_s12  ;;  %v4806_v9 = vmul.f32 %v7860_v12, %v7739_v30  ;;  %v4761_v12 = vsub.f32 1.0, %v7873_v40 }
0x2145   :  { %v4682_v11 = vpop.permute.xlu1 %4681 }
0x2146   :  { %v4703_v10 = vmul.f32 %v7864_v63, %v4682_v11  ;;  %4719 = vrot.lane.b32.xlu0 %v4702_v25, %s6214_s12 }
0x2147   :  { %v4684_v38 = vpop.permute.xlu0 %4683 }
0x2148   :  { %v4704_v33 = vmul.f32 %v7868_v29, %v4684_v38  ;;  %4721 = vrot.lane.b32.xlu1 %v4703_v10, %s6214_s12 }
0x214a   :  { %4723 = vrot.lane.b32.xlu0 %v4704_v33, %s6214_s12  ;;  %v4760_v33 = vsub.f32 1.0, %v7868_v29  ;;  %v4763_v29 = vsub.f32 1.0, %v7880_v15 }
0x214c   :  { %v4686_v28 = vpop.permute.xlu1 %4685 }
0x214d   :  { %v4705_v43 = vmul.f32 %v7873_v40, %v4686_v28 }
0x214e   :  { %v4688_v16 = vpop.permute.xlu0 %4687 }
0x214f   :  { %v4706_v50 = vmul.f32 %v7876_v51, %v4688_v16  ;;  %4725 = vrot.lane.b32.xlu1 %v4705_v43, %s6214_s12  ;;  %v4807_v16 = vmul.f32 %v7864_v63, %v7748_v4  ;;  %v4809_v4 = vmul.f32 %v7873_v40, %v7766_v61  ;;  %v4812_v61 = vmul.f32 %v7884_v23, %v7779_v48 }
0x2150   :  { %v4690_v32 = vpop.permute.xlu1 %4689 }
0x2151   :  { %v4707_v13 = vmul.f32 %v7880_v15, %v4690_v32  ;;  %4727 = vrot.lane.b32.xlu0 %v4706_v50, %s6214_s12 }
0x2152   :  { %v4692_v53 = vpop.permute.xlu0 %4691 }
0x2153   :  { %v4708_v44 = vmul.f32 %v7884_v23, %v4692_v53  ;;  %4729 = vrot.lane.b32.xlu1 %v4707_v13, %s6214_s12 }
0x2155   :  { %4731 = vrot.lane.b32.xlu0 %v4708_v44, %s6214_s12  ;;  %v4762_v44 = vsub.f32 1.0, %v7876_v51 }
0x21b6   :  { %v4718_v14 = vpop.permute.xlu1 %4717 }
0x21b7   :  { %v4741_v22 = vadd.f32 %v4718_v14, %v7817_v55 }
0x21b8   :  { %v4720_v0 = vpop.permute.xlu0 %4719 }
0x21b9   :  { %6151 = vtanh.f32 %v4741_v22  ;;  %v4742_v3 = vadd.f32 %v4720_v0, %v7819_v57 }
0x21ba   :  { %v4722_v31 = vpop.permute.xlu1 %4721 }
0x21bb   :  { %6153 = vtanh.f32 %v4742_v3  ;;  %v4743_v47 = vadd.f32 %v4722_v31, %v7823_v58 }
0x21bc   :  { %v4724_v1 = vpop.permute.xlu0 %4723 }
0x21bd   :  { %6155 = vtanh.f32 %v4743_v47  ;;  %v4744_v8 = vadd.f32 %v4724_v1, %v7827_v62  ;;  %v4764_v47 = vsub.f32 1.0, %v7884_v23 }
0x21bf   :  { %6157 = vtanh.f32 %v4744_v8 }
0x21c1   :  { %v4726_v39 = vpop.permute.xlu1 %4725 }
0x21c2   :  { %v4745_v24 = vadd.f32 %v4726_v39, %v7833_v42  ;;  %v4811_v39 = vmul.f32 %v7880_v15, %v7777_v54  ;;  %v6186_v15 = vld [vmem:[%s7975_s17] ss:$0 sm:$0xff]  ;;  %s6216_s17 = smov [#allocation5]  }
0x21c3   :  { %v6152_v34 = vpop.eup %6151  ;;  %v4728_v18 = vpop.permute.xlu0 %4727 }
0x21c4   :  { %6159 = vtanh.f32 %v4745_v24  ;;  %v4746_v55 = vadd.f32 %v4728_v18, %v7835_v36  ;;  %4773 = vrot.lane.b32.xlu1 %v6152_v34, %s6215_s11 }
0x21c5   :  { %v6154_v57 = vpop.eup %6153  ;;  %v4730_v6 = vpop.permute.xlu1 %4729 }
0x21c6   :  { %6161 = vtanh.f32 %v4746_v55  ;;  %v4747_v58 = vadd.f32 %v4730_v6, %v7839_v45  ;;  %4775 = vrot.lane.b32.xlu0 %v6154_v57, %s6215_s11  ;;  %v5814_v45 = vld [vmem:[%s7974_s16 + $0x8] sm:$0xff]  }
0x21c7   :  { %v6156_v41 = vpop.eup %6155  ;;  %v4732_v62 = vpop.permute.xlu0 %4731  ;;  %5671 = vmatprep.subr.bf16.mxu0 %v5814_v45 }
0x21c8   :  { %6163 = vtanh.f32 %v4747_v58  ;;  %v4748_v49 = vadd.f32 %v4732_v62, %v7843_v56  ;;  %4777 = vrot.lane.b32.xlu1 %v6156_v41, %s6215_s11  ;;  %5672 = vmatpush3.bf16.msra.mxu0 %v5814_v45 }
0x21c9   :  { %v6158_v42 = vpop.eup %6157 }
0x21ca   :  { %6165 = vtanh.f32 %v4748_v49  ;;  %4779 = vrot.lane.b32.xlu0 %v6158_v42, %s6215_s11 }
0x21ce   :  { %v6160_v36 = vpop.eup %6159 }
0x21cf   :  { %4781 = vrot.lane.b32.xlu1 %v6160_v36, %s6215_s11 }
0x21d0   :  { %v6162_v27 = vpop.eup %6161 }
0x21d1   :  { %4783 = vrot.lane.b32.xlu0 %v6162_v27, %s6215_s11 }
0x21d2   :  { %v6164_v56 = vpop.eup %6163 }
0x21d3   :  { %4785 = vrot.lane.b32.xlu1 %v6164_v56, %s6215_s11 }
0x21d4   :  { %v6166_v37 = vpop.eup %6165 }
0x21d5   :  { %4787 = vrot.lane.b32.xlu0 %v6166_v37, %s6215_s11 }
0x2236   :  { %v4774_v17 = vpop.permute.xlu1 %4773 }
0x2237   :  { %v4797_v59 = vmul.f32 %v4774_v17, %v4757_v7 }
0x2238   :  { %v4776_v20 = vpop.permute.xlu0 %4775 }
0x2239   :  { %v4798_v26 = vmul.f32 %v4776_v20, %v4758_v52  ;;  %v4813_v11 = vadd.f32 %v4805_v46, %v4797_v59 }
0x223a   :  { %v4778_v25 = vpop.permute.xlu1 %4777 }
0x223b   :  { %v4814_v10 = vadd.f32 %v4806_v9, %v4798_v26  ;;  %v4799_v38 = vmul.f32 %v4778_v25, %v4759_v60 }
0x223c   :  { %v4780_v28 = vpop.permute.xlu0 %4779 }
0x223d   :  { %v4821_v43 = vpack.c.bf16 %v4814_v10, %v4813_v11  ;;  %v4800_v21 = vmul.f32 %v4780_v28, %v4760_v33  ;;  %v4815_v50 = vadd.f32 %v4807_v16, %v4799_v38 }
0x223f   :  { %v4816_v30 = vadd.f32 %v4808_v35, %v4800_v21  ;;  %4833 = vrot.lane.b32.xlu1 %v4821_v43, %s6215_s11 }
0x2241   :  { %v4822_v32 = vpack.c.bf16 %v4816_v30, %v4815_v50  ;;  %v4782_v13 = vpop.permute.xlu1 %4781 }
0x2242   :  { %v4801_v53 = vmul.f32 %v4782_v13, %v4761_v12 }
0x2243   :  { %4835 = vrot.lane.b32.xlu0 %v4822_v32, %s6215_s11  ;;  %v4784_v14 = vpop.permute.xlu0 %4783 }
0x2244   :  { %v4802_v63 = vmul.f32 %v4784_v14, %v4762_v44  ;;  %v4817_v0 = vadd.f32 %v4809_v4, %v4801_v53 }
0x2245   :  { %v4786_v22 = vpop.permute.xlu1 %4785 }
0x2246   :  { %v4818_v3 = vadd.f32 %v4810_v2, %v4802_v63  ;;  %v4803_v31 = vmul.f32 %v4786_v22, %v4763_v29 }
0x2247   :  { %v4788_v1 = vpop.permute.xlu0 %4787 }
0x2248   :  { %v4823_v8 = vpack.c.bf16 %v4818_v3, %v4817_v0  ;;  %v4804_v40 = vmul.f32 %v4788_v1, %v4764_v47  ;;  %v4819_v24 = vadd.f32 %v4811_v39, %v4803_v31 }
0x224a   :  { %v4820_v19 = vadd.f32 %v4812_v61, %v4804_v40  ;;  %4837 = vrot.lane.b32.xlu1 %v4823_v8, %s6215_s11 }
0x224c   :  { %v4824_v51 = vpack.c.bf16 %v4820_v19, %v4819_v24 }
0x224e   :  { %4839 = vrot.lane.b32.xlu0 %v4824_v51, %s6215_s11  ;;  %s4952_s11 = sshll.u32 %s6216_s17, 4  ;;  %s4953_s11 = int_to_ptr.vmem [resolvable:$true] %s4952_s11 }
0x224f   :  { %s6187_s10 = scalar_lea.vmem %s4953_s11, 5120  ;;  %p6192_p1 = scmp.lt.s32.totalorder %s4953_s11, %s4953_s11 }
0x2250   :  { %p6188_p0 = scmp.ne.s32.totalorder %s4953_s11, %s6187_s10  ;;  %p6193_p2 = scmp.lt.s32.totalorder %s6187_s10, %s6187_s10 }
0x2252   :  { %p6194_p3 = por %p6193_p2, %p6192_p1 }
0x2254   :  { %p6195_p4 = pnand %p6194_p3, %p6188_p0 }
0x22b1   :  { %v4834_v34 = vpop.permute.xlu1 %4833 }
0x22b2   :  { %5673 = vmatprep.mubr.msk.bf16.mxu0 %vm455_vm4, %v4834_v34 }
0x22b5   :  { %v4836_v18 = vpop.permute.xlu0 %4835 }
0x22b6   :  { %5674 = vmatmul.mubr.msk.bf16.vlgmr.msra.gmra.mrb[84].mxu0 %vm455_vm4, %v4836_v18 }
0x22bc   :  { %v4838_v55 = vpop.permute.xlu1 %4837 }
0x22bd   :  { %5677 = vmatprep.mubr.msk.bf16.mxu0 %vm455_vm4, %v4838_v55 }
0x22c0   :  { %v4840_v54 = vpop.permute.xlu0 %4839 }
0x22c1   :  { %5678 = vmatmul.mubr.msk.bf16.gmra.mrb[88].mxu0 %vm455_vm4, %v4840_v54 }
0x2389   :  { %v5675_v48 = vpop.f32.mrb[84].mxu0 }
0x238a   :  { %v4908_v23 = vadd.f32 %v6186_v15, %v5675_v48  ;;  %v4899_v57 = vpop.f32.mrb[85].mxu0 }
0x238b   :  { %v4900_v6 = vadd.f32 %v6186_v15, %v4899_v57  ;;  %v5676_v58 = vpop.f32.mrb[86].mxu0 }
0x238c   :  { %6167 = vtanh.f32 %v4908_v23  ;;  %v4911_v41 = vadd.f32 %v6186_v15, %v5676_v58  ;;  %v4902_v62 = vpop.f32.mrb[87].mxu0 }
0x238d   :  { %6169 = vtanh.f32 %v4900_v6  ;;  %v4903_v49 = vadd.f32 %v6186_v15, %v4902_v62 }
0x238e   :  { %6171 = vtanh.f32 %v4911_v41 }
0x238f   :  { %6173 = vtanh.f32 %v4903_v49 }
0x2394   :  { %v5679_v42 = vpop.f32.mrb[88].mxu0 }
0x2395   :  { %v4924_v36 = vadd.f32 %v6186_v15, %v5679_v42  ;;  %v4915_v5 = vpop.f32.mrb[89].mxu0 }
0x2396   :  { %v6168_v45 = vpop.eup %6167  ;;  %v4916_v27 = vadd.f32 %v6186_v15, %v4915_v5  ;;  %v5680_v56 = vpop.f32.mrb[90].mxu0 }
0x2397   :  { %v6170_v37 = vpop.eup %6169  ;;  %4941 = vst [vmem:[#allocation5 + $0x110] sm:$0xff] %v6168_v45  ;;  %6175 = vtanh.f32 %v4924_v36  ;;  %v4927_v7 = vadd.f32 %v6186_v15, %v5680_v56  ;;  %v4918_v17 = vpop.f32.mrb[91].mxu0 }
0x2398   :  { %v6172_v59 = vpop.eup %6171  ;;  %4939 = vst [vmem:[#allocation5 + $0x100] sm:$0xff] %v6170_v37  ;;  %6177 = vtanh.f32 %v4916_v27  ;;  %v4919_v52 = vadd.f32 %v6186_v15, %v4918_v17 }
0x2399   :  { %v6174_v20 = vpop.eup %6173  ;;  %4942 = vst [vmem:[#allocation5 + $0x118] sm:$0xff] %v6172_v59  ;;  %6179 = vtanh.f32 %v4927_v7 }
0x239a   :  { %4940 = vst [vmem:[#allocation5 + $0x108] sm:$0xff] %v6174_v20  ;;  %6181 = vtanh.f32 %v4919_v52 }
0x23a1   :  { %v6176_v46 = vpop.eup %6175 }
0x23a2   :  { %v6178_v9 = vpop.eup %6177  ;;  %4945 = vst [vmem:[#allocation5 + $0x130] sm:$0xff] %v6176_v46 }
0x23a3   :  { %v6180_v26 = vpop.eup %6179  ;;  %4943 = vst [vmem:[#allocation5 + $0x120] sm:$0xff] %v6178_v9 }
0x23a4   :  { %v6182_v60 = vpop.eup %6181  ;;  %4946 = vst [vmem:[#allocation5 + $0x138] sm:$0xff] %v6180_v26 }
0x23a5   :  { %4944 = vst [vmem:[#allocation5 + $0x128] sm:$0xff] %v6182_v60 }
0x23a6   :  { %6198 = shalt.err (!%p6195_p4)
}
0x23a7   :  { %s6199_s1 = scalar_lea.hbm %s7976_s18, 5120 }
0x23a8   :  { %p6200_p5 = scmp.ne.s32.totalorder %s7976_s18, %s6199_s1  ;;  %p6203_p6 = scmp.lt.u32.totalorder %s6199_s1, %s7976_s18 }
0x23aa   :  { %p6205_p7 = pnand %p6203_p6, %p6200_p5 }
0x23ac   :  { %6208 = shalt.err (!%p6205_p7)
}
0x23ad   :  { %s6217_s26 = smov 128   ;;  %s6218_s4 = smov 8  }
0x23ae   :  { %4958 = dma.vmem_to_hbm [thread:$0]  %s4953_s11, 5120, %s7976_s18, [#allocation6], %s6217_s26, %s6217_s26, %s6218_s4  }
0x23af   :  { %6209 = dma.done.wait [#allocation6], 5120  }
0x23b0   :  { %6210 = vsyncadd [#allocation6], 4294962176 }
0x23b1   :  { %4962 = vsyncpa [#allocation6], 1 }

</bundles_post_ra>
